<compile_context>
chip_gen: v7x
topology: tpu7x:2x2x1
jax: 0.10.0
libtpu: 0.0.40
codegen_flags: <defaults>
</compile_context>

<pallas_src>
import functools

import jax
import jax.numpy as jnp
from jax import lax
from jax.experimental import pallas as pl
from jax.experimental.pallas import tpu as pltpu

H1 = 60       # lstm1 hidden (logical)
H2 = 65       # lstm2 hidden (logical)
HP = 128      # per-gate lane-aligned padded width (both layers)
G = 4 * HP    # padded gate width
F1 = 16       # dense1 out
F2 = 2        # dense2 out
EPS = 1e-12   # F.normalize eps


def _lstm_forward_kernel(x_ref,
                         w_ih1_ref, b1_ref, w_hh1_ref,
                         w_ih2_ref, b2_ref, w_hh2_ref,
                         wd1_ref, bd1_ref, wd2_ref, bd2_ref,
                         probs_ref, feat_ref,
                         *, T, BP):
    # x rows are time-major flattened with padded batch: row t*BP + b  <->  x_torch[b, t, :]
    x = x_ref[...].astype(jnp.float32)                         # (T*BP, D)

    # --- F.normalize(x, dim=-2): scale by 1/max(||x||_seq, eps) via rsqrt (EUP) ---
    # Static, sublane-aligned (BP=8) slices; all prologue work, off the serial recurrence.
    ssq = jnp.zeros((BP, x.shape[1]), jnp.float32)
    for t in range(T):
        xt = x[t * BP:(t + 1) * BP, :]
        ssq = ssq + xt * xt
    inv = lax.rsqrt(jnp.maximum(ssq, EPS * EPS))               # == 1 / max(||x||, EPS)
    xn = jnp.concatenate([x[t * BP:(t + 1) * BP, :] * inv for t in range(T)],
                         axis=0).astype(jnp.bfloat16)          # (T*BP, D) bf16

    # --- hoisted layer-1 input projection for ALL timesteps: one MXU op (bf16 in, f32 acc) ---
    xw1 = (jnp.dot(xn, w_ih1_ref[...], preferred_element_type=jnp.float32)
           + b1_ref[...])                                      # (T*BP, G) f32

    def gate_update(gates, c):
        # Gate slices are 128-lane aligned -> pure vreg selects, no cross-lane shuffles.
        i = jax.nn.sigmoid(gates[:, 0 * HP:1 * HP])
        f = jax.nn.sigmoid(gates[:, 1 * HP:2 * HP])
        g = jnp.tanh(gates[:, 2 * HP:3 * HP])
        o = jax.nn.sigmoid(gates[:, 3 * HP:4 * HP])
        c_new = f * c + i * g
        return o * jnp.tanh(c_new), c_new

    # --- layer 1 recurrence: only h1 @ W_hh1 (K=128, bf16) on the serial path ---
    h1 = jnp.zeros((BP, HP), jnp.float32)
    c1 = jnp.zeros((BP, HP), jnp.float32)
    h1_steps = []
    for t in range(T):                                         # static unroll, tiny live state
        gates1 = (xw1[t * BP:(t + 1) * BP, :]
                  + jnp.dot(h1.astype(jnp.bfloat16), w_hh1_ref[...],
                            preferred_element_type=jnp.float32))
        h1, c1 = gate_update(gates1, c1)
        h1_steps.append(h1)
    h1_all = jnp.concatenate(h1_steps, axis=0).astype(jnp.bfloat16)   # (T*BP, HP)

    # TODO(synk): nn.Dropout(0.1) is identity in eval mode; train-mode dropout not applied.

    # --- hoisted layer-2 input projection (bias folded in): one MXU op ---
    xw2 = (jnp.dot(h1_all, w_ih2_ref[...], preferred_element_type=jnp.float32)
           + b2_ref[...])                                      # (T*BP, G) f32

    # --- layer 2 recurrence: only h2 @ W_hh2 (K=128, bf16) on the serial path ---
    h2 = jnp.zeros((BP, HP), jnp.float32)
    c2 = jnp.zeros((BP, HP), jnp.float32)
    for t in range(T):
        gates2 = (xw2[t * BP:(t + 1) * BP, :]
                  + jnp.dot(h2.astype(jnp.bfloat16), w_hh2_ref[...],
                            preferred_element_type=jnp.float32))
        h2, c2 = gate_update(gates2, c2)

    # --- dense head on the last timestep (f32; padded rows of wd1 are zero) ---
    feat = jnp.dot(h2, wd1_ref[...], preferred_element_type=jnp.float32) + bd1_ref[...]
    logits = jnp.dot(feat, wd2_ref[...], preferred_element_type=jnp.float32) + bd2_ref[...]
    logits = logits - jnp.max(logits, axis=-1, keepdims=True)
    e = jnp.exp(logits)
    probs = e / jnp.sum(e, axis=-1, keepdims=True)

    probs_ref[...] = probs.astype(probs_ref.dtype)
    feat_ref[...] = feat.astype(feat_ref.dtype)


# ------------------------- weight preparation (wrapper side) -------------------------

def _pad_gate_cols(w_t, h):
    """(in_dim, 4*h) -> (in_dim, 4*HP); gate k lives at columns [k*HP, k*HP + h)."""
    in_dim = w_t.shape[0]
    out = jnp.zeros((in_dim, G), jnp.float32)
    for k in range(4):
        out = out.at[:, k * HP:k * HP + h].set(w_t[:, k * h:(k + 1) * h])
    return out


def _pad_rows(w, rows_to):
    return jnp.zeros((rows_to, w.shape[1]), jnp.float32).at[:w.shape[0], :].set(w)


def prepare_params(raw):
    """PyTorch-shaped params -> transposed (x @ W), gate-lane-padded, LSTM weights in bf16."""
    (w_ih1, w_hh1, b_ih1, b_hh1,
     w_ih2, w_hh2, b_ih2, b_hh2,
     wd1, bd1, wd2, bd2) = raw

    bf = jnp.bfloat16
    w_ih1_p = _pad_gate_cols(w_ih1.T, H1).astype(bf)                        # (D, 4*HP)
    w_hh1_p = _pad_rows(_pad_gate_cols(w_hh1.T, H1), HP).astype(bf)         # (HP, 4*HP)
    b1_p = _pad_gate_cols((b_ih1 + b_hh1)[None, :], H1)                     # (1, 4*HP) f32

    w_ih2_p = _pad_rows(_pad_gate_cols(w_ih2.T, H2), HP).astype(bf)         # (HP, 4*HP)
    w_hh2_p = _pad_rows(_pad_gate_cols(w_hh2.T, H2), HP).astype(bf)         # (HP, 4*HP)
    b2_p = _pad_gate_cols((b_ih2 + b_hh2)[None, :], H2)                     # (1, 4*HP) f32

    wd1_p = _pad_rows(wd1.T, HP)                                            # (HP, F1) f32
    bd1_p = bd1[None, :]                                                    # (1, F1)
    wd2_p = wd2.T                                                           # (F1, F2)
    bd2_p = bd2[None, :]                                                    # (1, F2)

    return (w_ih1_p, b1_p, w_hh1_p, w_ih2_p, b2_p, w_hh2_p,
            wd1_p, bd1_p, wd2_p, bd2_p)


def lstm_forward(x, raw_params):
    """x: (B, T, D_in) float32 (batch_first, like the PyTorch module)."""
    B, T, D = x.shape
    BP = max(8, ((B + 7) // 8) * 8)          # sublane-aligned padded batch
    prepped = prepare_params(raw_params)

    # time-major flatten with batch padded to BP rows: row t*BP + b  <->  x[b, t, :]
    x_tm = jnp.transpose(x, (1, 0, 2))                                  # (T, B, D)
    x_pad = jnp.zeros((T, BP, D), jnp.float32).at[:, :B, :].set(x_tm)   # zero pad rows
    x_flat = x_pad.reshape(T * BP, D)

    vmem = pl.BlockSpec(memory_space=pltpu.MemorySpace.VMEM)
    kernel = functools.partial(_lstm_forward_kernel, T=T, BP=BP)

    probs, feat = pl.pallas_call(
        kernel,
        out_shape=(jax.ShapeDtypeStruct((BP, F2), jnp.float32),
                   jax.ShapeDtypeStruct((BP, F1), jnp.float32)),
        in_specs=[vmem] * (1 + len(prepped)),
        out_specs=(vmem, vmem),
    )(x_flat, *prepped)
    return probs[:B], feat[:B]


# ---------------------------- reference / parameter setup ----------------------------

def init_params(key, input_size):
    """Deterministic synthetic parameters with PyTorch nn.LSTM / nn.Linear shapes."""
    ks = jax.random.split(key, 12)

    def u(k, shape, fan):
        s = 1.0 / (fan ** 0.5)
        return jax.random.uniform(k, shape, jnp.float32, -s, s)

    w_ih1 = u(ks[0], (4 * H1, input_size), H1)
    w_hh1 = u(ks[1], (4 * H1, H1), H1)
    b_ih1 = u(ks[2], (4 * H1,), H1)
    b_hh1 = u(ks[3], (4 * H1,), H1)
    w_ih2 = u(ks[4], (4 * H2, H1), H2)
    w_hh2 = u(ks[5], (4 * H2, H2), H2)
    b_ih2 = u(ks[6], (4 * H2,), H2)
    b_hh2 = u(ks[7], (4 * H2,), H2)
    wd1 = u(ks[8], (F1, H2), H2)
    bd1 = u(ks[9], (F1,), H2)
    wd2 = u(ks[10], (F2, F1), F1)
    bd2 = u(ks[11], (F2,), F1)
    return (w_ih1, w_hh1, b_ih1, b_hh1, w_ih2, w_hh2, b_ih2, b_hh2,
            wd1, bd1, wd2, bd2)


def _reference_forward(x, raw):
    """Pure-JAX f32 reference of the PyTorch forward (eval mode)."""
    (w_ih1, w_hh1, b_ih1, b_hh1, w_ih2, w_hh2, b_ih2, b_hh2,
     wd1, bd1, wd2, bd2) = raw
    norm = jnp.sqrt(jnp.sum(x * x, axis=1, keepdims=True))     # dim=-2 is the T axis
    xn = x / jnp.maximum(norm, EPS)

    def run_layer(seq, w_ih, w_hh, b_ih, b_hh, hid):
        b, t_len, _ = seq.shape
        h = jnp.zeros((b, hid), jnp.float32)
        c = jnp.zeros((b, hid), jnp.float32)
        outs = []
        for t in range(t_len):
            g = seq[:, t] @ w_ih.T + h @ w_hh.T + b_ih + b_hh
            i = jax.nn.sigmoid(g[:, 0 * hid:1 * hid])
            f = jax.nn.sigmoid(g[:, 1 * hid:2 * hid])
            gg = jnp.tanh(g[:, 2 * hid:3 * hid])
            o = jax.nn.sigmoid(g[:, 3 * hid:4 * hid])
            c = f * c + i * gg
            h = o * jnp.tanh(c)
            outs.append(h)
        return jnp.stack(outs, axis=1)

    y1 = run_layer(xn, w_ih1, w_hh1, b_ih1, b_hh1, H1)
    y2 = run_layer(y1, w_ih2, w_hh2, b_ih2, b_hh2, H2)
    feat = y2[:, -1] @ wd1.T + bd1
    logits = feat @ wd2.T + bd2
    return jax.nn.softmax(logits, axis=-1), feat


if __name__ == "__main__":
    key = jax.random.PRNGKey(0)
    k_x, k_p = jax.random.split(key)

    B, T, D_IN = 2, 8, 16
    x = jax.random.normal(k_x, (B, T, D_IN), jnp.float32)
    params = init_params(k_p, D_IN)

    probs, e_feature = jax.jit(lstm_forward)(x, params)
    jax.block_until_ready((probs, e_feature))

    assert probs.shape == (B, F2) and e_feature.shape == (B, F1)
    assert bool(jnp.all(jnp.isfinite(probs))) and bool(jnp.all(jnp.isfinite(e_feature)))
    assert bool(jnp.allclose(jnp.sum(probs, axis=-1), 1.0, atol=1e-5))

    ref_probs, ref_feat = _reference_forward(x, params)
    assert bool(jnp.allclose(probs, ref_probs, atol=1e-2)), "probs mismatch vs reference"
    assert bool(jnp.allclose(e_feature, ref_feat, atol=1e-2)), "feature mismatch vs reference"

    print("KERNEL_OK")
</pallas_src>

<mosaic_0001>
module attributes {stable_mosaic.version = 11 : i64} {
  func.func @_lstm_forward_kernel(%arg0: memref<64x16xf32, #tpu.memory_space<vmem>>, %arg1: memref<16x512xbf16, #tpu.memory_space<vmem>>, %arg2: memref<1x512xf32, #tpu.memory_space<vmem>>, %arg3: memref<128x512xbf16, #tpu.memory_space<vmem>>, %arg4: memref<128x512xbf16, #tpu.memory_space<vmem>>, %arg5: memref<1x512xf32, #tpu.memory_space<vmem>>, %arg6: memref<128x512xbf16, #tpu.memory_space<vmem>>, %arg7: memref<128x16xf32, #tpu.memory_space<vmem>>, %arg8: memref<1x16xf32, #tpu.memory_space<vmem>>, %arg9: memref<16x2xf32, #tpu.memory_space<vmem>>, %arg10: memref<1x2xf32, #tpu.memory_space<vmem>>, %arg11: memref<8x2xf32, #tpu.memory_space<vmem>>, %arg12: memref<8x16xf32, #tpu.memory_space<vmem>>) attributes {dimension_semantics = [], scalar_prefetch = 0 : i64, scratch_operands = 0 : i64, tpu.core_type = #tpu.core_type<tc>} {
    %c0 = arith.constant 0 : index
    %c0_0 = arith.constant 0 : index
    %0 = vector.load %arg0[%c0, %c0_0] : memref<64x16xf32, #tpu.memory_space<vmem>>, vector<64x16xf32>
    %cst = arith.constant 0.000000e+00 : f32
    %1 = vector.broadcast %cst : f32 to vector<8x16xf32>
    %2 = vector.extract_strided_slice %0 {offsets = [0, 0], sizes = [8, 16], strides = [1, 1]} : vector<64x16xf32> to vector<8x16xf32>
    %3 = arith.mulf %2, %2 : vector<8x16xf32>
    %4 = arith.addf %1, %3 : vector<8x16xf32>
    %5 = vector.extract_strided_slice %0 {offsets = [8, 0], sizes = [8, 16], strides = [1, 1]} : vector<64x16xf32> to vector<8x16xf32>
    %6 = arith.mulf %5, %5 : vector<8x16xf32>
    %7 = arith.addf %4, %6 : vector<8x16xf32>
    %8 = vector.extract_strided_slice %0 {offsets = [16, 0], sizes = [8, 16], strides = [1, 1]} : vector<64x16xf32> to vector<8x16xf32>
    %9 = arith.mulf %8, %8 : vector<8x16xf32>
    %10 = arith.addf %7, %9 : vector<8x16xf32>
    %11 = vector.extract_strided_slice %0 {offsets = [24, 0], sizes = [8, 16], strides = [1, 1]} : vector<64x16xf32> to vector<8x16xf32>
    %12 = arith.mulf %11, %11 : vector<8x16xf32>
    %13 = arith.addf %10, %12 : vector<8x16xf32>
    %14 = vector.extract_strided_slice %0 {offsets = [32, 0], sizes = [8, 16], strides = [1, 1]} : vector<64x16xf32> to vector<8x16xf32>
    %15 = arith.mulf %14, %14 : vector<8x16xf32>
    %16 = arith.addf %13, %15 : vector<8x16xf32>
    %17 = vector.extract_strided_slice %0 {offsets = [40, 0], sizes = [8, 16], strides = [1, 1]} : vector<64x16xf32> to vector<8x16xf32>
    %18 = arith.mulf %17, %17 : vector<8x16xf32>
    %19 = arith.addf %16, %18 : vector<8x16xf32>
    %20 = vector.extract_strided_slice %0 {offsets = [48, 0], sizes = [8, 16], strides = [1, 1]} : vector<64x16xf32> to vector<8x16xf32>
    %21 = arith.mulf %20, %20 : vector<8x16xf32>
    %22 = arith.addf %19, %21 : vector<8x16xf32>
    %23 = vector.extract_strided_slice %0 {offsets = [56, 0], sizes = [8, 16], strides = [1, 1]} : vector<64x16xf32> to vector<8x16xf32>
    %24 = arith.mulf %23, %23 : vector<8x16xf32>
    %25 = arith.addf %22, %24 : vector<8x16xf32>
    %cst_1 = arith.constant 1.000000e-24 : f32
    %26 = vector.broadcast %cst_1 : f32 to vector<8x16xf32>
    %27 = arith.maximumf %25, %26 : vector<8x16xf32>
    %28 = math.rsqrt %27 : vector<8x16xf32>
    %29 = vector.extract_strided_slice %0 {offsets = [0, 0], sizes = [8, 16], strides = [1, 1]} : vector<64x16xf32> to vector<8x16xf32>
    %30 = arith.mulf %29, %28 : vector<8x16xf32>
    %31 = vector.extract_strided_slice %0 {offsets = [8, 0], sizes = [8, 16], strides = [1, 1]} : vector<64x16xf32> to vector<8x16xf32>
    %32 = arith.mulf %31, %28 : vector<8x16xf32>
    %33 = vector.extract_strided_slice %0 {offsets = [16, 0], sizes = [8, 16], strides = [1, 1]} : vector<64x16xf32> to vector<8x16xf32>
    %34 = arith.mulf %33, %28 : vector<8x16xf32>
    %35 = vector.extract_strided_slice %0 {offsets = [24, 0], sizes = [8, 16], strides = [1, 1]} : vector<64x16xf32> to vector<8x16xf32>
    %36 = arith.mulf %35, %28 : vector<8x16xf32>
    %37 = vector.extract_strided_slice %0 {offsets = [32, 0], sizes = [8, 16], strides = [1, 1]} : vector<64x16xf32> to vector<8x16xf32>
    %38 = arith.mulf %37, %28 : vector<8x16xf32>
    %39 = vector.extract_strided_slice %0 {offsets = [40, 0], sizes = [8, 16], strides = [1, 1]} : vector<64x16xf32> to vector<8x16xf32>
    %40 = arith.mulf %39, %28 : vector<8x16xf32>
    %41 = vector.extract_strided_slice %0 {offsets = [48, 0], sizes = [8, 16], strides = [1, 1]} : vector<64x16xf32> to vector<8x16xf32>
    %42 = arith.mulf %41, %28 : vector<8x16xf32>
    %43 = vector.extract_strided_slice %0 {offsets = [56, 0], sizes = [8, 16], strides = [1, 1]} : vector<64x16xf32> to vector<8x16xf32>
    %44 = arith.mulf %43, %28 : vector<8x16xf32>
    %45 = tpu.concatenate %30, %32, %34, %36, %38, %40, %42, %44 in 0 : vector<8x16xf32>, vector<8x16xf32>, vector<8x16xf32>, vector<8x16xf32>, vector<8x16xf32>, vector<8x16xf32>, vector<8x16xf32>, vector<8x16xf32> -> vector<64x16xf32>
    %46 = arith.truncf %45 : vector<64x16xf32> to vector<64x16xbf16>
    %c0_2 = arith.constant 0 : index
    %c0_3 = arith.constant 0 : index
    %47 = vector.load %arg1[%c0_2, %c0_3] : memref<16x512xbf16, #tpu.memory_space<vmem>>, vector<16x512xbf16>
    %cst_4 = arith.constant dense<0.000000e+00> : vector<64x512xf32>
    %48 = tpu.matmul %46, %47, %cst_4 {dimension_numbers = #tpu.dot_dimension_numbers<[1], [0], [0], [1], [0, 0, 1, 1], [], []>} : vector<64x16xbf16>, vector<16x512xbf16>, vector<64x512xf32> -> vector<64x512xf32>
    %c0_5 = arith.constant 0 : index
    %c0_6 = arith.constant 0 : index
    %49 = vector.load %arg2[%c0_5, %c0_6] : memref<1x512xf32, #tpu.memory_space<vmem>>, vector<1x512xf32>
    %50 = vector.broadcast %49 : vector<1x512xf32> to vector<64x512xf32>
    %51 = arith.addf %48, %50 : vector<64x512xf32>
    %cst_7 = arith.constant 0.000000e+00 : f32
    %52 = vector.broadcast %cst_7 : f32 to vector<8x128xf32>
    %cst_8 = arith.constant 0.000000e+00 : f32
    %53 = vector.broadcast %cst_8 : f32 to vector<8x128xf32>
    %54 = vector.extract_strided_slice %51 {offsets = [0, 0], sizes = [8, 512], strides = [1, 1]} : vector<64x512xf32> to vector<8x512xf32>
    %55 = arith.truncf %52 : vector<8x128xf32> to vector<8x128xbf16>
    %c0_9 = arith.constant 0 : index
    %c0_10 = arith.constant 0 : index
    %56 = vector.load %arg3[%c0_9, %c0_10] : memref<128x512xbf16, #tpu.memory_space<vmem>>, vector<128x512xbf16>
    %cst_11 = arith.constant dense<0.000000e+00> : vector<8x512xf32>
    %57 = tpu.matmul %55, %56, %cst_11 {dimension_numbers = #tpu.dot_dimension_numbers<[1], [0], [0], [1], [0, 0, 1, 1], [], []>} : vector<8x128xbf16>, vector<128x512xbf16>, vector<8x512xf32> -> vector<8x512xf32>
    %58 = arith.addf %54, %57 : vector<8x512xf32>
    %59 = vector.extract_strided_slice %58 {offsets = [0, 0], sizes = [8, 128], strides = [1, 1]} : vector<8x512xf32> to vector<8x128xf32>
    %60 = arith.negf %59 : vector<8x128xf32>
    %61 = math.exp %60 : vector<8x128xf32>
    %cst_12 = arith.constant 1.000000e+00 : f32
    %62 = vector.broadcast %cst_12 : f32 to vector<8x128xf32>
    %63 = arith.addf %62, %61 : vector<8x128xf32>
    %64 = arith.divf %62, %63 : vector<8x128xf32>
    %65 = vector.extract_strided_slice %58 {offsets = [0, 128], sizes = [8, 128], strides = [1, 1]} : vector<8x512xf32> to vector<8x128xf32>
    %66 = arith.negf %65 : vector<8x128xf32>
    %67 = math.exp %66 : vector<8x128xf32>
    %cst_13 = arith.constant 1.000000e+00 : f32
    %68 = vector.broadcast %cst_13 : f32 to vector<8x128xf32>
    %69 = arith.addf %68, %67 : vector<8x128xf32>
    %70 = arith.divf %68, %69 : vector<8x128xf32>
    %71 = vector.extract_strided_slice %58 {offsets = [0, 256], sizes = [8, 128], strides = [1, 1]} : vector<8x512xf32> to vector<8x128xf32>
    %72 = math.tanh %71 : vector<8x128xf32>
    %73 = vector.extract_strided_slice %58 {offsets = [0, 384], sizes = [8, 128], strides = [1, 1]} : vector<8x512xf32> to vector<8x128xf32>
    %74 = arith.negf %73 : vector<8x128xf32>
    %75 = math.exp %74 : vector<8x128xf32>
    %cst_14 = arith.constant 1.000000e+00 : f32
    %76 = vector.broadcast %cst_14 : f32 to vector<8x128xf32>
    %77 = arith.addf %76, %75 : vector<8x128xf32>
    %78 = arith.divf %76, %77 : vector<8x128xf32>
    %79 = arith.mulf %70, %53 : vector<8x128xf32>
    %80 = arith.mulf %64, %72 : vector<8x128xf32>
    %81 = arith.addf %79, %80 : vector<8x128xf32>
    %82 = math.tanh %81 : vector<8x128xf32>
    %83 = arith.mulf %78, %82 : vector<8x128xf32>
    %84 = vector.extract_strided_slice %51 {offsets = [8, 0], sizes = [8, 512], strides = [1, 1]} : vector<64x512xf32> to vector<8x512xf32>
    %85 = arith.truncf %83 : vector<8x128xf32> to vector<8x128xbf16>
    %c0_15 = arith.constant 0 : index
    %c0_16 = arith.constant 0 : index
    %86 = vector.load %arg3[%c0_15, %c0_16] : memref<128x512xbf16, #tpu.memory_space<vmem>>, vector<128x512xbf16>
    %cst_17 = arith.constant dense<0.000000e+00> : vector<8x512xf32>
    %87 = tpu.matmul %85, %86, %cst_17 {dimension_numbers = #tpu.dot_dimension_numbers<[1], [0], [0], [1], [0, 0, 1, 1], [], []>} : vector<8x128xbf16>, vector<128x512xbf16>, vector<8x512xf32> -> vector<8x512xf32>
    %88 = arith.addf %84, %87 : vector<8x512xf32>
    %89 = vector.extract_strided_slice %88 {offsets = [0, 0], sizes = [8, 128], strides = [1, 1]} : vector<8x512xf32> to vector<8x128xf32>
    %90 = arith.negf %89 : vector<8x128xf32>
    %91 = math.exp %90 : vector<8x128xf32>
    %cst_18 = arith.constant 1.000000e+00 : f32
    %92 = vector.broadcast %cst_18 : f32 to vector<8x128xf32>
    %93 = arith.addf %92, %91 : vector<8x128xf32>
    %94 = arith.divf %92, %93 : vector<8x128xf32>
    %95 = vector.extract_strided_slice %88 {offsets = [0, 128], sizes = [8, 128], strides = [1, 1]} : vector<8x512xf32> to vector<8x128xf32>
    %96 = arith.negf %95 : vector<8x128xf32>
    %97 = math.exp %96 : vector<8x128xf32>
    %cst_19 = arith.constant 1.000000e+00 : f32
    %98 = vector.broadcast %cst_19 : f32 to vector<8x128xf32>
    %99 = arith.addf %98, %97 : vector<8x128xf32>
    %100 = arith.divf %98, %99 : vector<8x128xf32>
    %101 = vector.extract_strided_slice %88 {offsets = [0, 256], sizes = [8, 128], strides = [1, 1]} : vector<8x512xf32> to vector<8x128xf32>
    %102 = math.tanh %101 : vector<8x128xf32>
    %103 = vector.extract_strided_slice %88 {offsets = [0, 384], sizes = [8, 128], strides = [1, 1]} : vector<8x512xf32> to vector<8x128xf32>
    %104 = arith.negf %103 : vector<8x128xf32>
    %105 = math.exp %104 : vector<8x128xf32>
    %cst_20 = arith.constant 1.000000e+00 : f32
    %106 = vector.broadcast %cst_20 : f32 to vector<8x128xf32>
    %107 = arith.addf %106, %105 : vector<8x128xf32>
    %108 = arith.divf %106, %107 : vector<8x128xf32>
    %109 = arith.mulf %100, %81 : vector<8x128xf32>
    %110 = arith.mulf %94, %102 : vector<8x128xf32>
    %111 = arith.addf %109, %110 : vector<8x128xf32>
    %112 = math.tanh %111 : vector<8x128xf32>
    %113 = arith.mulf %108, %112 : vector<8x128xf32>
    %114 = vector.extract_strided_slice %51 {offsets = [16, 0], sizes = [8, 512], strides = [1, 1]} : vector<64x512xf32> to vector<8x512xf32>
    %115 = arith.truncf %113 : vector<8x128xf32> to vector<8x128xbf16>
    %c0_21 = arith.constant 0 : index
    %c0_22 = arith.constant 0 : index
    %116 = vector.load %arg3[%c0_21, %c0_22] : memref<128x512xbf16, #tpu.memory_space<vmem>>, vector<128x512xbf16>
    %cst_23 = arith.constant dense<0.000000e+00> : vector<8x512xf32>
    %117 = tpu.matmul %115, %116, %cst_23 {dimension_numbers = #tpu.dot_dimension_numbers<[1], [0], [0], [1], [0, 0, 1, 1], [], []>} : vector<8x128xbf16>, vector<128x512xbf16>, vector<8x512xf32> -> vector<8x512xf32>
    %118 = arith.addf %114, %117 : vector<8x512xf32>
    %119 = vector.extract_strided_slice %118 {offsets = [0, 0], sizes = [8, 128], strides = [1, 1]} : vector<8x512xf32> to vector<8x128xf32>
    %120 = arith.negf %119 : vector<8x128xf32>
    %121 = math.exp %120 : vector<8x128xf32>
    %cst_24 = arith.constant 1.000000e+00 : f32
    %122 = vector.broadcast %cst_24 : f32 to vector<8x128xf32>
    %123 = arith.addf %122, %121 : vector<8x128xf32>
    %124 = arith.divf %122, %123 : vector<8x128xf32>
    %125 = vector.extract_strided_slice %118 {offsets = [0, 128], sizes = [8, 128], strides = [1, 1]} : vector<8x512xf32> to vector<8x128xf32>
    %126 = arith.negf %125 : vector<8x128xf32>
    %127 = math.exp %126 : vector<8x128xf32>
    %cst_25 = arith.constant 1.000000e+00 : f32
    %128 = vector.broadcast %cst_25 : f32 to vector<8x128xf32>
    %129 = arith.addf %128, %127 : vector<8x128xf32>
    %130 = arith.divf %128, %129 : vector<8x128xf32>
    %131 = vector.extract_strided_slice %118 {offsets = [0, 256], sizes = [8, 128], strides = [1, 1]} : vector<8x512xf32> to vector<8x128xf32>
    %132 = math.tanh %131 : vector<8x128xf32>
    %133 = vector.extract_strided_slice %118 {offsets = [0, 384], sizes = [8, 128], strides = [1, 1]} : vector<8x512xf32> to vector<8x128xf32>
    %134 = arith.negf %133 : vector<8x128xf32>
    %135 = math.exp %134 : vector<8x128xf32>
    %cst_26 = arith.constant 1.000000e+00 : f32
    %136 = vector.broadcast %cst_26 : f32 to vector<8x128xf32>
    %137 = arith.addf %136, %135 : vector<8x128xf32>
    %138 = arith.divf %136, %137 : vector<8x128xf32>
    %139 = arith.mulf %130, %111 : vector<8x128xf32>
    %140 = arith.mulf %124, %132 : vector<8x128xf32>
    %141 = arith.addf %139, %140 : vector<8x128xf32>
    %142 = math.tanh %141 : vector<8x128xf32>
    %143 = arith.mulf %138, %142 : vector<8x128xf32>
    %144 = vector.extract_strided_slice %51 {offsets = [24, 0], sizes = [8, 512], strides = [1, 1]} : vector<64x512xf32> to vector<8x512xf32>
    %145 = arith.truncf %143 : vector<8x128xf32> to vector<8x128xbf16>
    %c0_27 = arith.constant 0 : index
    %c0_28 = arith.constant 0 : index
    %146 = vector.load %arg3[%c0_27, %c0_28] : memref<128x512xbf16, #tpu.memory_space<vmem>>, vector<128x512xbf16>
    %cst_29 = arith.constant dense<0.000000e+00> : vector<8x512xf32>
    %147 = tpu.matmul %145, %146, %cst_29 {dimension_numbers = #tpu.dot_dimension_numbers<[1], [0], [0], [1], [0, 0, 1, 1], [], []>} : vector<8x128xbf16>, vector<128x512xbf16>, vector<8x512xf32> -> vector<8x512xf32>
    %148 = arith.addf %144, %147 : vector<8x512xf32>
    %149 = vector.extract_strided_slice %148 {offsets = [0, 0], sizes = [8, 128], strides = [1, 1]} : vector<8x512xf32> to vector<8x128xf32>
    %150 = arith.negf %149 : vector<8x128xf32>
    %151 = math.exp %150 : vector<8x128xf32>
    %cst_30 = arith.constant 1.000000e+00 : f32
    %152 = vector.broadcast %cst_30 : f32 to vector<8x128xf32>
    %153 = arith.addf %152, %151 : vector<8x128xf32>
    %154 = arith.divf %152, %153 : vector<8x128xf32>
    %155 = vector.extract_strided_slice %148 {offsets = [0, 128], sizes = [8, 128], strides = [1, 1]} : vector<8x512xf32> to vector<8x128xf32>
    %156 = arith.negf %155 : vector<8x128xf32>
    %157 = math.exp %156 : vector<8x128xf32>
    %cst_31 = arith.constant 1.000000e+00 : f32
    %158 = vector.broadcast %cst_31 : f32 to vector<8x128xf32>
    %159 = arith.addf %158, %157 : vector<8x128xf32>
    %160 = arith.divf %158, %159 : vector<8x128xf32>
    %161 = vector.extract_strided_slice %148 {offsets = [0, 256], sizes = [8, 128], strides = [1, 1]} : vector<8x512xf32> to vector<8x128xf32>
    %162 = math.tanh %161 : vector<8x128xf32>
    %163 = vector.extract_strided_slice %148 {offsets = [0, 384], sizes = [8, 128], strides = [1, 1]} : vector<8x512xf32> to vector<8x128xf32>
    %164 = arith.negf %163 : vector<8x128xf32>
    %165 = math.exp %164 : vector<8x128xf32>
    %cst_32 = arith.constant 1.000000e+00 : f32
    %166 = vector.broadcast %cst_32 : f32 to vector<8x128xf32>
    %167 = arith.addf %166, %165 : vector<8x128xf32>
    %168 = arith.divf %166, %167 : vector<8x128xf32>
    %169 = arith.mulf %160, %141 : vector<8x128xf32>
    %170 = arith.mulf %154, %162 : vector<8x128xf32>
    %171 = arith.addf %169, %170 : vector<8x128xf32>
    %172 = math.tanh %171 : vector<8x128xf32>
    %173 = arith.mulf %168, %172 : vector<8x128xf32>
    %174 = vector.extract_strided_slice %51 {offsets = [32, 0], sizes = [8, 512], strides = [1, 1]} : vector<64x512xf32> to vector<8x512xf32>
    %175 = arith.truncf %173 : vector<8x128xf32> to vector<8x128xbf16>
    %c0_33 = arith.constant 0 : index
    %c0_34 = arith.constant 0 : index
    %176 = vector.load %arg3[%c0_33, %c0_34] : memref<128x512xbf16, #tpu.memory_space<vmem>>, vector<128x512xbf16>
    %cst_35 = arith.constant dense<0.000000e+00> : vector<8x512xf32>
    %177 = tpu.matmul %175, %176, %cst_35 {dimension_numbers = #tpu.dot_dimension_numbers<[1], [0], [0], [1], [0, 0, 1, 1], [], []>} : vector<8x128xbf16>, vector<128x512xbf16>, vector<8x512xf32> -> vector<8x512xf32>
    %178 = arith.addf %174, %177 : vector<8x512xf32>
    %179 = vector.extract_strided_slice %178 {offsets = [0, 0], sizes = [8, 128], strides = [1, 1]} : vector<8x512xf32> to vector<8x128xf32>
    %180 = arith.negf %179 : vector<8x128xf32>
    %181 = math.exp %180 : vector<8x128xf32>
    %cst_36 = arith.constant 1.000000e+00 : f32
    %182 = vector.broadcast %cst_36 : f32 to vector<8x128xf32>
    %183 = arith.addf %182, %181 : vector<8x128xf32>
    %184 = arith.divf %182, %183 : vector<8x128xf32>
    %185 = vector.extract_strided_slice %178 {offsets = [0, 128], sizes = [8, 128], strides = [1, 1]} : vector<8x512xf32> to vector<8x128xf32>
    %186 = arith.negf %185 : vector<8x128xf32>
    %187 = math.exp %186 : vector<8x128xf32>
    %cst_37 = arith.constant 1.000000e+00 : f32
    %188 = vector.broadcast %cst_37 : f32 to vector<8x128xf32>
    %189 = arith.addf %188, %187 : vector<8x128xf32>
    %190 = arith.divf %188, %189 : vector<8x128xf32>
    %191 = vector.extract_strided_slice %178 {offsets = [0, 256], sizes = [8, 128], strides = [1, 1]} : vector<8x512xf32> to vector<8x128xf32>
    %192 = math.tanh %191 : vector<8x128xf32>
    %193 = vector.extract_strided_slice %178 {offsets = [0, 384], sizes = [8, 128], strides = [1, 1]} : vector<8x512xf32> to vector<8x128xf32>
    %194 = arith.negf %193 : vector<8x128xf32>
    %195 = math.exp %194 : vector<8x128xf32>
    %cst_38 = arith.constant 1.000000e+00 : f32
    %196 = vector.broadcast %cst_38 : f32 to vector<8x128xf32>
    %197 = arith.addf %196, %195 : vector<8x128xf32>
    %198 = arith.divf %196, %197 : vector<8x128xf32>
    %199 = arith.mulf %190, %171 : vector<8x128xf32>
    %200 = arith.mulf %184, %192 : vector<8x128xf32>
    %201 = arith.addf %199, %200 : vector<8x128xf32>
    %202 = math.tanh %201 : vector<8x128xf32>
    %203 = arith.mulf %198, %202 : vector<8x128xf32>
    %204 = vector.extract_strided_slice %51 {offsets = [40, 0], sizes = [8, 512], strides = [1, 1]} : vector<64x512xf32> to vector<8x512xf32>
    %205 = arith.truncf %203 : vector<8x128xf32> to vector<8x128xbf16>
    %c0_39 = arith.constant 0 : index
    %c0_40 = arith.constant 0 : index
    %206 = vector.load %arg3[%c0_39, %c0_40] : memref<128x512xbf16, #tpu.memory_space<vmem>>, vector<128x512xbf16>
    %cst_41 = arith.constant dense<0.000000e+00> : vector<8x512xf32>
    %207 = tpu.matmul %205, %206, %cst_41 {dimension_numbers = #tpu.dot_dimension_numbers<[1], [0], [0], [1], [0, 0, 1, 1], [], []>} : vector<8x128xbf16>, vector<128x512xbf16>, vector<8x512xf32> -> vector<8x512xf32>
    %208 = arith.addf %204, %207 : vector<8x512xf32>
    %209 = vector.extract_strided_slice %208 {offsets = [0, 0], sizes = [8, 128], strides = [1, 1]} : vector<8x512xf32> to vector<8x128xf32>
    %210 = arith.negf %209 : vector<8x128xf32>
    %211 = math.exp %210 : vector<8x128xf32>
    %cst_42 = arith.constant 1.000000e+00 : f32
    %212 = vector.broadcast %cst_42 : f32 to vector<8x128xf32>
    %213 = arith.addf %212, %211 : vector<8x128xf32>
    %214 = arith.divf %212, %213 : vector<8x128xf32>
    %215 = vector.extract_strided_slice %208 {offsets = [0, 128], sizes = [8, 128], strides = [1, 1]} : vector<8x512xf32> to vector<8x128xf32>
    %216 = arith.negf %215 : vector<8x128xf32>
    %217 = math.exp %216 : vector<8x128xf32>
    %cst_43 = arith.constant 1.000000e+00 : f32
    %218 = vector.broadcast %cst_43 : f32 to vector<8x128xf32>
    %219 = arith.addf %218, %217 : vector<8x128xf32>
    %220 = arith.divf %218, %219 : vector<8x128xf32>
    %221 = vector.extract_strided_slice %208 {offsets = [0, 256], sizes = [8, 128], strides = [1, 1]} : vector<8x512xf32> to vector<8x128xf32>
    %222 = math.tanh %221 : vector<8x128xf32>
    %223 = vector.extract_strided_slice %208 {offsets = [0, 384], sizes = [8, 128], strides = [1, 1]} : vector<8x512xf32> to vector<8x128xf32>
    %224 = arith.negf %223 : vector<8x128xf32>
    %225 = math.exp %224 : vector<8x128xf32>
    %cst_44 = arith.constant 1.000000e+00 : f32
    %226 = vector.broadcast %cst_44 : f32 to vector<8x128xf32>
    %227 = arith.addf %226, %225 : vector<8x128xf32>
    %228 = arith.divf %226, %227 : vector<8x128xf32>
    %229 = arith.mulf %220, %201 : vector<8x128xf32>
    %230 = arith.mulf %214, %222 : vector<8x128xf32>
    %231 = arith.addf %229, %230 : vector<8x128xf32>
    %232 = math.tanh %231 : vector<8x128xf32>
    %233 = arith.mulf %228, %232 : vector<8x128xf32>
    %234 = vector.extract_strided_slice %51 {offsets = [48, 0], sizes = [8, 512], strides = [1, 1]} : vector<64x512xf32> to vector<8x512xf32>
    %235 = arith.truncf %233 : vector<8x128xf32> to vector<8x128xbf16>
    %c0_45 = arith.constant 0 : index
    %c0_46 = arith.constant 0 : index
    %236 = vector.load %arg3[%c0_45, %c0_46] : memref<128x512xbf16, #tpu.memory_space<vmem>>, vector<128x512xbf16>
    %cst_47 = arith.constant dense<0.000000e+00> : vector<8x512xf32>
    %237 = tpu.matmul %235, %236, %cst_47 {dimension_numbers = #tpu.dot_dimension_numbers<[1], [0], [0], [1], [0, 0, 1, 1], [], []>} : vector<8x128xbf16>, vector<128x512xbf16>, vector<8x512xf32> -> vector<8x512xf32>
    %238 = arith.addf %234, %237 : vector<8x512xf32>
    %239 = vector.extract_strided_slice %238 {offsets = [0, 0], sizes = [8, 128], strides = [1, 1]} : vector<8x512xf32> to vector<8x128xf32>
    %240 = arith.negf %239 : vector<8x128xf32>
    %241 = math.exp %240 : vector<8x128xf32>
    %cst_48 = arith.constant 1.000000e+00 : f32
    %242 = vector.broadcast %cst_48 : f32 to vector<8x128xf32>
    %243 = arith.addf %242, %241 : vector<8x128xf32>
    %244 = arith.divf %242, %243 : vector<8x128xf32>
    %245 = vector.extract_strided_slice %238 {offsets = [0, 128], sizes = [8, 128], strides = [1, 1]} : vector<8x512xf32> to vector<8x128xf32>
    %246 = arith.negf %245 : vector<8x128xf32>
    %247 = math.exp %246 : vector<8x128xf32>
    %cst_49 = arith.constant 1.000000e+00 : f32
    %248 = vector.broadcast %cst_49 : f32 to vector<8x128xf32>
    %249 = arith.addf %248, %247 : vector<8x128xf32>
    %250 = arith.divf %248, %249 : vector<8x128xf32>
    %251 = vector.extract_strided_slice %238 {offsets = [0, 256], sizes = [8, 128], strides = [1, 1]} : vector<8x512xf32> to vector<8x128xf32>
    %252 = math.tanh %251 : vector<8x128xf32>
    %253 = vector.extract_strided_slice %238 {offsets = [0, 384], sizes = [8, 128], strides = [1, 1]} : vector<8x512xf32> to vector<8x128xf32>
    %254 = arith.negf %253 : vector<8x128xf32>
    %255 = math.exp %254 : vector<8x128xf32>
    %cst_50 = arith.constant 1.000000e+00 : f32
    %256 = vector.broadcast %cst_50 : f32 to vector<8x128xf32>
    %257 = arith.addf %256, %255 : vector<8x128xf32>
    %258 = arith.divf %256, %257 : vector<8x128xf32>
    %259 = arith.mulf %250, %231 : vector<8x128xf32>
    %260 = arith.mulf %244, %252 : vector<8x128xf32>
    %261 = arith.addf %259, %260 : vector<8x128xf32>
    %262 = math.tanh %261 : vector<8x128xf32>
    %263 = arith.mulf %258, %262 : vector<8x128xf32>
    %264 = vector.extract_strided_slice %51 {offsets = [56, 0], sizes = [8, 512], strides = [1, 1]} : vector<64x512xf32> to vector<8x512xf32>
    %265 = arith.truncf %263 : vector<8x128xf32> to vector<8x128xbf16>
    %c0_51 = arith.constant 0 : index
    %c0_52 = arith.constant 0 : index
    %266 = vector.load %arg3[%c0_51, %c0_52] : memref<128x512xbf16, #tpu.memory_space<vmem>>, vector<128x512xbf16>
    %cst_53 = arith.constant dense<0.000000e+00> : vector<8x512xf32>
    %267 = tpu.matmul %265, %266, %cst_53 {dimension_numbers = #tpu.dot_dimension_numbers<[1], [0], [0], [1], [0, 0, 1, 1], [], []>} : vector<8x128xbf16>, vector<128x512xbf16>, vector<8x512xf32> -> vector<8x512xf32>
    %268 = arith.addf %264, %267 : vector<8x512xf32>
    %269 = vector.extract_strided_slice %268 {offsets = [0, 0], sizes = [8, 128], strides = [1, 1]} : vector<8x512xf32> to vector<8x128xf32>
    %270 = arith.negf %269 : vector<8x128xf32>
    %271 = math.exp %270 : vector<8x128xf32>
    %cst_54 = arith.constant 1.000000e+00 : f32
    %272 = vector.broadcast %cst_54 : f32 to vector<8x128xf32>
    %273 = arith.addf %272, %271 : vector<8x128xf32>
    %274 = arith.divf %272, %273 : vector<8x128xf32>
    %275 = vector.extract_strided_slice %268 {offsets = [0, 128], sizes = [8, 128], strides = [1, 1]} : vector<8x512xf32> to vector<8x128xf32>
    %276 = arith.negf %275 : vector<8x128xf32>
    %277 = math.exp %276 : vector<8x128xf32>
    %cst_55 = arith.constant 1.000000e+00 : f32
    %278 = vector.broadcast %cst_55 : f32 to vector<8x128xf32>
    %279 = arith.addf %278, %277 : vector<8x128xf32>
    %280 = arith.divf %278, %279 : vector<8x128xf32>
    %281 = vector.extract_strided_slice %268 {offsets = [0, 256], sizes = [8, 128], strides = [1, 1]} : vector<8x512xf32> to vector<8x128xf32>
    %282 = math.tanh %281 : vector<8x128xf32>
    %283 = vector.extract_strided_slice %268 {offsets = [0, 384], sizes = [8, 128], strides = [1, 1]} : vector<8x512xf32> to vector<8x128xf32>
    %284 = arith.negf %283 : vector<8x128xf32>
    %285 = math.exp %284 : vector<8x128xf32>
    %cst_56 = arith.constant 1.000000e+00 : f32
    %286 = vector.broadcast %cst_56 : f32 to vector<8x128xf32>
    %287 = arith.addf %286, %285 : vector<8x128xf32>
    %288 = arith.divf %286, %287 : vector<8x128xf32>
    %289 = arith.mulf %280, %261 : vector<8x128xf32>
    %290 = arith.mulf %274, %282 : vector<8x128xf32>
    %291 = arith.addf %289, %290 : vector<8x128xf32>
    %292 = math.tanh %291 : vector<8x128xf32>
    %293 = arith.mulf %288, %292 : vector<8x128xf32>
    %294 = tpu.concatenate %83, %113, %143, %173, %203, %233, %263, %293 in 0 : vector<8x128xf32>, vector<8x128xf32>, vector<8x128xf32>, vector<8x128xf32>, vector<8x128xf32>, vector<8x128xf32>, vector<8x128xf32>, vector<8x128xf32> -> vector<64x128xf32>
    %295 = arith.truncf %294 : vector<64x128xf32> to vector<64x128xbf16>
    %c0_57 = arith.constant 0 : index
    %c0_58 = arith.constant 0 : index
    %296 = vector.load %arg4[%c0_57, %c0_58] : memref<128x512xbf16, #tpu.memory_space<vmem>>, vector<128x512xbf16>
    %cst_59 = arith.constant dense<0.000000e+00> : vector<64x512xf32>
    %297 = tpu.matmul %295, %296, %cst_59 {dimension_numbers = #tpu.dot_dimension_numbers<[1], [0], [0], [1], [0, 0, 1, 1], [], []>} : vector<64x128xbf16>, vector<128x512xbf16>, vector<64x512xf32> -> vector<64x512xf32>
    %c0_60 = arith.constant 0 : index
    %c0_61 = arith.constant 0 : index
    %298 = vector.load %arg5[%c0_60, %c0_61] : memref<1x512xf32, #tpu.memory_space<vmem>>, vector<1x512xf32>
    %299 = vector.broadcast %298 : vector<1x512xf32> to vector<64x512xf32>
    %300 = arith.addf %297, %299 : vector<64x512xf32>
    %cst_62 = arith.constant 0.000000e+00 : f32
    %301 = vector.broadcast %cst_62 : f32 to vector<8x128xf32>
    %cst_63 = arith.constant 0.000000e+00 : f32
    %302 = vector.broadcast %cst_63 : f32 to vector<8x128xf32>
    %303 = vector.extract_strided_slice %300 {offsets = [0, 0], sizes = [8, 512], strides = [1, 1]} : vector<64x512xf32> to vector<8x512xf32>
    %304 = arith.truncf %301 : vector<8x128xf32> to vector<8x128xbf16>
    %c0_64 = arith.constant 0 : index
    %c0_65 = arith.constant 0 : index
    %305 = vector.load %arg6[%c0_64, %c0_65] : memref<128x512xbf16, #tpu.memory_space<vmem>>, vector<128x512xbf16>
    %cst_66 = arith.constant dense<0.000000e+00> : vector<8x512xf32>
    %306 = tpu.matmul %304, %305, %cst_66 {dimension_numbers = #tpu.dot_dimension_numbers<[1], [0], [0], [1], [0, 0, 1, 1], [], []>} : vector<8x128xbf16>, vector<128x512xbf16>, vector<8x512xf32> -> vector<8x512xf32>
    %307 = arith.addf %303, %306 : vector<8x512xf32>
    %308 = vector.extract_strided_slice %307 {offsets = [0, 0], sizes = [8, 128], strides = [1, 1]} : vector<8x512xf32> to vector<8x128xf32>
    %309 = arith.negf %308 : vector<8x128xf32>
    %310 = math.exp %309 : vector<8x128xf32>
    %cst_67 = arith.constant 1.000000e+00 : f32
    %311 = vector.broadcast %cst_67 : f32 to vector<8x128xf32>
    %312 = arith.addf %311, %310 : vector<8x128xf32>
    %313 = arith.divf %311, %312 : vector<8x128xf32>
    %314 = vector.extract_strided_slice %307 {offsets = [0, 128], sizes = [8, 128], strides = [1, 1]} : vector<8x512xf32> to vector<8x128xf32>
    %315 = arith.negf %314 : vector<8x128xf32>
    %316 = math.exp %315 : vector<8x128xf32>
    %cst_68 = arith.constant 1.000000e+00 : f32
    %317 = vector.broadcast %cst_68 : f32 to vector<8x128xf32>
    %318 = arith.addf %317, %316 : vector<8x128xf32>
    %319 = arith.divf %317, %318 : vector<8x128xf32>
    %320 = vector.extract_strided_slice %307 {offsets = [0, 256], sizes = [8, 128], strides = [1, 1]} : vector<8x512xf32> to vector<8x128xf32>
    %321 = math.tanh %320 : vector<8x128xf32>
    %322 = vector.extract_strided_slice %307 {offsets = [0, 384], sizes = [8, 128], strides = [1, 1]} : vector<8x512xf32> to vector<8x128xf32>
    %323 = arith.negf %322 : vector<8x128xf32>
    %324 = math.exp %323 : vector<8x128xf32>
    %cst_69 = arith.constant 1.000000e+00 : f32
    %325 = vector.broadcast %cst_69 : f32 to vector<8x128xf32>
    %326 = arith.addf %325, %324 : vector<8x128xf32>
    %327 = arith.divf %325, %326 : vector<8x128xf32>
    %328 = arith.mulf %319, %302 : vector<8x128xf32>
    %329 = arith.mulf %313, %321 : vector<8x128xf32>
    %330 = arith.addf %328, %329 : vector<8x128xf32>
    %331 = math.tanh %330 : vector<8x128xf32>
    %332 = arith.mulf %327, %331 : vector<8x128xf32>
    %333 = vector.extract_strided_slice %300 {offsets = [8, 0], sizes = [8, 512], strides = [1, 1]} : vector<64x512xf32> to vector<8x512xf32>
    %334 = arith.truncf %332 : vector<8x128xf32> to vector<8x128xbf16>
    %c0_70 = arith.constant 0 : index
    %c0_71 = arith.constant 0 : index
    %335 = vector.load %arg6[%c0_70, %c0_71] : memref<128x512xbf16, #tpu.memory_space<vmem>>, vector<128x512xbf16>
    %cst_72 = arith.constant dense<0.000000e+00> : vector<8x512xf32>
    %336 = tpu.matmul %334, %335, %cst_72 {dimension_numbers = #tpu.dot_dimension_numbers<[1], [0], [0], [1], [0, 0, 1, 1], [], []>} : vector<8x128xbf16>, vector<128x512xbf16>, vector<8x512xf32> -> vector<8x512xf32>
    %337 = arith.addf %333, %336 : vector<8x512xf32>
    %338 = vector.extract_strided_slice %337 {offsets = [0, 0], sizes = [8, 128], strides = [1, 1]} : vector<8x512xf32> to vector<8x128xf32>
    %339 = arith.negf %338 : vector<8x128xf32>
    %340 = math.exp %339 : vector<8x128xf32>
    %cst_73 = arith.constant 1.000000e+00 : f32
    %341 = vector.broadcast %cst_73 : f32 to vector<8x128xf32>
    %342 = arith.addf %341, %340 : vector<8x128xf32>
    %343 = arith.divf %341, %342 : vector<8x128xf32>
    %344 = vector.extract_strided_slice %337 {offsets = [0, 128], sizes = [8, 128], strides = [1, 1]} : vector<8x512xf32> to vector<8x128xf32>
    %345 = arith.negf %344 : vector<8x128xf32>
    %346 = math.exp %345 : vector<8x128xf32>
    %cst_74 = arith.constant 1.000000e+00 : f32
    %347 = vector.broadcast %cst_74 : f32 to vector<8x128xf32>
    %348 = arith.addf %347, %346 : vector<8x128xf32>
    %349 = arith.divf %347, %348 : vector<8x128xf32>
    %350 = vector.extract_strided_slice %337 {offsets = [0, 256], sizes = [8, 128], strides = [1, 1]} : vector<8x512xf32> to vector<8x128xf32>
    %351 = math.tanh %350 : vector<8x128xf32>
    %352 = vector.extract_strided_slice %337 {offsets = [0, 384], sizes = [8, 128], strides = [1, 1]} : vector<8x512xf32> to vector<8x128xf32>
    %353 = arith.negf %352 : vector<8x128xf32>
    %354 = math.exp %353 : vector<8x128xf32>
    %cst_75 = arith.constant 1.000000e+00 : f32
    %355 = vector.broadcast %cst_75 : f32 to vector<8x128xf32>
    %356 = arith.addf %355, %354 : vector<8x128xf32>
    %357 = arith.divf %355, %356 : vector<8x128xf32>
    %358 = arith.mulf %349, %330 : vector<8x128xf32>
    %359 = arith.mulf %343, %351 : vector<8x128xf32>
    %360 = arith.addf %358, %359 : vector<8x128xf32>
    %361 = math.tanh %360 : vector<8x128xf32>
    %362 = arith.mulf %357, %361 : vector<8x128xf32>
    %363 = vector.extract_strided_slice %300 {offsets = [16, 0], sizes = [8, 512], strides = [1, 1]} : vector<64x512xf32> to vector<8x512xf32>
    %364 = arith.truncf %362 : vector<8x128xf32> to vector<8x128xbf16>
    %c0_76 = arith.constant 0 : index
    %c0_77 = arith.constant 0 : index
    %365 = vector.load %arg6[%c0_76, %c0_77] : memref<128x512xbf16, #tpu.memory_space<vmem>>, vector<128x512xbf16>
    %cst_78 = arith.constant dense<0.000000e+00> : vector<8x512xf32>
    %366 = tpu.matmul %364, %365, %cst_78 {dimension_numbers = #tpu.dot_dimension_numbers<[1], [0], [0], [1], [0, 0, 1, 1], [], []>} : vector<8x128xbf16>, vector<128x512xbf16>, vector<8x512xf32> -> vector<8x512xf32>
    %367 = arith.addf %363, %366 : vector<8x512xf32>
    %368 = vector.extract_strided_slice %367 {offsets = [0, 0], sizes = [8, 128], strides = [1, 1]} : vector<8x512xf32> to vector<8x128xf32>
    %369 = arith.negf %368 : vector<8x128xf32>
    %370 = math.exp %369 : vector<8x128xf32>
    %cst_79 = arith.constant 1.000000e+00 : f32
    %371 = vector.broadcast %cst_79 : f32 to vector<8x128xf32>
    %372 = arith.addf %371, %370 : vector<8x128xf32>
    %373 = arith.divf %371, %372 : vector<8x128xf32>
    %374 = vector.extract_strided_slice %367 {offsets = [0, 128], sizes = [8, 128], strides = [1, 1]} : vector<8x512xf32> to vector<8x128xf32>
    %375 = arith.negf %374 : vector<8x128xf32>
    %376 = math.exp %375 : vector<8x128xf32>
    %cst_80 = arith.constant 1.000000e+00 : f32
    %377 = vector.broadcast %cst_80 : f32 to vector<8x128xf32>
    %378 = arith.addf %377, %376 : vector<8x128xf32>
    %379 = arith.divf %377, %378 : vector<8x128xf32>
    %380 = vector.extract_strided_slice %367 {offsets = [0, 256], sizes = [8, 128], strides = [1, 1]} : vector<8x512xf32> to vector<8x128xf32>
    %381 = math.tanh %380 : vector<8x128xf32>
    %382 = vector.extract_strided_slice %367 {offsets = [0, 384], sizes = [8, 128], strides = [1, 1]} : vector<8x512xf32> to vector<8x128xf32>
    %383 = arith.negf %382 : vector<8x128xf32>
    %384 = math.exp %383 : vector<8x128xf32>
    %cst_81 = arith.constant 1.000000e+00 : f32
    %385 = vector.broadcast %cst_81 : f32 to vector<8x128xf32>
    %386 = arith.addf %385, %384 : vector<8x128xf32>
    %387 = arith.divf %385, %386 : vector<8x128xf32>
    %388 = arith.mulf %379, %360 : vector<8x128xf32>
    %389 = arith.mulf %373, %381 : vector<8x128xf32>
    %390 = arith.addf %388, %389 : vector<8x128xf32>
    %391 = math.tanh %390 : vector<8x128xf32>
    %392 = arith.mulf %387, %391 : vector<8x128xf32>
    %393 = vector.extract_strided_slice %300 {offsets = [24, 0], sizes = [8, 512], strides = [1, 1]} : vector<64x512xf32> to vector<8x512xf32>
    %394 = arith.truncf %392 : vector<8x128xf32> to vector<8x128xbf16>
    %c0_82 = arith.constant 0 : index
    %c0_83 = arith.constant 0 : index
    %395 = vector.load %arg6[%c0_82, %c0_83] : memref<128x512xbf16, #tpu.memory_space<vmem>>, vector<128x512xbf16>
    %cst_84 = arith.constant dense<0.000000e+00> : vector<8x512xf32>
    %396 = tpu.matmul %394, %395, %cst_84 {dimension_numbers = #tpu.dot_dimension_numbers<[1], [0], [0], [1], [0, 0, 1, 1], [], []>} : vector<8x128xbf16>, vector<128x512xbf16>, vector<8x512xf32> -> vector<8x512xf32>
    %397 = arith.addf %393, %396 : vector<8x512xf32>
    %398 = vector.extract_strided_slice %397 {offsets = [0, 0], sizes = [8, 128], strides = [1, 1]} : vector<8x512xf32> to vector<8x128xf32>
    %399 = arith.negf %398 : vector<8x128xf32>
    %400 = math.exp %399 : vector<8x128xf32>
    %cst_85 = arith.constant 1.000000e+00 : f32
    %401 = vector.broadcast %cst_85 : f32 to vector<8x128xf32>
    %402 = arith.addf %401, %400 : vector<8x128xf32>
    %403 = arith.divf %401, %402 : vector<8x128xf32>
    %404 = vector.extract_strided_slice %397 {offsets = [0, 128], sizes = [8, 128], strides = [1, 1]} : vector<8x512xf32> to vector<8x128xf32>
    %405 = arith.negf %404 : vector<8x128xf32>
    %406 = math.exp %405 : vector<8x128xf32>
    %cst_86 = arith.constant 1.000000e+00 : f32
    %407 = vector.broadcast %cst_86 : f32 to vector<8x128xf32>
    %408 = arith.addf %407, %406 : vector<8x128xf32>
    %409 = arith.divf %407, %408 : vector<8x128xf32>
    %410 = vector.extract_strided_slice %397 {offsets = [0, 256], sizes = [8, 128], strides = [1, 1]} : vector<8x512xf32> to vector<8x128xf32>
    %411 = math.tanh %410 : vector<8x128xf32>
    %412 = vector.extract_strided_slice %397 {offsets = [0, 384], sizes = [8, 128], strides = [1, 1]} : vector<8x512xf32> to vector<8x128xf32>
    %413 = arith.negf %412 : vector<8x128xf32>
    %414 = math.exp %413 : vector<8x128xf32>
    %cst_87 = arith.constant 1.000000e+00 : f32
    %415 = vector.broadcast %cst_87 : f32 to vector<8x128xf32>
    %416 = arith.addf %415, %414 : vector<8x128xf32>
    %417 = arith.divf %415, %416 : vector<8x128xf32>
    %418 = arith.mulf %409, %390 : vector<8x128xf32>
    %419 = arith.mulf %403, %411 : vector<8x128xf32>
    %420 = arith.addf %418, %419 : vector<8x128xf32>
    %421 = math.tanh %420 : vector<8x128xf32>
    %422 = arith.mulf %417, %421 : vector<8x128xf32>
    %423 = vector.extract_strided_slice %300 {offsets = [32, 0], sizes = [8, 512], strides = [1, 1]} : vector<64x512xf32> to vector<8x512xf32>
    %424 = arith.truncf %422 : vector<8x128xf32> to vector<8x128xbf16>
    %c0_88 = arith.constant 0 : index
    %c0_89 = arith.constant 0 : index
    %425 = vector.load %arg6[%c0_88, %c0_89] : memref<128x512xbf16, #tpu.memory_space<vmem>>, vector<128x512xbf16>
    %cst_90 = arith.constant dense<0.000000e+00> : vector<8x512xf32>
    %426 = tpu.matmul %424, %425, %cst_90 {dimension_numbers = #tpu.dot_dimension_numbers<[1], [0], [0], [1], [0, 0, 1, 1], [], []>} : vector<8x128xbf16>, vector<128x512xbf16>, vector<8x512xf32> -> vector<8x512xf32>
    %427 = arith.addf %423, %426 : vector<8x512xf32>
    %428 = vector.extract_strided_slice %427 {offsets = [0, 0], sizes = [8, 128], strides = [1, 1]} : vector<8x512xf32> to vector<8x128xf32>
    %429 = arith.negf %428 : vector<8x128xf32>
    %430 = math.exp %429 : vector<8x128xf32>
    %cst_91 = arith.constant 1.000000e+00 : f32
    %431 = vector.broadcast %cst_91 : f32 to vector<8x128xf32>
    %432 = arith.addf %431, %430 : vector<8x128xf32>
    %433 = arith.divf %431, %432 : vector<8x128xf32>
    %434 = vector.extract_strided_slice %427 {offsets = [0, 128], sizes = [8, 128], strides = [1, 1]} : vector<8x512xf32> to vector<8x128xf32>
    %435 = arith.negf %434 : vector<8x128xf32>
    %436 = math.exp %435 : vector<8x128xf32>
    %cst_92 = arith.constant 1.000000e+00 : f32
    %437 = vector.broadcast %cst_92 : f32 to vector<8x128xf32>
    %438 = arith.addf %437, %436 : vector<8x128xf32>
    %439 = arith.divf %437, %438 : vector<8x128xf32>
    %440 = vector.extract_strided_slice %427 {offsets = [0, 256], sizes = [8, 128], strides = [1, 1]} : vector<8x512xf32> to vector<8x128xf32>
    %441 = math.tanh %440 : vector<8x128xf32>
    %442 = vector.extract_strided_slice %427 {offsets = [0, 384], sizes = [8, 128], strides = [1, 1]} : vector<8x512xf32> to vector<8x128xf32>
    %443 = arith.negf %442 : vector<8x128xf32>
    %444 = math.exp %443 : vector<8x128xf32>
    %cst_93 = arith.constant 1.000000e+00 : f32
    %445 = vector.broadcast %cst_93 : f32 to vector<8x128xf32>
    %446 = arith.addf %445, %444 : vector<8x128xf32>
    %447 = arith.divf %445, %446 : vector<8x128xf32>
    %448 = arith.mulf %439, %420 : vector<8x128xf32>
    %449 = arith.mulf %433, %441 : vector<8x128xf32>
    %450 = arith.addf %448, %449 : vector<8x128xf32>
    %451 = math.tanh %450 : vector<8x128xf32>
    %452 = arith.mulf %447, %451 : vector<8x128xf32>
    %453 = vector.extract_strided_slice %300 {offsets = [40, 0], sizes = [8, 512], strides = [1, 1]} : vector<64x512xf32> to vector<8x512xf32>
    %454 = arith.truncf %452 : vector<8x128xf32> to vector<8x128xbf16>
    %c0_94 = arith.constant 0 : index
    %c0_95 = arith.constant 0 : index
    %455 = vector.load %arg6[%c0_94, %c0_95] : memref<128x512xbf16, #tpu.memory_space<vmem>>, vector<128x512xbf16>
    %cst_96 = arith.constant dense<0.000000e+00> : vector<8x512xf32>
    %456 = tpu.matmul %454, %455, %cst_96 {dimension_numbers = #tpu.dot_dimension_numbers<[1], [0], [0], [1], [0, 0, 1, 1], [], []>} : vector<8x128xbf16>, vector<128x512xbf16>, vector<8x512xf32> -> vector<8x512xf32>
    %457 = arith.addf %453, %456 : vector<8x512xf32>
    %458 = vector.extract_strided_slice %457 {offsets = [0, 0], sizes = [8, 128], strides = [1, 1]} : vector<8x512xf32> to vector<8x128xf32>
    %459 = arith.negf %458 : vector<8x128xf32>
    %460 = math.exp %459 : vector<8x128xf32>
    %cst_97 = arith.constant 1.000000e+00 : f32
    %461 = vector.broadcast %cst_97 : f32 to vector<8x128xf32>
    %462 = arith.addf %461, %460 : vector<8x128xf32>
    %463 = arith.divf %461, %462 : vector<8x128xf32>
    %464 = vector.extract_strided_slice %457 {offsets = [0, 128], sizes = [8, 128], strides = [1, 1]} : vector<8x512xf32> to vector<8x128xf32>
    %465 = arith.negf %464 : vector<8x128xf32>
    %466 = math.exp %465 : vector<8x128xf32>
    %cst_98 = arith.constant 1.000000e+00 : f32
    %467 = vector.broadcast %cst_98 : f32 to vector<8x128xf32>
    %468 = arith.addf %467, %466 : vector<8x128xf32>
    %469 = arith.divf %467, %468 : vector<8x128xf32>
    %470 = vector.extract_strided_slice %457 {offsets = [0, 256], sizes = [8, 128], strides = [1, 1]} : vector<8x512xf32> to vector<8x128xf32>
    %471 = math.tanh %470 : vector<8x128xf32>
    %472 = vector.extract_strided_slice %457 {offsets = [0, 384], sizes = [8, 128], strides = [1, 1]} : vector<8x512xf32> to vector<8x128xf32>
    %473 = arith.negf %472 : vector<8x128xf32>
    %474 = math.exp %473 : vector<8x128xf32>
    %cst_99 = arith.constant 1.000000e+00 : f32
    %475 = vector.broadcast %cst_99 : f32 to vector<8x128xf32>
    %476 = arith.addf %475, %474 : vector<8x128xf32>
    %477 = arith.divf %475, %476 : vector<8x128xf32>
    %478 = arith.mulf %469, %450 : vector<8x128xf32>
    %479 = arith.mulf %463, %471 : vector<8x128xf32>
    %480 = arith.addf %478, %479 : vector<8x128xf32>
    %481 = math.tanh %480 : vector<8x128xf32>
    %482 = arith.mulf %477, %481 : vector<8x128xf32>
    %483 = vector.extract_strided_slice %300 {offsets = [48, 0], sizes = [8, 512], strides = [1, 1]} : vector<64x512xf32> to vector<8x512xf32>
    %484 = arith.truncf %482 : vector<8x128xf32> to vector<8x128xbf16>
    %c0_100 = arith.constant 0 : index
    %c0_101 = arith.constant 0 : index
    %485 = vector.load %arg6[%c0_100, %c0_101] : memref<128x512xbf16, #tpu.memory_space<vmem>>, vector<128x512xbf16>
    %cst_102 = arith.constant dense<0.000000e+00> : vector<8x512xf32>
    %486 = tpu.matmul %484, %485, %cst_102 {dimension_numbers = #tpu.dot_dimension_numbers<[1], [0], [0], [1], [0, 0, 1, 1], [], []>} : vector<8x128xbf16>, vector<128x512xbf16>, vector<8x512xf32> -> vector<8x512xf32>
    %487 = arith.addf %483, %486 : vector<8x512xf32>
    %488 = vector.extract_strided_slice %487 {offsets = [0, 0], sizes = [8, 128], strides = [1, 1]} : vector<8x512xf32> to vector<8x128xf32>
    %489 = arith.negf %488 : vector<8x128xf32>
    %490 = math.exp %489 : vector<8x128xf32>
    %cst_103 = arith.constant 1.000000e+00 : f32
    %491 = vector.broadcast %cst_103 : f32 to vector<8x128xf32>
    %492 = arith.addf %491, %490 : vector<8x128xf32>
    %493 = arith.divf %491, %492 : vector<8x128xf32>
    %494 = vector.extract_strided_slice %487 {offsets = [0, 128], sizes = [8, 128], strides = [1, 1]} : vector<8x512xf32> to vector<8x128xf32>
    %495 = arith.negf %494 : vector<8x128xf32>
    %496 = math.exp %495 : vector<8x128xf32>
    %cst_104 = arith.constant 1.000000e+00 : f32
    %497 = vector.broadcast %cst_104 : f32 to vector<8x128xf32>
    %498 = arith.addf %497, %496 : vector<8x128xf32>
    %499 = arith.divf %497, %498 : vector<8x128xf32>
    %500 = vector.extract_strided_slice %487 {offsets = [0, 256], sizes = [8, 128], strides = [1, 1]} : vector<8x512xf32> to vector<8x128xf32>
    %501 = math.tanh %500 : vector<8x128xf32>
    %502 = vector.extract_strided_slice %487 {offsets = [0, 384], sizes = [8, 128], strides = [1, 1]} : vector<8x512xf32> to vector<8x128xf32>
    %503 = arith.negf %502 : vector<8x128xf32>
    %504 = math.exp %503 : vector<8x128xf32>
    %cst_105 = arith.constant 1.000000e+00 : f32
    %505 = vector.broadcast %cst_105 : f32 to vector<8x128xf32>
    %506 = arith.addf %505, %504 : vector<8x128xf32>
    %507 = arith.divf %505, %506 : vector<8x128xf32>
    %508 = arith.mulf %499, %480 : vector<8x128xf32>
    %509 = arith.mulf %493, %501 : vector<8x128xf32>
    %510 = arith.addf %508, %509 : vector<8x128xf32>
    %511 = math.tanh %510 : vector<8x128xf32>
    %512 = arith.mulf %507, %511 : vector<8x128xf32>
    %513 = vector.extract_strided_slice %300 {offsets = [56, 0], sizes = [8, 512], strides = [1, 1]} : vector<64x512xf32> to vector<8x512xf32>
    %514 = arith.truncf %512 : vector<8x128xf32> to vector<8x128xbf16>
    %c0_106 = arith.constant 0 : index
    %c0_107 = arith.constant 0 : index
    %515 = vector.load %arg6[%c0_106, %c0_107] : memref<128x512xbf16, #tpu.memory_space<vmem>>, vector<128x512xbf16>
    %cst_108 = arith.constant dense<0.000000e+00> : vector<8x512xf32>
    %516 = tpu.matmul %514, %515, %cst_108 {dimension_numbers = #tpu.dot_dimension_numbers<[1], [0], [0], [1], [0, 0, 1, 1], [], []>} : vector<8x128xbf16>, vector<128x512xbf16>, vector<8x512xf32> -> vector<8x512xf32>
    %517 = arith.addf %513, %516 : vector<8x512xf32>
    %518 = vector.extract_strided_slice %517 {offsets = [0, 0], sizes = [8, 128], strides = [1, 1]} : vector<8x512xf32> to vector<8x128xf32>
    %519 = arith.negf %518 : vector<8x128xf32>
    %520 = math.exp %519 : vector<8x128xf32>
    %cst_109 = arith.constant 1.000000e+00 : f32
    %521 = vector.broadcast %cst_109 : f32 to vector<8x128xf32>
    %522 = arith.addf %521, %520 : vector<8x128xf32>
    %523 = arith.divf %521, %522 : vector<8x128xf32>
    %524 = vector.extract_strided_slice %517 {offsets = [0, 128], sizes = [8, 128], strides = [1, 1]} : vector<8x512xf32> to vector<8x128xf32>
    %525 = arith.negf %524 : vector<8x128xf32>
    %526 = math.exp %525 : vector<8x128xf32>
    %cst_110 = arith.constant 1.000000e+00 : f32
    %527 = vector.broadcast %cst_110 : f32 to vector<8x128xf32>
    %528 = arith.addf %527, %526 : vector<8x128xf32>
    %529 = arith.divf %527, %528 : vector<8x128xf32>
    %530 = vector.extract_strided_slice %517 {offsets = [0, 256], sizes = [8, 128], strides = [1, 1]} : vector<8x512xf32> to vector<8x128xf32>
    %531 = math.tanh %530 : vector<8x128xf32>
    %532 = vector.extract_strided_slice %517 {offsets = [0, 384], sizes = [8, 128], strides = [1, 1]} : vector<8x512xf32> to vector<8x128xf32>
    %533 = arith.negf %532 : vector<8x128xf32>
    %534 = math.exp %533 : vector<8x128xf32>
    %cst_111 = arith.constant 1.000000e+00 : f32
    %535 = vector.broadcast %cst_111 : f32 to vector<8x128xf32>
    %536 = arith.addf %535, %534 : vector<8x128xf32>
    %537 = arith.divf %535, %536 : vector<8x128xf32>
    %538 = arith.mulf %529, %510 : vector<8x128xf32>
    %539 = arith.mulf %523, %531 : vector<8x128xf32>
    %540 = arith.addf %538, %539 : vector<8x128xf32>
    %541 = math.tanh %540 : vector<8x128xf32>
    %542 = arith.mulf %537, %541 : vector<8x128xf32>
    %c0_112 = arith.constant 0 : index
    %c0_113 = arith.constant 0 : index
    %543 = vector.load %arg7[%c0_112, %c0_113] : memref<128x16xf32, #tpu.memory_space<vmem>>, vector<128x16xf32>
    %cst_114 = arith.constant dense<0.000000e+00> : vector<8x16xf32>
    %544 = tpu.matmul %542, %543, %cst_114 {dimension_numbers = #tpu.dot_dimension_numbers<[1], [0], [0], [1], [0, 0, 1, 1], [], []>} : vector<8x128xf32>, vector<128x16xf32>, vector<8x16xf32> -> vector<8x16xf32>
    %c0_115 = arith.constant 0 : index
    %c0_116 = arith.constant 0 : index
    %545 = vector.load %arg8[%c0_115, %c0_116] : memref<1x16xf32, #tpu.memory_space<vmem>>, vector<1x16xf32>
    %546 = vector.broadcast %545 : vector<1x16xf32> to vector<8x16xf32>
    %547 = arith.addf %544, %546 : vector<8x16xf32>
    %c0_117 = arith.constant 0 : index
    %c0_118 = arith.constant 0 : index
    %548 = vector.load %arg9[%c0_117, %c0_118] : memref<16x2xf32, #tpu.memory_space<vmem>>, vector<16x2xf32>
    %cst_119 = arith.constant dense<0.000000e+00> : vector<8x2xf32>
    %549 = tpu.matmul %547, %548, %cst_119 {dimension_numbers = #tpu.dot_dimension_numbers<[1], [0], [0], [1], [0, 0, 1, 1], [], []>} : vector<8x16xf32>, vector<16x2xf32>, vector<8x2xf32> -> vector<8x2xf32>
    %c0_120 = arith.constant 0 : index
    %c0_121 = arith.constant 0 : index
    %550 = vector.load %arg10[%c0_120, %c0_121] : memref<1x2xf32, #tpu.memory_space<vmem>>, vector<1x2xf32>
    %551 = vector.broadcast %550 : vector<1x2xf32> to vector<8x2xf32>
    %552 = arith.addf %549, %551 : vector<8x2xf32>
    %cst_122 = arith.constant dense<0xFF800000> : vector<8xf32>
    %553 = vector.multi_reduction <maximumf>, %552, %cst_122 [1] : vector<8x2xf32> to vector<8xf32>
    %554 = vector.shape_cast %553 : vector<8xf32> to vector<8x1xf32>
    %555 = vector.broadcast %554 : vector<8x1xf32> to vector<8x2xf32>
    %556 = arith.subf %552, %555 : vector<8x2xf32>
    %557 = math.exp %556 : vector<8x2xf32>
    %cst_123 = arith.constant dense<0.000000e+00> : vector<8xf32>
    %558 = vector.multi_reduction <add>, %557, %cst_123 [1] : vector<8x2xf32> to vector<8xf32>
    %559 = vector.shape_cast %558 : vector<8xf32> to vector<8x1xf32>
    %560 = vector.broadcast %559 : vector<8x1xf32> to vector<8x2xf32>
    %561 = arith.divf %557, %560 : vector<8x2xf32>
    %c0_124 = arith.constant 0 : index
    %c0_125 = arith.constant 0 : index
    %562 = vector.load %arg11[%c0_124, %c0_125] : memref<8x2xf32, #tpu.memory_space<vmem>>, vector<8x2xf32>
    tpu.vector_store %arg11[%c0_124, %c0_125], %561 {strides = array<i32>} : memref<8x2xf32, #tpu.memory_space<vmem>>, vector<8x2xf32>,
    %c0_126 = arith.constant 0 : index
    %c0_127 = arith.constant 0 : index
    %563 = vector.load %arg12[%c0_126, %c0_127] : memref<8x16xf32, #tpu.memory_space<vmem>>, vector<8x16xf32>
    tpu.vector_store %arg12[%c0_126, %c0_127], %547 {strides = array<i32>} : memref<8x16xf32, #tpu.memory_space<vmem>>, vector<8x16xf32>,
    return
  }
}

</mosaic_0001>

<bundles_post_ra>
// kernel: lstm_forward.1
= control target key start
LH: loop header
LB: loop body
LE: loop exit
PB: predicated region body
PF: predicated region fallthrough
CT: control target
= control target key end

     0   :  { %v5577_v1 = vmov 0   ;;  %vm125_vm0 = vcmask 130048   ;;  %vm3733_vm1 = vmmov 0   ;;  %vm2981_vm2 = vcmask 15360   ;;  %s5560_s1 = inlined_call_operand.vmem [shape: bf16[16,512], index: 1, kind: input, shape index: {}]   ;;  %s5561_s3 = inlined_call_operand.vmem [shape: bf16[128,512], index: 3, kind: input, shape index: {}]   ;;  %s5562_s0 = inlined_call_operand.vmem [shape: f32[64,16], index: 0, kind: input, shape index: {}]   ;;  %s5563_s2 = inlined_call_operand.vmem [shape: f32[1,512], index: 2, kind: input, shape index: {}]   ;;  %s5564_s4 = inlined_call_operand.vmem [shape: bf16[128,512], index: 4, kind: input, shape index: {}]   ;;  %s5565_s6 = inlined_call_operand.vmem [shape: bf16[128,512], index: 6, kind: input, shape index: {}]   ;;  %s5566_s5 = inlined_call_operand.vmem [shape: f32[1,512], index: 5, kind: input, shape index: {}]   ;;  %s5567_s7 = inlined_call_operand.vmem [shape: f32[128,16], index: 7, kind: input, shape index: {}]   ;;  %s5568_s9 = inlined_call_operand.vmem [shape: f32[16,2], index: 9, kind: input, shape index: {}]   ;;  %s5569_s8 = inlined_call_operand.vmem [shape: f32[1,16], index: 8, kind: input, shape index: {}]   ;;  %s5570_s12 = inlined_call_operand.vmem [shape: f32[8,16], index: 12, kind: output, shape index: {1}]   ;;  %s5571_s10 = inlined_call_operand.vmem [shape: f32[1,2], index: 10, kind: input, shape index: {}]   ;;  %s5572_s11 = inlined_call_operand.vmem [shape: f32[8,2], index: 11, kind: output, shape index: {0}]  }
   0x1   :  { %v3255_v0 = vld [vmem:[%s5560_s1 + $0x4] ss:$16 sps:$4 sm:$0xff]   ;;  %170 = vmatprep.mubr.bf16.mxu0 %v5577_v1  ;;  %243 = vmatprep.mubr.bf16.mxu1 %v5577_v1  ;;  %v3257_v2 = vld [vmem:[%s5560_s1] ss:$16 sps:$4 sm:$0xff]   ;;  %v3258_v3 = vld [vmem:[%s5560_s1 + $0xc] ss:$16 sps:$4 sm:$0xff]  }
   0x2   :  { %138 = vmatprep.subr.bf16.mxu0 %v3255_v0  ;;  %v3260_v4 = vld [vmem:[%s5560_s1 + $0x8] ss:$16 sps:$4 sm:$0xff]   ;;  %v3817_v5 = vld [vmem:[%s5561_s3 + $0x4] ss:$16 sps:$4 sm:$0xff]   ;;  %211 = vmatprep.subr.bf16.mxu1 %v3258_v3  ;;  %v3838_v16 = vld [vmem:[%s5561_s3 + $0xc] ss:$16 sps:$4 sm:$0xff]  }
   0x3   :  { %139 = vmatpush1.bf16.msra.mxu0 %v3257_v2  ;;  %v41_v6 = vld [vmem:[%s5562_s0] sm:$0xff]  ;;  %v42_v7 = vld [vmem:[%s5562_s0 + $0x8] sm:$0xff]  ;;  %v43_v8 = vld [vmem:[%s5562_s0 + $0x10] sm:$0xff]  ;;  %212 = vmatpush1.bf16.msra.mxu1 %v3260_v4 }
   0x4   :  { %v44_v9 = vld [vmem:[%s5562_s0 + $0x18] sm:$0xff]  ;;  %v49_v10 = vmul.f32 %v41_v6, %v41_v6  ;;  %476 = vmatprep.subr.bf16.mxu0 %v3817_v5  ;;  %v51_v11 = vmul.f32 %v42_v7, %v42_v7  ;;  %v53_v12 = vmul.f32 %v43_v8, %v43_v8  ;;  %v45_v13 = vld [vmem:[%s5562_s0 + $0x20] sm:$0xff]  ;;  %v46_v17 = vld [vmem:[%s5562_s0 + $0x28] sm:$0xff]  ;;  %517 = vmatprep.subr.bf16.mxu1 %v3838_v16 }
   0x5   :  { %v55_v15 = vmul.f32 %v44_v9, %v44_v9  ;;  %v57_v19 = vmul.f32 %v45_v13, %v45_v13  ;;  %v3847_v20 = vld [vmem:[%s5562_s0 + $0x30] sm:$0xff]  ;;  %v59_v22 = vmul.f32 %v46_v17, %v46_v17  ;;  %v3852_v23 = vld [vmem:[%s5562_s0 + $0x38] sm:$0xff] }
   0x6   :  { %v52_v14 = vadd.f32 %v51_v11, %v49_v10  ;;  %v61_v25 = vmul.f32 %v3847_v20, %v3847_v20  ;;  %v63_v27 = vmul.f32 %v3852_v23, %v3852_v23  ;;  %v3861_v34 = vld [vmem:[%s5561_s3] ss:$16 sps:$4 sm:$0xff]   ;;  %v3866_v35 = vld [vmem:[%s5561_s3 + $0x8] ss:$16 sps:$4 sm:$0xff]   ;;  %v3871_v37 = vld [vmem:[%s5561_s3 + $0x24] ss:$16 sps:$4 sm:$0xff]  }
   0x7   :  { %v3876_v38 = vld [vmem:[%s5561_s3 + $0x2c] ss:$16 sps:$4 sm:$0xff]   ;;  %v3885_v41 = vld [vmem:[%s5561_s3 + $0x20] ss:$16 sps:$4 sm:$0xff]   ;;  %v3890_v42 = vld [vmem:[%s5561_s3 + $0x28] ss:$16 sps:$4 sm:$0xff]  }
   0x8   :  { %v54_v18 = vadd.f32 %v53_v12, %v52_v14  ;;  %v3897_v43 = vld [vmem:[%s5561_s3 + $0x44] ss:$16 sps:$4 sm:$0xff]   ;;  %v3902_v44 = vld [vmem:[%s5561_s3 + $0x4c] ss:$16 sps:$4 sm:$0xff]   ;;  %v3911_v46 = vld [vmem:[%s5561_s3 + $0x40] ss:$16 sps:$4 sm:$0xff]   ;;  %v85_v12 = vlaneseq }
   0x9   :  { %v3916_v47 = vld [vmem:[%s5561_s3 + $0x48] ss:$16 sps:$4 sm:$0xff]   ;;  %v3923_v48 = vld [vmem:[%s5561_s3 + $0x64] ss:$16 sps:$4 sm:$0xff]   ;;  %v3928_v49 = vld [vmem:[%s5561_s3 + $0x6c] ss:$16 sps:$4 sm:$0xff]  }
   0xa   :  { %v56_v21 = vadd.f32 %v55_v15, %v54_v18  ;;  %v3937_v52 = vld [vmem:[%s5561_s3 + $0x60] ss:$16 sps:$4 sm:$0xff]   ;;  %v3942_v53 = vld [vmem:[%s5561_s3 + $0x68] ss:$16 sps:$4 sm:$0xff]   ;;  %v3949_v54 = vld [vmem:[%s5561_s3 + $0x84] ss:$16 sps:$4 sm:$0xff]  }
   0xb   :  { %v3954_v55 = vld [vmem:[%s5561_s3 + $0x8c] ss:$16 sps:$4 sm:$0xff]   ;;  %v3963_v57 = vld [vmem:[%s5561_s3 + $0x80] ss:$16 sps:$4 sm:$0xff]   ;;  %v3968_v58 = vld [vmem:[%s5561_s3 + $0x88] ss:$16 sps:$4 sm:$0xff]  }
   0xc   :  { %v58_v24 = vadd.f32 %v57_v19, %v56_v21  ;;  %v3975_v59 = vld [vmem:[%s5561_s3 + $0xa4] ss:$16 sps:$4 sm:$0xff]   ;;  %v3980_v60 = vld [vmem:[%s5561_s3 + $0xac] ss:$16 sps:$4 sm:$0xff]   ;;  %v3991_v63 = vld [vmem:[%s5561_s3 + $0xa0] ss:$16 sps:$4 sm:$0xff]  }
   0xd   :  { %v3996_v0 = vld [vmem:[%s5561_s3 + $0xa8] ss:$16 sps:$4 sm:$0xff]   ;;  %v4003_v2 = vld [vmem:[%s5561_s3 + $0xc4] ss:$16 sps:$4 sm:$0xff]   ;;  %v4008_v3 = vld [vmem:[%s5561_s3 + $0xcc] ss:$16 sps:$4 sm:$0xff]  }
   0xe   :  { %v60_v26 = vadd.f32 %v59_v22, %v58_v24  ;;  %v4043_v10 = vld [vmem:[%s5561_s3 + $0xe0] ss:$16 sps:$4 sm:$0xff]   ;;  %v4048_v11 = vld [vmem:[%s5561_s3 + $0xe8] ss:$16 sps:$4 sm:$0xff]  }
   0xf   :  { %v83_v18 = vld [vmem:[%s5563_s2] sm:$0xf] }
  0x10   :  { %v62_v28 = vadd.f32 %v61_v25, %v60_v26 }
  0x12   :  { %v64_v29 = vadd.f32 %v63_v27, %v62_v28 }
  0x14   :  { %v65_v30 = vmax.f32 %v64_v29, 1e-24 }
  0x16   :  { %3405 = vrsqrt.f32 %v65_v30 }
  0x20   :  { %v3406_v31 = vpop.eup %3405 }
  0x21   :  { %v67_v32 = vmul.f32 %v3406_v31, %v41_v6  ;;  %v68_v33 = vmul.f32 %v3406_v31, %v42_v7  ;;  %v69_v39 = vmul.f32 %v3406_v31, %v43_v8  ;;  %v70_v40 = vmul.f32 %v3406_v31, %v44_v9  ;;  %v4017_v6 = vld [vmem:[%s5561_s3 + $0xc0] ss:$16 sps:$4 sm:$0xff]   ;;  %v4022_v7 = vld [vmem:[%s5561_s3 + $0xc8] ss:$16 sps:$4 sm:$0xff]   ;;  %v4029_v8 = vld [vmem:[%s5561_s3 + $0xe4] ss:$16 sps:$4 sm:$0xff]  }
  0x22   :  { %v71_v50 = vmul.f32 %v3406_v31, %v45_v13  ;;  %v72_v51 = vmul.f32 %v3406_v31, %v46_v17  ;;  %v73_v61 = vmul.f32 %v3406_v31, %v3847_v20  ;;  %v74_v62 = vmul.f32 %v3406_v31, %v3852_v23  ;;  %v4034_v9 = vld [vmem:[%s5561_s3 + $0xec] ss:$16 sps:$4 sm:$0xff]  }
  0x23   :  { %v75_v36 = vpack.c.bf16 %v68_v33, %v67_v32  ;;  %v76_v45 = vpack.c.bf16 %v70_v40, %v69_v39  ;;  %v4094_v13 = vshrl.u32 %v85_v12, 7 }
  0x24   :  { %v77_v56 = vpack.c.bf16 %v72_v51, %v71_v50  ;;  %v78_v4 = vpack.c.bf16 %v74_v62, %v73_v61 }
  0x25   :  { %3007 = vmatmul.mubr.msk.bf16.vlgmr.msra.gmra.mrb[0].mxu0 %vm125_vm0, %v75_v36  ;;  %3011 = vmatmul.mubr.msk.bf16.vlgmr.msra.gmra.mrb[0].mxu1 %vm125_vm0, %v75_v36  ;;  %5581 = vst [vmem:[#allocation2_spill] sm:$0xff] %v4094_v13  ;;  %v5575_v14 = vsub.s32 2, %v4094_v13  ;;  %v5573_v15 = vsub.s32 3, %v4094_v13  ;;  %v5576_v17 = vsub.s32 0, %v4094_v13  ;;  %v5574_v19 = vsub.s32 1, %v4094_v13 }
  0x26   :  { %477 = vmatpush1.bf16.msra.mxu0 %v3861_v34  ;;  %518 = vmatpush1.bf16.msra.mxu1 %v3866_v35 }
  0x27   :  { %478 = vmatprep.subr.bf16.mxu0 %v3871_v37  ;;  %519 = vmatprep.subr.bf16.mxu1 %v3876_v38  ;;  %v4105_v20 = vrot.slane %v83_v18, %v5575_v14  ;;  %v4113_v23 = vrot.slane %v83_v18, %v5573_v15  ;;  %v88_v24 = vrot.slane %v83_v18, %v5576_v17 }
  0x28   :  { %180 = vmatprep.mubr.bf16.mxu0 %v5577_v1  ;;  %253 = vmatprep.mubr.bf16.mxu1 %v5577_v1  ;;  %v92_v27 = vrot.slane %v83_v18, %v5574_v19 }
  0x2a   :  { %479 = vmatpush1.bf16.msra.mxu0 %v3885_v41  ;;  %520 = vmatpush1.bf16.msra.mxu1 %v3890_v42 }
  0x2b   :  { %480 = vmatprep.subr.bf16.mxu0 %v3897_v43  ;;  %521 = vmatprep.subr.bf16.mxu1 %v3902_v44 }
  0x2d   :  { %3008 = vmatmul.mubr.msk.bf16.gmra.mrb[4].mxu0 %vm125_vm0, %v76_v45  ;;  %3012 = vmatmul.mubr.msk.bf16.gmra.mrb[4].mxu1 %vm125_vm0, %v76_v45 }
  0x2e   :  { %481 = vmatpush1.bf16.msra.mxu0 %v3911_v46  ;;  %522 = vmatpush1.bf16.msra.mxu1 %v3916_v47 }
  0x2f   :  { %482 = vmatprep.subr.bf16.mxu0 %v3923_v48  ;;  %523 = vmatprep.subr.bf16.mxu1 %v3928_v49 }
  0x30   :  { %190 = vmatprep.mubr.bf16.mxu0 %v5577_v1  ;;  %263 = vmatprep.mubr.bf16.mxu1 %v5577_v1 }
  0x32   :  { %483 = vmatpush1.bf16.msra.mxu0 %v3937_v52  ;;  %524 = vmatpush1.bf16.msra.mxu1 %v3942_v53 }
  0x33   :  { %484 = vmatprep.subr.bf16.mxu0 %v3949_v54  ;;  %525 = vmatprep.subr.bf16.mxu1 %v3954_v55 }
  0x35   :  { %3009 = vmatmul.mubr.msk.bf16.gmra.mrb[8].mxu0 %vm125_vm0, %v77_v56  ;;  %3013 = vmatmul.mubr.msk.bf16.gmra.mrb[8].mxu1 %vm125_vm0, %v77_v56 }
  0x36   :  { %485 = vmatpush1.bf16.msra.mxu0 %v3963_v57  ;;  %526 = vmatpush1.bf16.msra.mxu1 %v3968_v58 }
  0x37   :  { %486 = vmatprep.subr.bf16.mxu0 %v3975_v59  ;;  %527 = vmatprep.subr.bf16.mxu1 %v3980_v60 }
  0x38   :  { %200 = vmatprep.mubr.bf16.mxu0 %v5577_v1  ;;  %273 = vmatprep.mubr.bf16.mxu1 %v5577_v1 }
  0x3a   :  { %487 = vmatpush1.bf16.msra.mxu0 %v3991_v63  ;;  %528 = vmatpush1.bf16.msra.mxu1 %v3996_v0 }
  0x3b   :  { %488 = vmatprep.subr.bf16.mxu0 %v4003_v2  ;;  %529 = vmatprep.subr.bf16.mxu1 %v4008_v3 }
  0x3d   :  { %3010 = vmatmul.mubr.msk.bf16.gmra.mrb[12].mxu0 %vm125_vm0, %v78_v4  ;;  %3014 = vmatmul.mubr.msk.bf16.gmra.mrb[12].mxu1 %vm125_vm0, %v78_v4 }
  0x3e   :  { %489 = vmatpush1.bf16.msra.mxu0 %v4017_v6  ;;  %530 = vmatpush1.bf16.msra.mxu1 %v4022_v7 }
  0x3f   :  { %490 = vmatprep.subr.bf16.mxu0 %v4029_v8  ;;  %531 = vmatprep.subr.bf16.mxu1 %v4034_v9 }
  0x40   :  { %508 = vmatprep.mubr.bf16.mxu0 %v5577_v1  ;;  %549 = vmatprep.mubr.bf16.mxu1 %v5577_v1 }
  0x42   :  { %491 = vmatpush1.bf16.msra.mxu0 %v4043_v10  ;;  %532 = vmatpush1.bf16.msra.mxu1 %v4048_v11 }
  0x43   :  { %587 = vmatprep.subr.bf16.mxu0 %v3817_v5  ;;  %628 = vmatprep.subr.bf16.mxu1 %v3838_v16 }
  0x45   :  { %509 = vmatmul.mubr.bf16.vlgmr.msra.gmra.mrb[16].mxu0 %v5577_v1  ;;  %550 = vmatmul.mubr.bf16.vlgmr.msra.gmra.mrb[16].mxu1 %v5577_v1 }
  0x46   :  { %588 = vmatpush1.bf16.msra.mxu0 %v3861_v34  ;;  %629 = vmatpush1.bf16.msra.mxu1 %v3866_v35 }
  0x47   :  { %589 = vmatprep.subr.bf16.mxu0 %v3871_v37  ;;  %630 = vmatprep.subr.bf16.mxu1 %v3876_v38 }
  0x48   :  { %619 = vmatprep.mubr.bf16.mxu0 %v5577_v1  ;;  %660 = vmatprep.mubr.bf16.mxu1 %v5577_v1 }
  0x4a   :  { %590 = vmatpush1.bf16.msra.mxu0 %v3885_v41  ;;  %631 = vmatpush1.bf16.msra.mxu1 %v3890_v42 }
  0x4b   :  { %591 = vmatprep.subr.bf16.mxu0 %v3897_v43  ;;  %632 = vmatprep.subr.bf16.mxu1 %v3902_v44 }
  0x4e   :  { %592 = vmatpush1.bf16.msra.mxu0 %v3911_v46  ;;  %633 = vmatpush1.bf16.msra.mxu1 %v3916_v47 }
  0x4f   :  { %593 = vmatprep.subr.bf16.mxu0 %v3923_v48  ;;  %634 = vmatprep.subr.bf16.mxu1 %v3928_v49 }
  0x52   :  { %594 = vmatpush1.bf16.msra.mxu0 %v3937_v52  ;;  %635 = vmatpush1.bf16.msra.mxu1 %v3942_v53 }
  0x53   :  { %595 = vmatprep.subr.bf16.mxu0 %v3949_v54  ;;  %636 = vmatprep.subr.bf16.mxu1 %v3954_v55 }
  0x56   :  { %596 = vmatpush1.bf16.msra.mxu0 %v3963_v57  ;;  %637 = vmatpush1.bf16.msra.mxu1 %v3968_v58 }
  0x57   :  { %597 = vmatprep.subr.bf16.mxu0 %v3975_v59  ;;  %638 = vmatprep.subr.bf16.mxu1 %v3980_v60 }
  0x5a   :  { %598 = vmatpush1.bf16.msra.mxu0 %v3991_v63  ;;  %639 = vmatpush1.bf16.msra.mxu1 %v3996_v0 }
  0x5b   :  { %599 = vmatprep.subr.bf16.mxu0 %v4003_v2  ;;  %640 = vmatprep.subr.bf16.mxu1 %v4008_v3 }
  0x5e   :  { %600 = vmatpush1.bf16.msra.mxu0 %v4017_v6  ;;  %641 = vmatpush1.bf16.msra.mxu1 %v4022_v7 }
  0x5f   :  { %601 = vmatprep.subr.bf16.mxu0 %v4029_v8  ;;  %642 = vmatprep.subr.bf16.mxu1 %v4034_v9 }
  0x62   :  { %602 = vmatpush1.bf16.msra.mxu0 %v4043_v10  ;;  %643 = vmatpush1.bf16.msra.mxu1 %v4048_v11 }
  0x63   :  { %698 = vmatprep.subr.bf16.mxu0 %v3817_v5  ;;  %739 = vmatprep.subr.bf16.mxu1 %v3838_v16 }
  0xf8   :  { %v4107_v21 = vpop.f32.mrb[0].mxu0  ;;  %v4109_v22 = vpop.f32.mrb[0].mxu1 }
  0xf9   :  { %v174_v25 = vpop.f32.mrb[1].mxu0  ;;  %v247_v26 = vpop.f32.mrb[1].mxu1 }
  0xfa   :  { %v176_v28 = vpop.f32.mrb[2].mxu0  ;;  %v249_v29 = vpop.f32.mrb[2].mxu1 }
  0xfb   :  { %v4119_v30 = vadd.f32 %v176_v28, %v88_v24  ;;  %v178_v31 = vpop.f32.mrb[3].mxu0  ;;  %v4122_v32 = vadd.f32 %v249_v29, %v4105_v20  ;;  %v251_v33 = vpop.f32.mrb[3].mxu1 }
  0xfc   :  { %v4124_v36 = vadd.f32 %v178_v31, %v92_v27  ;;  %v4127_v39 = vadd.f32 %v251_v33, %v4113_v23 }
 0x100   :  { %v182_v40 = vpop.f32.mrb[4].mxu0  ;;  %v255_v45 = vpop.f32.mrb[4].mxu1 }
 0x101   :  { %v4129_v50 = vadd.f32 %v182_v40, %v88_v24  ;;  %v184_v51 = vpop.f32.mrb[5].mxu0  ;;  %v4132_v56 = vadd.f32 %v255_v45, %v4105_v20  ;;  %v257_v61 = vpop.f32.mrb[5].mxu1 }
 0x102   :  { %v4134_v62 = vadd.f32 %v184_v51, %v92_v27  ;;  %v186_v4 = vpop.f32.mrb[6].mxu0  ;;  %v4137_v12 = vadd.f32 %v257_v61, %v4113_v23  ;;  %v259_v18 = vpop.f32.mrb[6].mxu1 }
 0x103   :  { %v4139_v28 = vadd.f32 %v186_v4, %v88_v24  ;;  %v188_v29 = vpop.f32.mrb[7].mxu0  ;;  %v4142_v31 = vadd.f32 %v259_v18, %v4105_v20  ;;  %v261_v33 = vpop.f32.mrb[7].mxu1 }
 0x104   :  { %5582 = vst [vmem:[#allocation3_spill] sm:$0xff] %v4137_v12  ;;  %v4144_v40 = vadd.f32 %v188_v29, %v92_v27  ;;  %v4147_v45 = vadd.f32 %v261_v33, %v4113_v23 }
 0x105   :  { %5583 = vst [vmem:[#allocation4_spill] sm:$0xff] %v4139_v28  ;;  %5584 = vst [vmem:[#allocation5_spill] sm:$0xff] %v4142_v31 }
 0x106   :  { %5585 = vst [vmem:[#allocation6_spill] sm:$0xff] %v4144_v40  ;;  %5586 = vst [vmem:[#allocation7_spill] sm:$0xff] %v4147_v45 }
 0x108   :  { %v192_v15 = vpop.f32.mrb[8].mxu0  ;;  %v265_v51 = vpop.f32.mrb[8].mxu1 }
 0x109   :  { %v4149_v19 = vadd.f32 %v192_v15, %v88_v24  ;;  %v194_v14 = vpop.f32.mrb[9].mxu0  ;;  %v4152_v61 = vadd.f32 %v265_v51, %v4105_v20  ;;  %v267_v4 = vpop.f32.mrb[9].mxu1 }
 0x10a   :  { %v4154_v17 = vadd.f32 %v194_v14, %v92_v27  ;;  %v196_v1 = vpop.f32.mrb[10].mxu0  ;;  %v4157_v18 = vadd.f32 %v267_v4, %v4113_v23  ;;  %v269_v29 = vpop.f32.mrb[10].mxu1 }
 0x10b   :  { %5587 = vst [vmem:[#allocation8_spill] sm:$0xff] %v4149_v19  ;;  %5588 = vst [vmem:[#allocation9_spill] sm:$0xff] %v4152_v61  ;;  %v4159_v13 = vadd.f32 %v196_v1, %v88_v24  ;;  %v198_v33 = vpop.f32.mrb[11].mxu0  ;;  %v4162_v45 = vadd.f32 %v269_v29, %v4105_v20  ;;  %v271_v15 = vpop.f32.mrb[11].mxu1 }
 0x10c   :  { %5589 = vst [vmem:[#allocation10_spill] sm:$0xff] %v4154_v17  ;;  %5590 = vst [vmem:[#allocation11_spill] sm:$0xff] %v4157_v18  ;;  %v4164_v19 = vadd.f32 %v198_v33, %v92_v27  ;;  %v4167_v51 = vadd.f32 %v271_v15, %v4113_v23 }
 0x10d   :  { %5591 = vst [vmem:[#allocation12_spill] sm:$0xff] %v4159_v13  ;;  %5592 = vst [vmem:[#allocation13_spill] sm:$0xff] %v4162_v45 }
 0x10e   :  { %5593 = vst [vmem:[#allocation14_spill] sm:$0xff] %v4164_v19  ;;  %5594 = vst [vmem:[#allocation15_spill] sm:$0xff] %v4167_v51 }
 0x110   :  { %v202_v61 = vpop.f32.mrb[12].mxu0  ;;  %v275_v14 = vpop.f32.mrb[12].mxu1 }
 0x111   :  { %v4169_v17 = vadd.f32 %v202_v61, %v88_v24  ;;  %v204_v40 = vpop.f32.mrb[13].mxu0  ;;  %v4172_v4 = vadd.f32 %v275_v14, %v4105_v20  ;;  %v277_v1 = vpop.f32.mrb[13].mxu1 }
 0x112   :  { %v4174_v13 = vadd.f32 %v204_v40, %v92_v27  ;;  %v206_v18 = vpop.f32.mrb[14].mxu0  ;;  %v4177_v29 = vadd.f32 %v277_v1, %v4113_v23  ;;  %v279_v33 = vpop.f32.mrb[14].mxu1  ;;  %v173_v40 = vadd.f32 %v4107_v21, %v88_v24  ;;  %v175_v1 = vadd.f32 %v174_v25, %v92_v27 }
 0x113   :  { %5595 = vst [vmem:[#allocation16_spill] sm:$0xff] %v4169_v17  ;;  %5596 = vst [vmem:[#allocation17_spill] sm:$0xff] %v4172_v4  ;;  %v4179_v19 = vadd.f32 %v206_v18, %v88_v24  ;;  %v208_v15 = vpop.f32.mrb[15].mxu0  ;;  %v4182_v51 = vadd.f32 %v279_v33, %v4105_v20  ;;  %v281_v61 = vpop.f32.mrb[15].mxu1 }
 0x114   :  { %5597 = vst [vmem:[#allocation18_spill] sm:$0xff] %v4174_v13  ;;  %5598 = vst [vmem:[#allocation19_spill] sm:$0xff] %v4177_v29  ;;  %v4184_v17 = vadd.f32 %v208_v15, %v92_v27  ;;  %v4187_v14 = vadd.f32 %v281_v61, %v4113_v23  ;;  %v246_v13 = vadd.f32 %v4109_v22, %v4105_v20 }
 0x115   :  { %5599 = vst [vmem:[#allocation20_spill] sm:$0xff] %v4179_v19  ;;  %5600 = vst [vmem:[#allocation21_spill] sm:$0xff] %v4182_v51  ;;  %v248_v29 = vadd.f32 %v247_v26, %v4113_v23 }
 0x116   :  { %5601 = vst [vmem:[#allocation22_spill] sm:$0xff] %v4184_v17  ;;  %5602 = vst [vmem:[#allocation23_spill] sm:$0xff] %v4187_v14 }
 0x118   :  { %v510_v18 = vpop.f32.mrb[16].mxu0  ;;  %v551_v19 = vpop.f32.mrb[16].mxu1 }
 0x119   :  { %v558_v4 = vadd.f32 %v510_v18, %v173_v40  ;;  %v560_v45 = vadd.f32 %v551_v19, %v246_v13  ;;  %v512_v33 = vpop.f32.mrb[17].mxu0  ;;  %v553_v51 = vpop.f32.mrb[17].mxu1 }
 0x11a   :  { %v559_v31 = vadd.f32 %v512_v33, %v175_v1  ;;  %v561_v15 = vadd.f32 %v553_v51, %v248_v29  ;;  %v514_v17 = vpop.f32.mrb[18].mxu0  ;;  %v555_v28 = vpop.f32.mrb[18].mxu1 }
 0x11b   :  { %v3047_v61 = vmul.f32 -1.442695, %v558_v4  ;;  %v515_v14 = vpop.f32.mrb[19].mxu0  ;;  %v556_v12 = vpop.f32.mrb[19].mxu1 }
 0x11c   :  { %v3048_v21 = vmul.f32 -1.442695, %v559_v31  ;;  %v3049_v20 = vmul.f32 -1.442695, %v561_v15  ;;  %v5603_v14 = vmov 0  }
 0x11d   :  { %3407 = vpow2.f32 %v3047_v61 }
 0x11e   :  { %3409 = vpow2.f32 %v3048_v21 }
 0x11f   :  { %3411 = vpow2.f32 %v3049_v20 }
 0x120   :  { %3413 = vtanh.f32 %v560_v45 }
 0x127   :  { %v3408_v22 = vpop.eup %3407 }
 0x128   :  { %v3410_v24 = vpop.eup %3409  ;;  %v565_v23 = vadd.f32 1.0, %v3408_v22 }
 0x129   :  { %v571_v25 = vadd.f32 1.0, %v3410_v24  ;;  %v3412_v13 = vpop.eup %3411 }
 0x12a   :  { %3415 = vrcp.f32 %v565_v23  ;;  %v3414_v19 = vpop.eup %3413  ;;  %v578_v28 = vadd.f32 1.0, %v3412_v13 }
 0x12b   :  { %3417 = vrcp.f32 %v571_v25 }
 0x12c   :  { %3419 = vrcp.f32 %v578_v28 }
 0x134   :  { %v3416_v26 = vpop.eup %3415 }
 0x135   :  { %v3418_v17 = vpop.eup %3417  ;;  %v582_v27 = vmul.f32 %v3416_v26, %v3414_v19 }
 0x136   :  { %v581_v51 = vmul.f32 0.0, %v3418_v17  ;;  %v3420_v31 = vpop.eup %3419 }
 0x138   :  { %v4193_v12 = vadd.f32 %v582_v27, %v581_v51 }
 0x13a   :  { %3421 = vtanh.f32 %v4193_v12 }
 0x144   :  { %v3422_v4 = vpop.eup %3421 }
 0x145   :  { %v4196_v29 = vmul.f32 %v3422_v4, %v3420_v31 }
 0x147   :  { %v586_v45 = vpack.c.bf16 %v4196_v29, %v4196_v29 }
 0x149   :  { %620 = vmatmul.mubr.bf16.vlgmr.msra.gmra.mrb[20].mxu0 %v586_v45  ;;  %661 = vmatmul.mubr.bf16.vlgmr.msra.gmra.mrb[20].mxu1 %v586_v45 }
 0x14a   :  { %699 = vmatpush1.bf16.msra.mxu0 %v3861_v34  ;;  %740 = vmatpush1.bf16.msra.mxu1 %v3866_v35 }
 0x14b   :  { %700 = vmatprep.subr.bf16.mxu0 %v3871_v37  ;;  %741 = vmatprep.subr.bf16.mxu1 %v3876_v38 }
 0x14c   :  { %730 = vmatprep.mubr.bf16.mxu0 %v5603_v14  ;;  %771 = vmatprep.mubr.bf16.mxu1 %v5603_v14 }
 0x14e   :  { %701 = vmatpush1.bf16.msra.mxu0 %v3885_v41  ;;  %742 = vmatpush1.bf16.msra.mxu1 %v3890_v42 }
 0x14f   :  { %702 = vmatprep.subr.bf16.mxu0 %v3897_v43  ;;  %743 = vmatprep.subr.bf16.mxu1 %v3902_v44 }
 0x152   :  { %703 = vmatpush1.bf16.msra.mxu0 %v3911_v46  ;;  %744 = vmatpush1.bf16.msra.mxu1 %v3916_v47 }
 0x153   :  { %704 = vmatprep.subr.bf16.mxu0 %v3923_v48  ;;  %745 = vmatprep.subr.bf16.mxu1 %v3928_v49 }
 0x156   :  { %705 = vmatpush1.bf16.msra.mxu0 %v3937_v52  ;;  %746 = vmatpush1.bf16.msra.mxu1 %v3942_v53 }
 0x157   :  { %706 = vmatprep.subr.bf16.mxu0 %v3949_v54  ;;  %747 = vmatprep.subr.bf16.mxu1 %v3954_v55 }
 0x15a   :  { %707 = vmatpush1.bf16.msra.mxu0 %v3963_v57  ;;  %748 = vmatpush1.bf16.msra.mxu1 %v3968_v58 }
 0x15b   :  { %708 = vmatprep.subr.bf16.mxu0 %v3975_v59  ;;  %749 = vmatprep.subr.bf16.mxu1 %v3980_v60 }
 0x15e   :  { %709 = vmatpush1.bf16.msra.mxu0 %v3991_v63  ;;  %750 = vmatpush1.bf16.msra.mxu1 %v3996_v0 }
 0x15f   :  { %710 = vmatprep.subr.bf16.mxu0 %v4003_v2  ;;  %751 = vmatprep.subr.bf16.mxu1 %v4008_v3 }
 0x162   :  { %711 = vmatpush1.bf16.msra.mxu0 %v4017_v6  ;;  %752 = vmatpush1.bf16.msra.mxu1 %v4022_v7 }
 0x163   :  { %712 = vmatprep.subr.bf16.mxu0 %v4029_v8  ;;  %753 = vmatprep.subr.bf16.mxu1 %v4034_v9 }
 0x166   :  { %713 = vmatpush1.bf16.msra.mxu0 %v4043_v10  ;;  %754 = vmatpush1.bf16.msra.mxu1 %v4048_v11 }
 0x167   :  { %809 = vmatprep.subr.bf16.mxu0 %v3817_v5  ;;  %850 = vmatprep.subr.bf16.mxu1 %v3838_v16 }
 0x21c   :  { %v621_v40 = vpop.f32.mrb[20].mxu0  ;;  %v662_v1 = vpop.f32.mrb[20].mxu1 }
 0x21d   :  { %v669_v18 = vadd.f32 %v621_v40, %v4119_v30  ;;  %v671_v33 = vadd.f32 %v662_v1, %v4122_v32  ;;  %v623_v15 = vpop.f32.mrb[21].mxu0  ;;  %v664_v61 = vpop.f32.mrb[21].mxu1 }
 0x21e   :  { %v670_v21 = vadd.f32 %v623_v15, %v4124_v36  ;;  %v672_v20 = vadd.f32 %v664_v61, %v4127_v39  ;;  %v625_v22 = vpop.f32.mrb[22].mxu0  ;;  %v666_v24 = vpop.f32.mrb[22].mxu1 }
 0x21f   :  { %v3050_v23 = vmul.f32 -1.442695, %v669_v18  ;;  %v626_v25 = vpop.f32.mrb[23].mxu0  ;;  %v667_v13 = vpop.f32.mrb[23].mxu1 }
 0x220   :  { %v3051_v19 = vmul.f32 -1.442695, %v670_v21  ;;  %v3052_v26 = vmul.f32 -1.442695, %v672_v20  ;;  %v5604_v25 = vld [vmem:[#allocation3_spill] sm:$0xff] }
 0x221   :  { %3423 = vpow2.f32 %v3050_v23 }
 0x222   :  { %3425 = vpow2.f32 %v3051_v19 }
 0x223   :  { %3427 = vpow2.f32 %v3052_v26 }
 0x224   :  { %3429 = vtanh.f32 %v671_v33 }
 0x22b   :  { %v3424_v17 = vpop.eup %3423 }
 0x22c   :  { %v3426_v27 = vpop.eup %3425  ;;  %v676_v30 = vadd.f32 1.0, %v3424_v17 }
 0x22d   :  { %v682_v32 = vadd.f32 1.0, %v3426_v27  ;;  %v3428_v36 = vpop.eup %3427 }
 0x22e   :  { %3431 = vrcp.f32 %v676_v30  ;;  %v3430_v28 = vpop.eup %3429  ;;  %v689_v4 = vadd.f32 1.0, %v3428_v36 }
 0x22f   :  { %3433 = vrcp.f32 %v682_v32 }
 0x230   :  { %3435 = vrcp.f32 %v689_v4 }
 0x238   :  { %v3432_v39 = vpop.eup %3431 }
 0x239   :  { %v3434_v51 = vpop.eup %3433  ;;  %v693_v31 = vmul.f32 %v3432_v39, %v3430_v28 }
 0x23a   :  { %v692_v45 = vmul.f32 %v3434_v51, %v4193_v12  ;;  %v3436_v1 = vpop.eup %3435 }
 0x23c   :  { %v4239_v40 = vadd.f32 %v693_v31, %v692_v45 }
 0x23e   :  { %3437 = vtanh.f32 %v4239_v40 }
 0x248   :  { %v3438_v18 = vpop.eup %3437 }
 0x249   :  { %v4242_v15 = vmul.f32 %v3438_v18, %v3436_v1 }
 0x24b   :  { %v697_v33 = vpack.c.bf16 %v4242_v15, %v4242_v15 }
 0x24d   :  { %731 = vmatmul.mubr.bf16.vlgmr.msra.gmra.mrb[24].mxu0 %v697_v33  ;;  %772 = vmatmul.mubr.bf16.vlgmr.msra.gmra.mrb[24].mxu1 %v697_v33 }
 0x24e   :  { %810 = vmatpush1.bf16.msra.mxu0 %v3861_v34  ;;  %851 = vmatpush1.bf16.msra.mxu1 %v3866_v35 }
 0x24f   :  { %811 = vmatprep.subr.bf16.mxu0 %v3871_v37  ;;  %852 = vmatprep.subr.bf16.mxu1 %v3876_v38 }
 0x250   :  { %841 = vmatprep.mubr.bf16.mxu0 %v5603_v14  ;;  %882 = vmatprep.mubr.bf16.mxu1 %v5603_v14 }
 0x252   :  { %812 = vmatpush1.bf16.msra.mxu0 %v3885_v41  ;;  %853 = vmatpush1.bf16.msra.mxu1 %v3890_v42 }
 0x253   :  { %813 = vmatprep.subr.bf16.mxu0 %v3897_v43  ;;  %854 = vmatprep.subr.bf16.mxu1 %v3902_v44 }
 0x256   :  { %814 = vmatpush1.bf16.msra.mxu0 %v3911_v46  ;;  %855 = vmatpush1.bf16.msra.mxu1 %v3916_v47 }
 0x257   :  { %815 = vmatprep.subr.bf16.mxu0 %v3923_v48  ;;  %856 = vmatprep.subr.bf16.mxu1 %v3928_v49 }
 0x25a   :  { %816 = vmatpush1.bf16.msra.mxu0 %v3937_v52  ;;  %857 = vmatpush1.bf16.msra.mxu1 %v3942_v53 }
 0x25b   :  { %817 = vmatprep.subr.bf16.mxu0 %v3949_v54  ;;  %858 = vmatprep.subr.bf16.mxu1 %v3954_v55 }
 0x25e   :  { %818 = vmatpush1.bf16.msra.mxu0 %v3963_v57  ;;  %859 = vmatpush1.bf16.msra.mxu1 %v3968_v58 }
 0x25f   :  { %819 = vmatprep.subr.bf16.mxu0 %v3975_v59  ;;  %860 = vmatprep.subr.bf16.mxu1 %v3980_v60 }
 0x262   :  { %820 = vmatpush1.bf16.msra.mxu0 %v3991_v63  ;;  %861 = vmatpush1.bf16.msra.mxu1 %v3996_v0 }
 0x263   :  { %821 = vmatprep.subr.bf16.mxu0 %v4003_v2  ;;  %862 = vmatprep.subr.bf16.mxu1 %v4008_v3 }
 0x266   :  { %822 = vmatpush1.bf16.msra.mxu0 %v4017_v6  ;;  %863 = vmatpush1.bf16.msra.mxu1 %v4022_v7 }
 0x267   :  { %823 = vmatprep.subr.bf16.mxu0 %v4029_v8  ;;  %864 = vmatprep.subr.bf16.mxu1 %v4034_v9 }
 0x26a   :  { %824 = vmatpush1.bf16.msra.mxu0 %v4043_v10  ;;  %865 = vmatpush1.bf16.msra.mxu1 %v4048_v11 }
 0x26b   :  { %920 = vmatprep.subr.bf16.mxu0 %v3817_v5  ;;  %961 = vmatprep.subr.bf16.mxu1 %v3838_v16 }
 0x320   :  { %v732_v12 = vpop.f32.mrb[24].mxu0  ;;  %v773_v61 = vpop.f32.mrb[24].mxu1 }
 0x321   :  { %v780_v21 = vadd.f32 %v732_v12, %v4129_v50  ;;  %v782_v20 = vadd.f32 %v773_v61, %v4132_v56  ;;  %v734_v22 = vpop.f32.mrb[25].mxu0  ;;  %v775_v24 = vpop.f32.mrb[25].mxu1 }
 0x322   :  { %v781_v23 = vadd.f32 %v734_v22, %v4134_v62  ;;  %v783_v13 = vadd.f32 %v775_v24, %v5604_v25  ;;  %v736_v19 = vpop.f32.mrb[26].mxu0  ;;  %v777_v26 = vpop.f32.mrb[26].mxu1  ;;  %v5605_v24 = vld [vmem:[#allocation4_spill] sm:$0xff]  ;;  %v5606_v25 = vld [vmem:[#allocation5_spill] sm:$0xff] }
 0x323   :  { %v3053_v17 = vmul.f32 -1.442695, %v780_v21  ;;  %v737_v27 = vpop.f32.mrb[27].mxu0  ;;  %v778_v30 = vpop.f32.mrb[27].mxu1 }
 0x324   :  { %v3054_v32 = vmul.f32 -1.442695, %v781_v23  ;;  %v3055_v36 = vmul.f32 -1.442695, %v783_v13  ;;  %v5608_v30 = vld [vmem:[#allocation7_spill] sm:$0xff] }
 0x325   :  { %3439 = vpow2.f32 %v3053_v17  ;;  %v5607_v17 = vld [vmem:[#allocation6_spill] sm:$0xff] }
 0x326   :  { %3441 = vpow2.f32 %v3054_v32 }
 0x327   :  { %3443 = vpow2.f32 %v3055_v36 }
 0x328   :  { %3445 = vtanh.f32 %v782_v20 }
 0x32f   :  { %v3440_v28 = vpop.eup %3439 }
 0x330   :  { %v3442_v39 = vpop.eup %3441  ;;  %v787_v50 = vadd.f32 1.0, %v3440_v28 }
 0x331   :  { %v793_v56 = vadd.f32 1.0, %v3442_v39  ;;  %v3444_v62 = vpop.eup %3443 }
 0x332   :  { %3447 = vrcp.f32 %v787_v50  ;;  %v3446_v51 = vpop.eup %3445  ;;  %v800_v1 = vadd.f32 1.0, %v3444_v62 }
 0x333   :  { %3449 = vrcp.f32 %v793_v56 }
 0x334   :  { %3451 = vrcp.f32 %v800_v1 }
 0x33c   :  { %v3448_v31 = vpop.eup %3447 }
 0x33d   :  { %v3450_v4 = vpop.eup %3449  ;;  %v804_v45 = vmul.f32 %v3448_v31, %v3446_v51 }
 0x33e   :  { %v803_v18 = vmul.f32 %v3450_v4, %v4239_v40  ;;  %v3452_v12 = vpop.eup %3451 }
 0x340   :  { %v4285_v33 = vadd.f32 %v804_v45, %v803_v18 }
 0x342   :  { %3453 = vtanh.f32 %v4285_v33 }
 0x34c   :  { %v3454_v61 = vpop.eup %3453 }
 0x34d   :  { %v4288_v21 = vmul.f32 %v3454_v61, %v3452_v12 }
 0x34f   :  { %v808_v20 = vpack.c.bf16 %v4288_v21, %v4288_v21 }
 0x351   :  { %842 = vmatmul.mubr.bf16.vlgmr.msra.gmra.mrb[28].mxu0 %v808_v20  ;;  %883 = vmatmul.mubr.bf16.vlgmr.msra.gmra.mrb[28].mxu1 %v808_v20 }
 0x352   :  { %921 = vmatpush1.bf16.msra.mxu0 %v3861_v34  ;;  %962 = vmatpush1.bf16.msra.mxu1 %v3866_v35 }
 0x353   :  { %922 = vmatprep.subr.bf16.mxu0 %v3871_v37  ;;  %963 = vmatprep.subr.bf16.mxu1 %v3876_v38 }
 0x354   :  { %952 = vmatprep.mubr.bf16.mxu0 %v5603_v14  ;;  %993 = vmatprep.mubr.bf16.mxu1 %v5603_v14 }
 0x356   :  { %923 = vmatpush1.bf16.msra.mxu0 %v3885_v41  ;;  %964 = vmatpush1.bf16.msra.mxu1 %v3890_v42 }
 0x357   :  { %924 = vmatprep.subr.bf16.mxu0 %v3897_v43  ;;  %965 = vmatprep.subr.bf16.mxu1 %v3902_v44 }
 0x35a   :  { %925 = vmatpush1.bf16.msra.mxu0 %v3911_v46  ;;  %966 = vmatpush1.bf16.msra.mxu1 %v3916_v47 }
 0x35b   :  { %926 = vmatprep.subr.bf16.mxu0 %v3923_v48  ;;  %967 = vmatprep.subr.bf16.mxu1 %v3928_v49 }
 0x35e   :  { %927 = vmatpush1.bf16.msra.mxu0 %v3937_v52  ;;  %968 = vmatpush1.bf16.msra.mxu1 %v3942_v53 }
 0x35f   :  { %928 = vmatprep.subr.bf16.mxu0 %v3949_v54  ;;  %969 = vmatprep.subr.bf16.mxu1 %v3954_v55 }
 0x362   :  { %929 = vmatpush1.bf16.msra.mxu0 %v3963_v57  ;;  %970 = vmatpush1.bf16.msra.mxu1 %v3968_v58 }
 0x363   :  { %930 = vmatprep.subr.bf16.mxu0 %v3975_v59  ;;  %971 = vmatprep.subr.bf16.mxu1 %v3980_v60 }
 0x366   :  { %931 = vmatpush1.bf16.msra.mxu0 %v3991_v63  ;;  %972 = vmatpush1.bf16.msra.mxu1 %v3996_v0 }
 0x367   :  { %932 = vmatprep.subr.bf16.mxu0 %v4003_v2  ;;  %973 = vmatprep.subr.bf16.mxu1 %v4008_v3 }
 0x36a   :  { %933 = vmatpush1.bf16.msra.mxu0 %v4017_v6  ;;  %974 = vmatpush1.bf16.msra.mxu1 %v4022_v7 }
 0x36b   :  { %934 = vmatprep.subr.bf16.mxu0 %v4029_v8  ;;  %975 = vmatprep.subr.bf16.mxu1 %v4034_v9 }
 0x36e   :  { %935 = vmatpush1.bf16.msra.mxu0 %v4043_v10  ;;  %976 = vmatpush1.bf16.msra.mxu1 %v4048_v11 }
 0x36f   :  { %1031 = vmatprep.subr.bf16.mxu0 %v3817_v5  ;;  %1072 = vmatprep.subr.bf16.mxu1 %v3838_v16 }
 0x424   :  { %v843_v40 = vpop.f32.mrb[28].mxu0  ;;  %v884_v22 = vpop.f32.mrb[28].mxu1 }
 0x425   :  { %v891_v23 = vadd.f32 %v843_v40, %v5605_v24  ;;  %v893_v13 = vadd.f32 %v884_v22, %v5606_v25  ;;  %v845_v19 = vpop.f32.mrb[29].mxu0  ;;  %v886_v26 = vpop.f32.mrb[29].mxu1 }
 0x426   :  { %v892_v27 = vadd.f32 %v845_v19, %v5607_v17  ;;  %v894_v32 = vadd.f32 %v886_v26, %v5608_v30  ;;  %v847_v36 = vpop.f32.mrb[30].mxu0  ;;  %v888_v28 = vpop.f32.mrb[30].mxu1 }
 0x427   :  { %v3056_v39 = vmul.f32 -1.442695, %v891_v23  ;;  %v848_v50 = vpop.f32.mrb[31].mxu0  ;;  %v889_v56 = vpop.f32.mrb[31].mxu1 }
 0x428   :  { %v3057_v5 = vmul.f32 -1.442695, %v892_v27  ;;  %v3058_v16 = vmul.f32 -1.442695, %v894_v32 }
 0x429   :  { %3455 = vpow2.f32 %v3056_v39 }
 0x42a   :  { %3457 = vpow2.f32 %v3057_v5 }
 0x42b   :  { %3459 = vpow2.f32 %v3058_v16 }
 0x42c   :  { %3461 = vtanh.f32 %v893_v13 }
 0x433   :  { %v3456_v62 = vpop.eup %3455 }
 0x434   :  { %v3458_v51 = vpop.eup %3457  ;;  %v898_v31 = vadd.f32 1.0, %v3456_v62 }
 0x435   :  { %v904_v4 = vadd.f32 1.0, %v3458_v51  ;;  %v3460_v45 = vpop.eup %3459 }
 0x436   :  { %3463 = vrcp.f32 %v898_v31  ;;  %v3462_v1 = vpop.eup %3461  ;;  %v911_v20 = vadd.f32 1.0, %v3460_v45  ;;  %v4403_v45 = vld [vmem:[%s5561_s3 + $0x8] ss:$16 sps:$4 sm:$0xff]  }
 0x437   :  { %3465 = vrcp.f32 %v904_v4  ;;  %v4397_v4 = vld [vmem:[%s5561_s3] ss:$16 sps:$4 sm:$0xff]  }
 0x438   :  { %3467 = vrcp.f32 %v911_v20  ;;  %v4435_v20 = vld [vmem:[%s5561_s3 + $0x44] ss:$16 sps:$4 sm:$0xff]  }
 0x440   :  { %v3464_v18 = vpop.eup %3463 }
 0x441   :  { %v3466_v12 = vpop.eup %3465  ;;  %v915_v61 = vmul.f32 %v3464_v18, %v3462_v1  ;;  %v4409_v1 = vld [vmem:[%s5561_s3 + $0x24] ss:$16 sps:$4 sm:$0xff]   ;;  %v4415_v18 = vld [vmem:[%s5561_s3 + $0x2c] ss:$16 sps:$4 sm:$0xff]  }
 0x442   :  { %v914_v40 = vmul.f32 %v3466_v12, %v4285_v33  ;;  %v3468_v24 = vpop.eup %3467  ;;  %v4423_v12 = vld [vmem:[%s5561_s3 + $0x20] ss:$16 sps:$4 sm:$0xff]  }
 0x444   :  { %v4331_v22 = vadd.f32 %v915_v61, %v914_v40  ;;  %v4429_v61 = vld [vmem:[%s5561_s3 + $0x28] ss:$16 sps:$4 sm:$0xff]   ;;  %v4441_v40 = vld [vmem:[%s5561_s3 + $0x4c] ss:$16 sps:$4 sm:$0xff]  }
 0x446   :  { %3469 = vtanh.f32 %v4331_v22 }
 0x450   :  { %v3470_v23 = vpop.eup %3469 }
 0x451   :  { %v4334_v25 = vmul.f32 %v3470_v23, %v3468_v24  ;;  %v4453_v24 = vld [vmem:[%s5561_s3 + $0x48] ss:$16 sps:$4 sm:$0xff]   ;;  %v4459_v23 = vld [vmem:[%s5561_s3 + $0x64] ss:$16 sps:$4 sm:$0xff]  }
 0x453   :  { %v919_v13 = vpack.c.bf16 %v4334_v25, %v4334_v25 }
 0x455   :  { %953 = vmatmul.mubr.bf16.vlgmr.msra.gmra.mrb[32].mxu0 %v919_v13  ;;  %994 = vmatmul.mubr.bf16.vlgmr.msra.gmra.mrb[32].mxu1 %v919_v13  ;;  %v4465_v13 = vld [vmem:[%s5561_s3 + $0x6c] ss:$16 sps:$4 sm:$0xff]  }
 0x456   :  { %1032 = vmatpush1.bf16.msra.mxu0 %v3861_v34  ;;  %1073 = vmatpush1.bf16.msra.mxu1 %v3866_v35  ;;  %v4373_v34 = vld [vmem:[%s5561_s3 + $0x4] ss:$16 sps:$4 sm:$0xff]   ;;  %v4379_v35 = vld [vmem:[%s5561_s3 + $0xc] ss:$16 sps:$4 sm:$0xff]  }
 0x457   :  { %1033 = vmatprep.subr.bf16.mxu0 %v3871_v37  ;;  %1074 = vmatprep.subr.bf16.mxu1 %v3876_v38 }
 0x458   :  { %1063 = vmatprep.mubr.bf16.mxu0 %v5603_v14  ;;  %1104 = vmatprep.mubr.bf16.mxu1 %v5603_v14 }
 0x45a   :  { %1034 = vmatpush1.bf16.msra.mxu0 %v3885_v41  ;;  %1075 = vmatpush1.bf16.msra.mxu1 %v3890_v42  ;;  %v5609_v41 = vld [vmem:[#allocation8_spill] sm:$0xff] }
 0x45b   :  { %1035 = vmatprep.subr.bf16.mxu0 %v3897_v43  ;;  %1076 = vmatprep.subr.bf16.mxu1 %v3902_v44  ;;  %v5610_v43 = vld [vmem:[#allocation9_spill] sm:$0xff] }
 0x45e   :  { %1036 = vmatpush1.bf16.msra.mxu0 %v3911_v46  ;;  %1077 = vmatpush1.bf16.msra.mxu1 %v3916_v47 }
 0x45f   :  { %1037 = vmatprep.subr.bf16.mxu0 %v3923_v48  ;;  %1078 = vmatprep.subr.bf16.mxu1 %v3928_v49  ;;  %v5611_v48 = vld [vmem:[#allocation10_spill] sm:$0xff] }
 0x462   :  { %1038 = vmatpush1.bf16.msra.mxu0 %v3937_v52  ;;  %1079 = vmatpush1.bf16.msra.mxu1 %v3942_v53  ;;  %v5612_v52 = vld [vmem:[#allocation11_spill] sm:$0xff] }
 0x463   :  { %1039 = vmatprep.subr.bf16.mxu0 %v3949_v54  ;;  %1080 = vmatprep.subr.bf16.mxu1 %v3954_v55 }
 0x466   :  { %1040 = vmatpush1.bf16.msra.mxu0 %v3963_v57  ;;  %1081 = vmatpush1.bf16.msra.mxu1 %v3968_v58 }
 0x467   :  { %1041 = vmatprep.subr.bf16.mxu0 %v3975_v59  ;;  %1082 = vmatprep.subr.bf16.mxu1 %v3980_v60 }
 0x46a   :  { %1042 = vmatpush1.bf16.msra.mxu0 %v3991_v63  ;;  %1083 = vmatpush1.bf16.msra.mxu1 %v3996_v0 }
 0x46b   :  { %1043 = vmatprep.subr.bf16.mxu0 %v4003_v2  ;;  %1084 = vmatprep.subr.bf16.mxu1 %v4008_v3 }
 0x46e   :  { %1044 = vmatpush1.bf16.msra.mxu0 %v4017_v6  ;;  %1085 = vmatpush1.bf16.msra.mxu1 %v4022_v7 }
 0x46f   :  { %1045 = vmatprep.subr.bf16.mxu0 %v4029_v8  ;;  %1086 = vmatprep.subr.bf16.mxu1 %v4034_v9 }
 0x472   :  { %1046 = vmatpush1.bf16.msra.mxu0 %v4043_v10  ;;  %1087 = vmatpush1.bf16.msra.mxu1 %v4048_v11 }
 0x473   :  { %1142 = vmatprep.subr.bf16.mxu0 %v4373_v34  ;;  %1183 = vmatprep.subr.bf16.mxu1 %v4379_v35 }
 0x528   :  { %v954_v37 = vpop.f32.mrb[32].mxu0  ;;  %v995_v38 = vpop.f32.mrb[32].mxu1 }
 0x529   :  { %v1002_v42 = vadd.f32 %v954_v37, %v5609_v41  ;;  %v1004_v44 = vadd.f32 %v995_v38, %v5610_v43  ;;  %v956_v46 = vpop.f32.mrb[33].mxu0  ;;  %v997_v47 = vpop.f32.mrb[33].mxu1  ;;  %v4471_v37 = vld [vmem:[%s5561_s3 + $0x60] ss:$16 sps:$4 sm:$0xff]   ;;  %v4477_v38 = vld [vmem:[%s5561_s3 + $0x68] ss:$16 sps:$4 sm:$0xff]  }
 0x52a   :  { %v1003_v49 = vadd.f32 %v956_v46, %v5611_v48  ;;  %v1005_v53 = vadd.f32 %v997_v47, %v5612_v52  ;;  %v958_v54 = vpop.f32.mrb[34].mxu0  ;;  %v999_v55 = vpop.f32.mrb[34].mxu1  ;;  %v4483_v41 = vld [vmem:[%s5561_s3 + $0x84] ss:$16 sps:$4 sm:$0xff]   ;;  %v4495_v43 = vld [vmem:[%s5561_s3 + $0x80] ss:$16 sps:$4 sm:$0xff]  }
 0x52b   :  { %v3059_v57 = vmul.f32 -1.442695, %v1002_v42  ;;  %v959_v58 = vpop.f32.mrb[35].mxu0  ;;  %v1000_v59 = vpop.f32.mrb[35].mxu1  ;;  %v4489_v42 = vld [vmem:[%s5561_s3 + $0x8c] ss:$16 sps:$4 sm:$0xff]  }
 0x52c   :  { %v3060_v60 = vmul.f32 -1.442695, %v1003_v49  ;;  %v3061_v33 = vmul.f32 -1.442695, %v1005_v53  ;;  %v4507_v46 = vld [vmem:[%s5561_s3 + $0xa4] ss:$16 sps:$4 sm:$0xff]  }
 0x52d   :  { %3471 = vpow2.f32 %v3059_v57  ;;  %v4513_v47 = vld [vmem:[%s5561_s3 + $0xac] ss:$16 sps:$4 sm:$0xff]   ;;  %v5615_v52 = vld [vmem:[#allocation14_spill] sm:$0xff] }
 0x52e   :  { %3473 = vpow2.f32 %v3060_v60  ;;  %v5614_v48 = vld [vmem:[#allocation13_spill] sm:$0xff]  ;;  %v5616_v53 = vld [vmem:[#allocation15_spill] sm:$0xff] }
 0x52f   :  { %3475 = vpow2.f32 %v3061_v33 }
 0x530   :  { %3477 = vtanh.f32 %v1004_v44  ;;  %v4501_v44 = vld [vmem:[%s5561_s3 + $0x88] ss:$16 sps:$4 sm:$0xff]  }
 0x537   :  { %v3472_v19 = vpop.eup %3471 }
 0x538   :  { %v3474_v26 = vpop.eup %3473  ;;  %v1009_v17 = vadd.f32 1.0, %v3472_v19 }
 0x539   :  { %v1015_v27 = vadd.f32 1.0, %v3474_v26  ;;  %v3476_v30 = vpop.eup %3475 }
 0x53a   :  { %3479 = vrcp.f32 %v1009_v17  ;;  %v3478_v32 = vpop.eup %3477  ;;  %v1022_v50 = vadd.f32 1.0, %v3476_v30 }
 0x53b   :  { %3481 = vrcp.f32 %v1015_v27 }
 0x53c   :  { %3483 = vrcp.f32 %v1022_v50 }
 0x544   :  { %v3480_v36 = vpop.eup %3479 }
 0x545   :  { %v3482_v28 = vpop.eup %3481  ;;  %v1026_v39 = vmul.f32 %v3480_v36, %v3478_v32 }
 0x546   :  { %v1025_v56 = vmul.f32 %v3482_v28, %v4331_v22  ;;  %v3484_v16 = vpop.eup %3483  ;;  %v4447_v22 = vld [vmem:[%s5561_s3 + $0x40] ss:$16 sps:$4 sm:$0xff]  }
 0x548   :  { %v4387_v5 = vadd.f32 %v1026_v39, %v1025_v56 }
 0x54a   :  { %3485 = vtanh.f32 %v4387_v5 }
 0x554   :  { %v3486_v62 = vpop.eup %3485 }
 0x555   :  { %v4390_v51 = vmul.f32 %v3486_v62, %v3484_v16  ;;  %v3690_v62 = vld [vmem:[%s5561_s3 + $0xa8] ss:$16 sps:$4 sm:$0xff]  }
 0x557   :  { %v1030_v31 = vpack.c.bf16 %v4390_v51, %v4390_v51 }
 0x559   :  { %1064 = vmatmul.mubr.bf16.vlgmr.msra.gmra.mrb[36].mxu0 %v1030_v31  ;;  %1105 = vmatmul.mubr.bf16.vlgmr.msra.gmra.mrb[36].mxu1 %v1030_v31  ;;  %v3691_v31 = vld [vmem:[%s5561_s3 + $0xc4] ss:$16 sps:$4 sm:$0xff]  }
 0x55a   :  { %1143 = vmatpush1.bf16.msra.mxu0 %v4397_v4  ;;  %1184 = vmatpush1.bf16.msra.mxu1 %v4403_v45 }
 0x55b   :  { %1144 = vmatprep.subr.bf16.mxu0 %v4409_v1  ;;  %1185 = vmatprep.subr.bf16.mxu1 %v4415_v18 }
 0x55c   :  { %1174 = vmatprep.mubr.bf16.mxu0 %v5603_v14  ;;  %1215 = vmatprep.mubr.bf16.mxu1 %v5603_v14 }
 0x55e   :  { %1145 = vmatpush1.bf16.msra.mxu0 %v4423_v12  ;;  %1186 = vmatpush1.bf16.msra.mxu1 %v4429_v61 }
 0x55f   :  { %1146 = vmatprep.subr.bf16.mxu0 %v4435_v20  ;;  %1187 = vmatprep.subr.bf16.mxu1 %v4441_v40 }
 0x562   :  { %1147 = vmatpush1.bf16.msra.mxu0 %v4447_v22  ;;  %1188 = vmatpush1.bf16.msra.mxu1 %v4453_v24 }
 0x563   :  { %1148 = vmatprep.subr.bf16.mxu0 %v4459_v23  ;;  %1189 = vmatprep.subr.bf16.mxu1 %v4465_v13 }
 0x566   :  { %1149 = vmatpush1.bf16.msra.mxu0 %v4471_v37  ;;  %1190 = vmatpush1.bf16.msra.mxu1 %v4477_v38 }
 0x567   :  { %1150 = vmatprep.subr.bf16.mxu0 %v4483_v41  ;;  %1191 = vmatprep.subr.bf16.mxu1 %v4489_v42 }
 0x56a   :  { %1151 = vmatpush1.bf16.msra.mxu0 %v4495_v43  ;;  %1192 = vmatpush1.bf16.msra.mxu1 %v4501_v44 }
 0x56b   :  { %1152 = vmatprep.subr.bf16.mxu0 %v4507_v46  ;;  %1193 = vmatprep.subr.bf16.mxu1 %v4513_v47 }
 0x56e   :  { %1153 = vmatpush1.bf16.msra.mxu0 %v3991_v63  ;;  %1194 = vmatpush1.bf16.msra.mxu1 %v3996_v0 }
 0x56f   :  { %1154 = vmatprep.subr.bf16.mxu0 %v4003_v2  ;;  %1195 = vmatprep.subr.bf16.mxu1 %v4008_v3  ;;  %v5613_v2 = vld [vmem:[#allocation12_spill] sm:$0xff] }
 0x572   :  { %1155 = vmatpush1.bf16.msra.mxu0 %v4017_v6  ;;  %1196 = vmatpush1.bf16.msra.mxu1 %v4022_v7 }
 0x573   :  { %1156 = vmatprep.subr.bf16.mxu0 %v4029_v8  ;;  %1197 = vmatprep.subr.bf16.mxu1 %v4034_v9 }
 0x576   :  { %1157 = vmatpush1.bf16.msra.mxu0 %v4043_v10  ;;  %1198 = vmatpush1.bf16.msra.mxu1 %v4048_v11 }
 0x577   :  { %1253 = vmatprep.subr.bf16.mxu0 %v4373_v34  ;;  %1294 = vmatprep.subr.bf16.mxu1 %v4379_v35 }
 0x62c   :  { %v1065_v63 = vpop.f32.mrb[36].mxu0  ;;  %v1106_v0 = vpop.f32.mrb[36].mxu1 }
 0x62d   :  { %v1113_v3 = vadd.f32 %v1065_v63, %v5613_v2  ;;  %v1115_v6 = vadd.f32 %v1106_v0, %v5614_v48  ;;  %v1067_v49 = vpop.f32.mrb[37].mxu0  ;;  %v1108_v7 = vpop.f32.mrb[37].mxu1 }
 0x62e   :  { %v1114_v8 = vadd.f32 %v1067_v49, %v5615_v52  ;;  %v1116_v9 = vadd.f32 %v1108_v7, %v5616_v53  ;;  %v1069_v54 = vpop.f32.mrb[38].mxu0  ;;  %v1110_v10 = vpop.f32.mrb[38].mxu1 }
 0x62f   :  { %v3062_v55 = vmul.f32 -1.442695, %v1113_v3  ;;  %v1070_v11 = vpop.f32.mrb[39].mxu0  ;;  %v1111_v57 = vpop.f32.mrb[39].mxu1 }
 0x630   :  { %v3063_v34 = vmul.f32 -1.442695, %v1114_v8  ;;  %v3064_v35 = vmul.f32 -1.442695, %v1116_v9 }
 0x631   :  { %3487 = vpow2.f32 %v3062_v55 }
 0x632   :  { %3489 = vpow2.f32 %v3063_v34 }
 0x633   :  { %3491 = vpow2.f32 %v3064_v35 }
 0x634   :  { %3493 = vtanh.f32 %v1115_v6 }
 0x63b   :  { %v3488_v58 = vpop.eup %3487 }
 0x63c   :  { %v3490_v59 = vpop.eup %3489  ;;  %v1120_v60 = vadd.f32 1.0, %v3488_v58 }
 0x63d   :  { %v1126_v33 = vadd.f32 1.0, %v3490_v59  ;;  %v3492_v19 = vpop.eup %3491 }
 0x63e   :  { %3495 = vrcp.f32 %v1120_v60  ;;  %v3494_v26 = vpop.eup %3493  ;;  %v1133_v32 = vadd.f32 1.0, %v3492_v19  ;;  %v3309_v19 = vld [vmem:[%s5564_s4] ss:$16 sps:$4 sm:$0xff]  }
 0x63f   :  { %3497 = vrcp.f32 %v1126_v33 }
 0x640   :  { %3499 = vrcp.f32 %v1133_v32  ;;  %v3315_v32 = vld [vmem:[%s5564_s4 + $0x20] ss:$16 sps:$4 sm:$0xff]  }
 0x648   :  { %v3496_v17 = vpop.eup %3495 }
 0x649   :  { %v3498_v27 = vpop.eup %3497  ;;  %v1137_v30 = vmul.f32 %v3496_v17, %v3494_v26  ;;  %v3312_v26 = vld [vmem:[%s5564_s4 + $0x8] ss:$16 sps:$4 sm:$0xff]  }
 0x64a   :  { %v1136_v36 = vmul.f32 %v3498_v27, %v4387_v5  ;;  %v3500_v39 = vpop.eup %3499  ;;  %v3689_v5 = vld [vmem:[%s5561_s3 + $0xa0] ss:$16 sps:$4 sm:$0xff]   ;;  %v3317_v27 = vld [vmem:[%s5564_s4 + $0x24] ss:$16 sps:$4 sm:$0xff]  }
 0x64c   :  { %v4533_v28 = vadd.f32 %v1137_v30, %v1136_v36  ;;  %v3320_v30 = vld [vmem:[%s5564_s4 + $0x2c] ss:$16 sps:$4 sm:$0xff]   ;;  %v3318_v36 = vld [vmem:[%s5564_s4 + $0x28] ss:$16 sps:$4 sm:$0xff]  }
 0x64e   :  { %3501 = vtanh.f32 %v4533_v28 }
 0x658   :  { %v3502_v50 = vpop.eup %3501 }
 0x659   :  { %v4536_v56 = vmul.f32 %v3502_v50, %v3500_v39  ;;  %v3326_v39 = vld [vmem:[%s5564_s4 + $0x4c] ss:$16 sps:$4 sm:$0xff]   ;;  %v3321_v50 = vld [vmem:[%s5564_s4 + $0x40] ss:$16 sps:$4 sm:$0xff]  }
 0x65b   :  { %v1141_v16 = vpack.c.bf16 %v4536_v56, %v4536_v56 }
 0x65d   :  { %1175 = vmatmul.mubr.bf16.vlgmr.msra.gmra.mrb[40].mxu0 %v1141_v16  ;;  %1216 = vmatmul.mubr.bf16.vlgmr.msra.gmra.mrb[40].mxu1 %v1141_v16  ;;  %v3324_v16 = vld [vmem:[%s5564_s4 + $0x48] ss:$16 sps:$4 sm:$0xff]  }
 0x65e   :  { %1254 = vmatpush1.bf16.msra.mxu0 %v4397_v4  ;;  %1295 = vmatpush1.bf16.msra.mxu1 %v4403_v45  ;;  %v3692_v4 = vld [vmem:[%s5561_s3 + $0xcc] ss:$16 sps:$4 sm:$0xff]   ;;  %v3693_v45 = vld [vmem:[%s5561_s3 + $0xc0] ss:$16 sps:$4 sm:$0xff]  }
 0x65f   :  { %1255 = vmatprep.subr.bf16.mxu0 %v4409_v1  ;;  %1296 = vmatprep.subr.bf16.mxu1 %v4415_v18  ;;  %v3694_v1 = vld [vmem:[%s5561_s3 + $0xc8] ss:$16 sps:$4 sm:$0xff]   ;;  %v3695_v18 = vld [vmem:[%s5561_s3 + $0xe4] ss:$16 sps:$4 sm:$0xff]  }
 0x660   :  { %1285 = vmatprep.mubr.bf16.mxu0 %v5603_v14  ;;  %1326 = vmatprep.mubr.bf16.mxu1 %v5603_v14 }
 0x662   :  { %1256 = vmatpush1.bf16.msra.mxu0 %v4423_v12  ;;  %1297 = vmatpush1.bf16.msra.mxu1 %v4429_v61  ;;  %v3696_v12 = vld [vmem:[%s5561_s3 + $0xec] ss:$16 sps:$4 sm:$0xff]   ;;  %v3697_v61 = vld [vmem:[%s5561_s3 + $0xe0] ss:$16 sps:$4 sm:$0xff]  }
 0x663   :  { %1257 = vmatprep.subr.bf16.mxu0 %v4435_v20  ;;  %1298 = vmatprep.subr.bf16.mxu1 %v4441_v40  ;;  %v3698_v20 = vld [vmem:[%s5561_s3 + $0xe8] ss:$16 sps:$4 sm:$0xff]   ;;  %v3311_v40 = vld [vmem:[%s5564_s4 + $0x4] ss:$16 sps:$4 sm:$0xff]  }
 0x666   :  { %1258 = vmatpush1.bf16.msra.mxu0 %v4447_v22  ;;  %1299 = vmatpush1.bf16.msra.mxu1 %v4453_v24  ;;  %v3314_v22 = vld [vmem:[%s5564_s4 + $0xc] ss:$16 sps:$4 sm:$0xff]  }
 0x667   :  { %1259 = vmatprep.subr.bf16.mxu0 %v4459_v23  ;;  %1300 = vmatprep.subr.bf16.mxu1 %v4465_v13  ;;  %v5617_v13 = vld [vmem:[#allocation16_spill] sm:$0xff] }
 0x66a   :  { %1260 = vmatpush1.bf16.msra.mxu0 %v4471_v37  ;;  %1301 = vmatpush1.bf16.msra.mxu1 %v4477_v38  ;;  %v5618_v38 = vld [vmem:[#allocation17_spill] sm:$0xff] }
 0x66b   :  { %1261 = vmatprep.subr.bf16.mxu0 %v4483_v41  ;;  %1302 = vmatprep.subr.bf16.mxu1 %v4489_v42 }
 0x66e   :  { %1262 = vmatpush1.bf16.msra.mxu0 %v4495_v43  ;;  %1303 = vmatpush1.bf16.msra.mxu1 %v4501_v44  ;;  %v5619_v44 = vld [vmem:[#allocation18_spill] sm:$0xff] }
 0x66f   :  { %1263 = vmatprep.subr.bf16.mxu0 %v4507_v46  ;;  %1304 = vmatprep.subr.bf16.mxu1 %v4513_v47  ;;  %v5620_v47 = vld [vmem:[#allocation19_spill] sm:$0xff] }
 0x672   :  { %1264 = vmatpush1.bf16.msra.mxu0 %v3689_v5  ;;  %1305 = vmatpush1.bf16.msra.mxu1 %v3690_v62  ;;  %v3329_v5 = vld [vmem:[%s5564_s4 + $0x64] ss:$16 sps:$4 sm:$0xff]   ;;  %v3332_v62 = vld [vmem:[%s5564_s4 + $0x6c] ss:$16 sps:$4 sm:$0xff]  }
 0x673   :  { %1265 = vmatprep.subr.bf16.mxu0 %v3691_v31  ;;  %1306 = vmatprep.subr.bf16.mxu1 %v3692_v4  ;;  %v3327_v31 = vld [vmem:[%s5564_s4 + $0x60] ss:$16 sps:$4 sm:$0xff]   ;;  %v3330_v4 = vld [vmem:[%s5564_s4 + $0x68] ss:$16 sps:$4 sm:$0xff]  }
 0x676   :  { %1266 = vmatpush1.bf16.msra.mxu0 %v3693_v45  ;;  %1307 = vmatpush1.bf16.msra.mxu1 %v3694_v1  ;;  %v3335_v45 = vld [vmem:[%s5564_s4 + $0x84] ss:$16 sps:$4 sm:$0xff]   ;;  %v3338_v1 = vld [vmem:[%s5564_s4 + $0x8c] ss:$16 sps:$4 sm:$0xff]  }
 0x677   :  { %1267 = vmatprep.subr.bf16.mxu0 %v3695_v18  ;;  %1308 = vmatprep.subr.bf16.mxu1 %v3696_v12  ;;  %v3333_v18 = vld [vmem:[%s5564_s4 + $0x80] ss:$16 sps:$4 sm:$0xff]   ;;  %v3336_v12 = vld [vmem:[%s5564_s4 + $0x88] ss:$16 sps:$4 sm:$0xff]  }
 0x67a   :  { %1268 = vmatpush1.bf16.msra.mxu0 %v3697_v61  ;;  %1309 = vmatpush1.bf16.msra.mxu1 %v3698_v20  ;;  %v3341_v61 = vld [vmem:[%s5564_s4 + $0xa4] ss:$16 sps:$4 sm:$0xff]   ;;  %v3344_v20 = vld [vmem:[%s5564_s4 + $0xac] ss:$16 sps:$4 sm:$0xff]  }
 0x67b   :  { %1581 = vmatprep.subr.bf16.mxu0 %v3311_v40  ;;  %1654 = vmatprep.subr.bf16.mxu1 %v3314_v22  ;;  %v3339_v40 = vld [vmem:[%s5564_s4 + $0xa0] ss:$16 sps:$4 sm:$0xff]   ;;  %v3342_v22 = vld [vmem:[%s5564_s4 + $0xa8] ss:$16 sps:$4 sm:$0xff]  }
 0x730   :  { %v1176_v24 = vpop.f32.mrb[40].mxu0  ;;  %v1217_v23 = vpop.f32.mrb[40].mxu1 }
 0x731   :  { %v1224_v37 = vadd.f32 %v1176_v24, %v5617_v13  ;;  %v1226_v41 = vadd.f32 %v1217_v23, %v5618_v38  ;;  %v1178_v42 = vpop.f32.mrb[41].mxu0  ;;  %v1219_v43 = vpop.f32.mrb[41].mxu1  ;;  %v3347_v24 = vld [vmem:[%s5564_s4 + $0xc4] ss:$16 sps:$4 sm:$0xff]   ;;  %v3350_v23 = vld [vmem:[%s5564_s4 + $0xcc] ss:$16 sps:$4 sm:$0xff]  }
 0x732   :  { %v1225_v46 = vadd.f32 %v1178_v42, %v5619_v44  ;;  %v1227_v63 = vadd.f32 %v1219_v43, %v5620_v47  ;;  %v1180_v0 = vpop.f32.mrb[42].mxu0  ;;  %v1221_v2 = vpop.f32.mrb[42].mxu1  ;;  %v3345_v13 = vld [vmem:[%s5564_s4 + $0xc0] ss:$16 sps:$4 sm:$0xff]   ;;  %v3353_v38 = vld [vmem:[%s5564_s4 + $0xe4] ss:$16 sps:$4 sm:$0xff]   ;;  %v1363_v44 = vpack.c.bf16 %v4242_v15, %v4196_v29  ;;  %v1365_v47 = vpack.c.bf16 %v4536_v56, %v4390_v51 }
 0x733   :  { %v3065_v3 = vmul.f32 -1.442695, %v1224_v37  ;;  %v1181_v48 = vpop.f32.mrb[43].mxu0  ;;  %v1222_v6 = vpop.f32.mrb[43].mxu1  ;;  %v3348_v37 = vld [vmem:[%s5564_s4 + $0xc8] ss:$16 sps:$4 sm:$0xff]  }
 0x734   :  { %v3066_v49 = vmul.f32 -1.442695, %v1225_v46  ;;  %v3067_v7 = vmul.f32 -1.442695, %v1227_v63  ;;  %v3351_v42 = vld [vmem:[%s5564_s4 + $0xe0] ss:$16 sps:$4 sm:$0xff]   ;;  %v1364_v46 = vpack.c.bf16 %v4334_v25, %v4288_v21 }
 0x735   :  { %3503 = vpow2.f32 %v3065_v3  ;;  %v3354_v43 = vld [vmem:[%s5564_s4 + $0xe8] ss:$16 sps:$4 sm:$0xff]   ;;  %v4717_v29 = vld [vmem:[%s5565_s6 + $0x4] ss:$16 sps:$4 sm:$0xff]   ;;  %v4722_v15 = vld [vmem:[%s5565_s6] ss:$16 sps:$4 sm:$0xff]  }
 0x736   :  { %3505 = vpow2.f32 %v3066_v49  ;;  %v4728_v21 = vld [vmem:[%s5565_s6 + $0xc] ss:$16 sps:$4 sm:$0xff]   ;;  %v4733_v25 = vld [vmem:[%s5565_s6 + $0x8] ss:$16 sps:$4 sm:$0xff]   ;;  %v4740_v51 = vld [vmem:[%s5565_s6 + $0x24] ss:$16 sps:$4 sm:$0xff]  }
 0x737   :  { %3507 = vpow2.f32 %v3067_v7  ;;  %v4745_v56 = vld [vmem:[%s5565_s6 + $0x2c] ss:$16 sps:$4 sm:$0xff]   ;;  %v4751_v63 = vld [vmem:[%s5565_s6 + $0x20] ss:$16 sps:$4 sm:$0xff]   ;;  %v4756_v0 = vld [vmem:[%s5565_s6 + $0x28] ss:$16 sps:$4 sm:$0xff]  }
 0x738   :  { %3509 = vtanh.f32 %v1226_v41  ;;  %v3356_v41 = vld [vmem:[%s5564_s4 + $0xec] ss:$16 sps:$4 sm:$0xff]   ;;  %v4764_v2 = vld [vmem:[%s5565_s6 + $0x44] ss:$16 sps:$4 sm:$0xff]   ;;  %v4775_v48 = vld [vmem:[%s5565_s6 + $0x40] ss:$16 sps:$4 sm:$0xff]  }
 0x739   :  { %v4769_v3 = vld [vmem:[%s5565_s6 + $0x4c] ss:$16 sps:$4 sm:$0xff]   ;;  %v4780_v6 = vld [vmem:[%s5565_s6 + $0x48] ss:$16 sps:$4 sm:$0xff]   ;;  %v4788_v49 = vld [vmem:[%s5565_s6 + $0x64] ss:$16 sps:$4 sm:$0xff]  }
 0x73a   :  { %v4793_v7 = vld [vmem:[%s5565_s6 + $0x60] ss:$16 sps:$4 sm:$0xff]  }
 0x73f   :  { %v3504_v52 = vpop.eup %3503 }
 0x740   :  { %v3506_v8 = vpop.eup %3505  ;;  %v1231_v53 = vadd.f32 1.0, %v3504_v52  ;;  %v4798_v52 = vld [vmem:[%s5565_s6 + $0x6c] ss:$16 sps:$4 sm:$0xff]  }
 0x741   :  { %v1237_v9 = vadd.f32 1.0, %v3506_v8  ;;  %v3508_v54 = vpop.eup %3507  ;;  %v4804_v8 = vld [vmem:[%s5565_s6 + $0x68] ss:$16 sps:$4 sm:$0xff]  }
 0x742   :  { %3511 = vrcp.f32 %v1231_v53  ;;  %v3510_v10 = vpop.eup %3509  ;;  %v1244_v34 = vadd.f32 1.0, %v3508_v54  ;;  %v4812_v53 = vld [vmem:[%s5565_s6 + $0x84] ss:$16 sps:$4 sm:$0xff]   ;;  %v4823_v54 = vld [vmem:[%s5565_s6 + $0x80] ss:$16 sps:$4 sm:$0xff]  }
 0x743   :  { %3513 = vrcp.f32 %v1237_v9  ;;  %v4817_v9 = vld [vmem:[%s5565_s6 + $0x8c] ss:$16 sps:$4 sm:$0xff]  }
 0x744   :  { %3515 = vrcp.f32 %v1244_v34  ;;  %v4852_v34 = vld [vmem:[%s5565_s6 + $0xa8] ss:$16 sps:$4 sm:$0xff]  }
 0x74c   :  { %v3512_v55 = vpop.eup %3511 }
 0x74d   :  { %v3514_v11 = vpop.eup %3513  ;;  %v1248_v57 = vmul.f32 %v3512_v55, %v3510_v10  ;;  %v4828_v10 = vld [vmem:[%s5565_s6 + $0x88] ss:$16 sps:$4 sm:$0xff]   ;;  %v4836_v55 = vld [vmem:[%s5565_s6 + $0xa4] ss:$16 sps:$4 sm:$0xff]  }
 0x74e   :  { %v1247_v35 = vmul.f32 %v3514_v11, %v4533_v28  ;;  %v3516_v59 = vpop.eup %3515  ;;  %v3323_v28 = vld [vmem:[%s5564_s4 + $0x44] ss:$16 sps:$4 sm:$0xff]   ;;  %v4841_v11 = vld [vmem:[%s5565_s6 + $0xa0] ss:$16 sps:$4 sm:$0xff]  }
 0x750   :  { %v4603_v58 = vadd.f32 %v1248_v57, %v1247_v35  ;;  %v4846_v57 = vld [vmem:[%s5565_s6 + $0xac] ss:$16 sps:$4 sm:$0xff]   ;;  %v4860_v35 = vld [vmem:[%s5565_s6 + $0xc4] ss:$16 sps:$4 sm:$0xff]  }
 0x752   :  { %3517 = vtanh.f32 %v4603_v58 }
 0x75c   :  { %v3518_v60 = vpop.eup %3517 }
 0x75d   :  { %v4606_v33 = vmul.f32 %v3518_v60, %v3516_v59  ;;  %v4865_v59 = vld [vmem:[%s5565_s6 + $0xcc] ss:$16 sps:$4 sm:$0xff]   ;;  %v4871_v60 = vld [vmem:[%s5565_s6 + $0xc0] ss:$16 sps:$4 sm:$0xff]  }
 0x75f   :  { %v1252_v17 = vpack.c.bf16 %v4606_v33, %v4606_v33 }
 0x761   :  { %1286 = vmatmul.mubr.bf16.vlgmr.msra.gmra.mrb[44].mxu0 %v1252_v17  ;;  %1327 = vmatmul.mubr.bf16.vlgmr.msra.gmra.mrb[44].mxu1 %v1252_v17  ;;  %v4889_v17 = vld [vmem:[%s5565_s6 + $0xe0] ss:$16 sps:$4 sm:$0xff]  }
 0x762   :  { %1582 = vmatpush1.bf16.msra.mxu0 %v3309_v19  ;;  %1655 = vmatpush1.bf16.msra.mxu1 %v3312_v26  ;;  %v4876_v19 = vld [vmem:[%s5565_s6 + $0xc8] ss:$16 sps:$4 sm:$0xff]   ;;  %v4884_v26 = vld [vmem:[%s5565_s6 + $0xe4] ss:$16 sps:$4 sm:$0xff]  }
 0x763   :  { %1583 = vmatprep.subr.bf16.mxu0 %v3317_v27  ;;  %1656 = vmatprep.subr.bf16.mxu1 %v3320_v30  ;;  %v4894_v27 = vld [vmem:[%s5565_s6 + $0xec] ss:$16 sps:$4 sm:$0xff]   ;;  %v4900_v30 = vld [vmem:[%s5565_s6 + $0xe8] ss:$16 sps:$4 sm:$0xff]  }
 0x764   :  { %1613 = vmatprep.mubr.bf16.mxu0 %v5603_v14  ;;  %1686 = vmatprep.mubr.bf16.mxu1 %v5603_v14 }
 0x766   :  { %1584 = vmatpush1.bf16.msra.mxu0 %v3315_v32  ;;  %1657 = vmatpush1.bf16.msra.mxu1 %v3318_v36 }
 0x767   :  { %1585 = vmatprep.subr.bf16.mxu0 %v3323_v28  ;;  %1658 = vmatprep.subr.bf16.mxu1 %v3326_v39  ;;  %v5621_v28 = vld [vmem:[#allocation20_spill] sm:$0xff] }
 0x76a   :  { %1586 = vmatpush1.bf16.msra.mxu0 %v3321_v50  ;;  %1659 = vmatpush1.bf16.msra.mxu1 %v3324_v16  ;;  %v5622_v50 = vld [vmem:[#allocation21_spill] sm:$0xff] }
 0x76b   :  { %1587 = vmatprep.subr.bf16.mxu0 %v3329_v5  ;;  %1660 = vmatprep.subr.bf16.mxu1 %v3332_v62 }
 0x76e   :  { %1588 = vmatpush1.bf16.msra.mxu0 %v3327_v31  ;;  %1661 = vmatpush1.bf16.msra.mxu1 %v3330_v4  ;;  %v5623_v31 = vld [vmem:[#allocation22_spill] sm:$0xff] }
 0x76f   :  { %1589 = vmatprep.subr.bf16.mxu0 %v3335_v45  ;;  %1662 = vmatprep.subr.bf16.mxu1 %v3338_v1  ;;  %v5624_v45 = vld [vmem:[#allocation23_spill] sm:$0xff] }
 0x772   :  { %1590 = vmatpush1.bf16.msra.mxu0 %v3333_v18  ;;  %1663 = vmatpush1.bf16.msra.mxu1 %v3336_v12 }
 0x773   :  { %1591 = vmatprep.subr.bf16.mxu0 %v3341_v61  ;;  %1664 = vmatprep.subr.bf16.mxu1 %v3344_v20 }
 0x776   :  { %1592 = vmatpush1.bf16.msra.mxu0 %v3339_v40  ;;  %1665 = vmatpush1.bf16.msra.mxu1 %v3342_v22 }
 0x777   :  { %1593 = vmatprep.subr.bf16.mxu0 %v3347_v24  ;;  %1666 = vmatprep.subr.bf16.mxu1 %v3350_v23 }
 0x77a   :  { %1594 = vmatpush1.bf16.msra.mxu0 %v3345_v13  ;;  %1667 = vmatpush1.bf16.msra.mxu1 %v3348_v37 }
 0x77b   :  { %1595 = vmatprep.subr.bf16.mxu0 %v3353_v38  ;;  %1668 = vmatprep.subr.bf16.mxu1 %v3356_v41 }
 0x77e   :  { %1596 = vmatpush1.bf16.msra.mxu0 %v3351_v42  ;;  %1669 = vmatpush1.bf16.msra.mxu1 %v3354_v43 }
 0x77f   :  { %1919 = vmatprep.subr.bf16.mxu0 %v4717_v29  ;;  %1960 = vmatprep.subr.bf16.mxu1 %v4728_v21 }
 0x781   :  { %1614 = vmatmul.mubr.bf16.vlgmr.msra.gmra.mrb[48].mxu0 %v1363_v44  ;;  %1687 = vmatmul.mubr.bf16.vlgmr.msra.gmra.mrb[48].mxu1 %v1363_v44 }
 0x782   :  { %1623 = vmatprep.mubr.bf16.mxu0 %v5603_v14  ;;  %1696 = vmatprep.mubr.bf16.mxu1 %v5603_v14 }
 0x783   :  { %1920 = vmatpush1.bf16.msra.mxu0 %v4722_v15  ;;  %1961 = vmatpush1.bf16.msra.mxu1 %v4733_v25 }
 0x784   :  { %1921 = vmatprep.subr.bf16.mxu0 %v4740_v51  ;;  %1962 = vmatprep.subr.bf16.mxu1 %v4745_v56 }
 0x787   :  { %1922 = vmatpush1.bf16.msra.mxu0 %v4751_v63  ;;  %1963 = vmatpush1.bf16.msra.mxu1 %v4756_v0 }
 0x788   :  { %1923 = vmatprep.subr.bf16.mxu0 %v4764_v2  ;;  %1964 = vmatprep.subr.bf16.mxu1 %v4769_v3 }
 0x789   :  { %1624 = vmatmul.mubr.bf16.gmra.mrb[52].mxu0 %v1364_v46  ;;  %1697 = vmatmul.mubr.bf16.gmra.mrb[52].mxu1 %v1364_v46 }
 0x78a   :  { %1633 = vmatprep.mubr.bf16.mxu0 %v5603_v14  ;;  %1706 = vmatprep.mubr.bf16.mxu1 %v5603_v14 }
 0x78b   :  { %1924 = vmatpush1.bf16.msra.mxu0 %v4775_v48  ;;  %1965 = vmatpush1.bf16.msra.mxu1 %v4780_v6 }
 0x78c   :  { %1925 = vmatprep.subr.bf16.mxu0 %v4788_v49  ;;  %1966 = vmatprep.subr.bf16.mxu1 %v4798_v52 }
 0x78f   :  { %1926 = vmatpush1.bf16.msra.mxu0 %v4793_v7  ;;  %1967 = vmatpush1.bf16.msra.mxu1 %v4804_v8 }
 0x790   :  { %1927 = vmatprep.subr.bf16.mxu0 %v4812_v53  ;;  %1968 = vmatprep.subr.bf16.mxu1 %v4817_v9 }
 0x791   :  { %1634 = vmatmul.mubr.bf16.gmra.mrb[56].mxu0 %v1365_v47  ;;  %1707 = vmatmul.mubr.bf16.gmra.mrb[56].mxu1 %v1365_v47 }
 0x792   :  { %1643 = vmatprep.mubr.bf16.mxu0 %v5603_v14  ;;  %1716 = vmatprep.mubr.bf16.mxu1 %v5603_v14 }
 0x793   :  { %1928 = vmatpush1.bf16.msra.mxu0 %v4823_v54  ;;  %1969 = vmatpush1.bf16.msra.mxu1 %v4828_v10 }
 0x794   :  { %1929 = vmatprep.subr.bf16.mxu0 %v4836_v55  ;;  %1970 = vmatprep.subr.bf16.mxu1 %v4846_v57 }
 0x797   :  { %1930 = vmatpush1.bf16.msra.mxu0 %v4841_v11  ;;  %1971 = vmatpush1.bf16.msra.mxu1 %v4852_v34 }
 0x798   :  { %1931 = vmatprep.subr.bf16.mxu0 %v4860_v35  ;;  %1972 = vmatprep.subr.bf16.mxu1 %v4865_v59 }
 0x79b   :  { %1932 = vmatpush1.bf16.msra.mxu0 %v4871_v60  ;;  %1973 = vmatpush1.bf16.msra.mxu1 %v4876_v19 }
 0x79c   :  { %1933 = vmatprep.subr.bf16.mxu0 %v4884_v26  ;;  %1974 = vmatprep.subr.bf16.mxu1 %v4894_v27 }
 0x79f   :  { %1934 = vmatpush1.bf16.msra.mxu0 %v4889_v17  ;;  %1975 = vmatpush1.bf16.msra.mxu1 %v4900_v30 }
 0x7a0   :  { %2030 = vmatprep.subr.bf16.mxu0 %v4717_v29  ;;  %2071 = vmatprep.subr.bf16.mxu1 %v4728_v21 }
 0x834   :  { %v1287_v32 = vpop.f32.mrb[44].mxu0  ;;  %v1328_v36 = vpop.f32.mrb[44].mxu1 }
 0x835   :  { %v1335_v39 = vadd.f32 %v1287_v32, %v5621_v28  ;;  %v1337_v16 = vadd.f32 %v1328_v36, %v5622_v50  ;;  %v1289_v5 = vpop.f32.mrb[45].mxu0  ;;  %v1330_v62 = vpop.f32.mrb[45].mxu1 }
 0x836   :  { %v1336_v4 = vadd.f32 %v1289_v5, %v5623_v31  ;;  %v1338_v1 = vadd.f32 %v1330_v62, %v5624_v45  ;;  %v1291_v18 = vpop.f32.mrb[46].mxu0  ;;  %v1332_v12 = vpop.f32.mrb[46].mxu1 }
 0x837   :  { %v3068_v61 = vmul.f32 -1.442695, %v1335_v39  ;;  %v1292_v20 = vpop.f32.mrb[47].mxu0  ;;  %v1333_v40 = vpop.f32.mrb[47].mxu1 }
 0x838   :  { %v3069_v22 = vmul.f32 -1.442695, %v1336_v4  ;;  %v3070_v24 = vmul.f32 -1.442695, %v1338_v1 }
 0x839   :  { %3519 = vpow2.f32 %v3068_v61 }
 0x83a   :  { %3521 = vpow2.f32 %v3069_v22 }
 0x83b   :  { %3523 = vpow2.f32 %v3070_v24 }
 0x83c   :  { %3525 = vtanh.f32 %v1337_v16 }
 0x843   :  { %v3520_v23 = vpop.eup %3519 }
 0x844   :  { %v3522_v13 = vpop.eup %3521  ;;  %v1342_v37 = vadd.f32 1.0, %v3520_v23 }
 0x845   :  { %v1348_v38 = vadd.f32 1.0, %v3522_v13  ;;  %v3524_v41 = vpop.eup %3523 }
 0x846   :  { %3527 = vrcp.f32 %v1342_v37  ;;  %v3526_v42 = vpop.eup %3525  ;;  %v1355_v47 = vadd.f32 1.0, %v3524_v41 }
 0x847   :  { %3529 = vrcp.f32 %v1348_v38 }
 0x848   :  { %3531 = vrcp.f32 %v1355_v47  ;;  %v1399_v47 = vld [vmem:[%s5566_s5] sm:$0xf] }
 0x850   :  { %v3528_v43 = vpop.eup %3527 }
 0x851   :  { %v3530_v44 = vpop.eup %3529  ;;  %v1359_v46 = vmul.f32 %v3528_v43, %v3526_v42 }
 0x852   :  { %v1358_v32 = vmul.f32 %v3530_v44, %v4603_v58  ;;  %v3532_v20 = vpop.eup %3531 }
 0x854   :  { %v4913_v36 = vpop.f32.mrb[48].mxu0  ;;  %v4915_v28 = vpop.f32.mrb[48].mxu1  ;;  %v1360_v39 = vadd.f32 %v1359_v46, %v1358_v32 }
 0x855   :  { %v4917_v50 = vpop.f32.mrb[49].mxu0  ;;  %v4919_v16 = vpop.f32.mrb[49].mxu1 }
 0x856   :  { %v4921_v5 = vpop.f32.mrb[50].mxu0  ;;  %v4923_v62 = vpop.f32.mrb[50].mxu1  ;;  %3533 = vtanh.f32 %v1360_v39 }
 0x857   :  { %v4925_v31 = vpop.f32.mrb[51].mxu0  ;;  %v4927_v4 = vpop.f32.mrb[51].mxu1 }
 0x85c   :  { %v4929_v58 = vpop.f32.mrb[52].mxu0  ;;  %v4931_v45 = vpop.f32.mrb[52].mxu1 }
 0x85d   :  { %5625 = vst [vmem:[#allocation3_spill] sm:$0xff] %v4931_v45  ;;  %v4933_v1 = vpop.f32.mrb[53].mxu0  ;;  %v4935_v18 = vpop.f32.mrb[53].mxu1 }
 0x85e   :  { %5626 = vst [vmem:[#allocation4_spill] sm:$0xff] %v4933_v1  ;;  %5627 = vst [vmem:[#allocation5_spill] sm:$0xff] %v4935_v18  ;;  %v4937_v12 = vpop.f32.mrb[54].mxu0  ;;  %v4939_v61 = vpop.f32.mrb[54].mxu1 }
 0x85f   :  { %5628 = vst [vmem:[#allocation6_spill] sm:$0xff] %v4937_v12  ;;  %5629 = vst [vmem:[#allocation7_spill] sm:$0xff] %v4939_v61  ;;  %v4941_v40 = vpop.f32.mrb[55].mxu0  ;;  %v4943_v22 = vpop.f32.mrb[55].mxu1 }
 0x860   :  { %5630 = vst [vmem:[#allocation8_spill] sm:$0xff] %v4941_v40  ;;  %5631 = vst [vmem:[#allocation9_spill] sm:$0xff] %v4943_v22  ;;  %v3534_v24 = vpop.eup %3533 }
 0x861   :  { %v1362_v23 = vmul.f32 %v3534_v24, %v3532_v20 }
 0x863   :  { %v1366_v13 = vpack.c.bf16 %v1362_v23, %v4606_v33 }
 0x864   :  { %v4946_v37 = vpop.f32.mrb[56].mxu0  ;;  %v4948_v38 = vpop.f32.mrb[56].mxu1 }
 0x865   :  { %5632 = vst [vmem:[#allocation10_spill] sm:$0xff] %v4946_v37  ;;  %5633 = vst [vmem:[#allocation11_spill] sm:$0xff] %v4948_v38  ;;  %v4950_v41 = vpop.f32.mrb[57].mxu0  ;;  %v4952_v42 = vpop.f32.mrb[57].mxu1  ;;  %1644 = vmatmul.mubr.bf16.gmra.mrb[60].mxu0 %v1366_v13  ;;  %1717 = vmatmul.mubr.bf16.gmra.mrb[60].mxu1 %v1366_v13 }
 0x866   :  { %5634 = vst [vmem:[#allocation12_spill] sm:$0xff] %v4950_v41  ;;  %5635 = vst [vmem:[#allocation13_spill] sm:$0xff] %v4952_v42  ;;  %v4954_v43 = vpop.f32.mrb[58].mxu0  ;;  %v4956_v44 = vpop.f32.mrb[58].mxu1  ;;  %1951 = vmatprep.mubr.bf16.mxu0 %v5603_v14  ;;  %1992 = vmatprep.mubr.bf16.mxu1 %v5603_v14 }
 0x867   :  { %5636 = vst [vmem:[#allocation14_spill] sm:$0xff] %v4954_v43  ;;  %5637 = vst [vmem:[#allocation15_spill] sm:$0xff] %v4956_v44  ;;  %v4960_v46 = vpop.f32.mrb[59].mxu0  ;;  %v4962_v33 = vpop.f32.mrb[59].mxu1 }
 0x868   :  { %5638 = vst [vmem:[#allocation16_spill] sm:$0xff] %v4960_v46  ;;  %5639 = vst [vmem:[#allocation17_spill] sm:$0xff] %v4962_v33  ;;  %v5646_v33 = vld [vmem:[#allocation2_spill] sm:$0xff] }
 0x869   :  { %v5647_v46 = vsub.s32 0, %v5646_v33  ;;  %v5648_v43 = vsub.s32 2, %v5646_v33 }
 0x86b   :  { %v5017_v44 = vrot.slane %v1399_v47, %v5647_v46  ;;  %v5021_v42 = vrot.slane %v1399_v47, %v5648_v43 }
 0x86d   :  { %1952 = vmatmul.mubr.bf16.vlgmr.msra.gmra.mrb[64].mxu0 %v5603_v14  ;;  %1993 = vmatmul.mubr.bf16.vlgmr.msra.gmra.mrb[64].mxu1 %v5603_v14  ;;  %v1616_v46 = vadd.f32 %v4913_v36, %v5017_v44 }
 0x86e   :  { %2031 = vmatpush1.bf16.msra.mxu0 %v4722_v15  ;;  %2072 = vmatpush1.bf16.msra.mxu1 %v4733_v25 }
 0x86f   :  { %2032 = vmatprep.subr.bf16.mxu0 %v4740_v51  ;;  %2073 = vmatprep.subr.bf16.mxu1 %v4745_v56 }
 0x870   :  { %2062 = vmatprep.mubr.bf16.mxu0 %v5603_v14  ;;  %2103 = vmatprep.mubr.bf16.mxu1 %v5603_v14 }
 0x872   :  { %2033 = vmatpush1.bf16.msra.mxu0 %v4751_v63  ;;  %2074 = vmatpush1.bf16.msra.mxu1 %v4756_v0 }
 0x873   :  { %2034 = vmatprep.subr.bf16.mxu0 %v4764_v2  ;;  %2075 = vmatprep.subr.bf16.mxu1 %v4769_v3 }
 0x876   :  { %2035 = vmatpush1.bf16.msra.mxu0 %v4775_v48  ;;  %2076 = vmatpush1.bf16.msra.mxu1 %v4780_v6 }
 0x877   :  { %2036 = vmatprep.subr.bf16.mxu0 %v4788_v49  ;;  %2077 = vmatprep.subr.bf16.mxu1 %v4798_v52 }
 0x87a   :  { %2037 = vmatpush1.bf16.msra.mxu0 %v4793_v7  ;;  %2078 = vmatpush1.bf16.msra.mxu1 %v4804_v8 }
 0x87b   :  { %2038 = vmatprep.subr.bf16.mxu0 %v4812_v53  ;;  %2079 = vmatprep.subr.bf16.mxu1 %v4817_v9 }
 0x87e   :  { %2039 = vmatpush1.bf16.msra.mxu0 %v4823_v54  ;;  %2080 = vmatpush1.bf16.msra.mxu1 %v4828_v10 }
 0x87f   :  { %2040 = vmatprep.subr.bf16.mxu0 %v4836_v55  ;;  %2081 = vmatprep.subr.bf16.mxu1 %v4846_v57 }
 0x882   :  { %2041 = vmatpush1.bf16.msra.mxu0 %v4841_v11  ;;  %2082 = vmatpush1.bf16.msra.mxu1 %v4852_v34 }
 0x883   :  { %2042 = vmatprep.subr.bf16.mxu0 %v4860_v35  ;;  %2083 = vmatprep.subr.bf16.mxu1 %v4865_v59 }
 0x886   :  { %2043 = vmatpush1.bf16.msra.mxu0 %v4871_v60  ;;  %2084 = vmatpush1.bf16.msra.mxu1 %v4876_v19 }
 0x887   :  { %2044 = vmatprep.subr.bf16.mxu0 %v4884_v26  ;;  %2085 = vmatprep.subr.bf16.mxu1 %v4894_v27 }
 0x88a   :  { %2045 = vmatpush1.bf16.msra.mxu0 %v4889_v17  ;;  %2086 = vmatpush1.bf16.msra.mxu1 %v4900_v30 }
 0x88b   :  { %2141 = vmatprep.subr.bf16.mxu0 %v4717_v29  ;;  %2182 = vmatprep.subr.bf16.mxu1 %v4728_v21 }
 0x938   :  { %v5003_v32 = vpop.f32.mrb[60].mxu0  ;;  %v5005_v39 = vpop.f32.mrb[60].mxu1 }
 0x939   :  { %5640 = vst [vmem:[#allocation18_spill] sm:$0xff] %v5003_v32  ;;  %5641 = vst [vmem:[#allocation19_spill] sm:$0xff] %v5005_v39  ;;  %v5007_v20 = vpop.f32.mrb[61].mxu0  ;;  %v5009_v24 = vpop.f32.mrb[61].mxu1 }
 0x93a   :  { %5642 = vst [vmem:[#allocation20_spill] sm:$0xff] %v5007_v20  ;;  %5643 = vst [vmem:[#allocation21_spill] sm:$0xff] %v5009_v24  ;;  %v5011_v23 = vpop.f32.mrb[62].mxu0  ;;  %v5013_v13 = vpop.f32.mrb[62].mxu1  ;;  %v5651_v20 = vsub.s32 1, %v5646_v33 }
 0x93b   :  { %5644 = vst [vmem:[#allocation22_spill] sm:$0xff] %v5011_v23  ;;  %5645 = vst [vmem:[#allocation23_spill] sm:$0xff] %v5013_v13  ;;  %v5023_v41 = vpop.f32.mrb[63].mxu0  ;;  %v5025_v32 = vpop.f32.mrb[63].mxu1  ;;  %v5652_v23 = vsub.s32 3, %v5646_v33  ;;  %v1689_v13 = vadd.f32 %v4915_v28, %v5021_v42 }
 0x93c   :  { %5649 = vst [vmem:[#allocation2_spill] sm:$0xff] %v5023_v41  ;;  %5650 = vst [vmem:[#allocation24_spill] sm:$0xff] %v5025_v32  ;;  %v5029_v39 = vrot.slane %v1399_v47, %v5651_v20 }
 0x93d   :  { %v5033_v24 = vrot.slane %v1399_v47, %v5652_v23 }
 0x93e   :  { %v1618_v43 = vadd.f32 %v4917_v50, %v5029_v39 }
 0x93f   :  { %v1691_v32 = vadd.f32 %v4919_v16, %v5033_v24 }
 0x940   :  { %v1953_v41 = vpop.f32.mrb[64].mxu0  ;;  %v1994_v38 = vpop.f32.mrb[64].mxu1 }
 0x941   :  { %v2001_v20 = vadd.f32 %v1953_v41, %v1616_v46  ;;  %v2003_v37 = vadd.f32 %v1994_v38, %v1689_v13  ;;  %v1955_v22 = vpop.f32.mrb[65].mxu0  ;;  %v1996_v33 = vpop.f32.mrb[65].mxu1 }
 0x942   :  { %v2002_v47 = vadd.f32 %v1955_v22, %v1618_v43  ;;  %v2004_v23 = vadd.f32 %v1996_v33, %v1691_v32  ;;  %v1957_v40 = vpop.f32.mrb[66].mxu0  ;;  %v1998_v61 = vpop.f32.mrb[66].mxu1  ;;  %v1622_v33 = vadd.f32 %v4925_v31, %v5029_v39 }
 0x943   :  { %v3135_v36 = vmul.f32 -1.442695, %v2001_v20  ;;  %v1958_v12 = vpop.f32.mrb[67].mxu0  ;;  %v1999_v18 = vpop.f32.mrb[67].mxu1 }
 0x944   :  { %v3136_v28 = vmul.f32 -1.442695, %v2002_v47  ;;  %v3137_v50 = vmul.f32 -1.442695, %v2004_v23  ;;  %v1695_v47 = vadd.f32 %v4927_v4, %v5033_v24 }
 0x945   :  { %3535 = vpow2.f32 %v3135_v36 }
 0x946   :  { %3537 = vpow2.f32 %v3136_v28 }
 0x947   :  { %3539 = vpow2.f32 %v3137_v50 }
 0x948   :  { %3541 = vtanh.f32 %v2003_v37  ;;  %v1693_v37 = vadd.f32 %v4923_v62, %v5021_v42 }
 0x94f   :  { %v3536_v1 = vpop.eup %3535 }
 0x950   :  { %v3538_v45 = vpop.eup %3537  ;;  %v2008_v16 = vadd.f32 1.0, %v3536_v1 }
 0x951   :  { %v2014_v41 = vadd.f32 1.0, %v3538_v45  ;;  %v3540_v38 = vpop.eup %3539  ;;  %v1620_v45 = vadd.f32 %v4921_v5, %v5017_v44 }
 0x952   :  { %3543 = vrcp.f32 %v2008_v16  ;;  %v3542_v22 = vpop.eup %3541  ;;  %v2021_v13 = vadd.f32 1.0, %v3540_v38 }
 0x953   :  { %3545 = vrcp.f32 %v2014_v41 }
 0x954   :  { %3547 = vrcp.f32 %v2021_v13 }
 0x95c   :  { %v3544_v32 = vpop.eup %3543 }
 0x95d   :  { %v3546_v40 = vpop.eup %3545  ;;  %v2025_v61 = vmul.f32 %v3544_v32, %v3542_v22 }
 0x95e   :  { %v2024_v12 = vmul.f32 0.0, %v3546_v40  ;;  %v3548_v46 = vpop.eup %3547 }
 0x960   :  { %v5043_v18 = vadd.f32 %v2025_v61, %v2024_v12 }
 0x962   :  { %3549 = vtanh.f32 %v5043_v18 }
 0x96c   :  { %v3550_v43 = vpop.eup %3549 }
 0x96d   :  { %v2028_v1 = vmul.f32 %v3550_v43, %v3548_v46 }
 0x96f   :  { %v2029_v20 = vpack.c.bf16 %v2028_v1, %v2028_v1 }
 0x971   :  { %2063 = vmatmul.mubr.bf16.vlgmr.msra.gmra.mrb[68].mxu0 %v2029_v20  ;;  %2104 = vmatmul.mubr.bf16.vlgmr.msra.gmra.mrb[68].mxu1 %v2029_v20 }
 0x972   :  { %2142 = vmatpush1.bf16.msra.mxu0 %v4722_v15  ;;  %2183 = vmatpush1.bf16.msra.mxu1 %v4733_v25 }
 0x973   :  { %2143 = vmatprep.subr.bf16.mxu0 %v4740_v51  ;;  %2184 = vmatprep.subr.bf16.mxu1 %v4745_v56 }
 0x974   :  { %2173 = vmatprep.mubr.bf16.mxu0 %v5603_v14  ;;  %2214 = vmatprep.mubr.bf16.mxu1 %v5603_v14 }
 0x976   :  { %2144 = vmatpush1.bf16.msra.mxu0 %v4751_v63  ;;  %2185 = vmatpush1.bf16.msra.mxu1 %v4756_v0 }
 0x977   :  { %2145 = vmatprep.subr.bf16.mxu0 %v4764_v2  ;;  %2186 = vmatprep.subr.bf16.mxu1 %v4769_v3 }
 0x97a   :  { %2146 = vmatpush1.bf16.msra.mxu0 %v4775_v48  ;;  %2187 = vmatpush1.bf16.msra.mxu1 %v4780_v6 }
 0x97b   :  { %2147 = vmatprep.subr.bf16.mxu0 %v4788_v49  ;;  %2188 = vmatprep.subr.bf16.mxu1 %v4798_v52 }
 0x97e   :  { %2148 = vmatpush1.bf16.msra.mxu0 %v4793_v7  ;;  %2189 = vmatpush1.bf16.msra.mxu1 %v4804_v8 }
 0x97f   :  { %2149 = vmatprep.subr.bf16.mxu0 %v4812_v53  ;;  %2190 = vmatprep.subr.bf16.mxu1 %v4817_v9 }
 0x982   :  { %2150 = vmatpush1.bf16.msra.mxu0 %v4823_v54  ;;  %2191 = vmatpush1.bf16.msra.mxu1 %v4828_v10 }
 0x983   :  { %2151 = vmatprep.subr.bf16.mxu0 %v4836_v55  ;;  %2192 = vmatprep.subr.bf16.mxu1 %v4846_v57 }
 0x986   :  { %2152 = vmatpush1.bf16.msra.mxu0 %v4841_v11  ;;  %2193 = vmatpush1.bf16.msra.mxu1 %v4852_v34 }
 0x987   :  { %2153 = vmatprep.subr.bf16.mxu0 %v4860_v35  ;;  %2194 = vmatprep.subr.bf16.mxu1 %v4865_v59 }
 0x98a   :  { %2154 = vmatpush1.bf16.msra.mxu0 %v4871_v60  ;;  %2195 = vmatpush1.bf16.msra.mxu1 %v4876_v19 }
 0x98b   :  { %2155 = vmatprep.subr.bf16.mxu0 %v4884_v26  ;;  %2196 = vmatprep.subr.bf16.mxu1 %v4894_v27 }
 0x98e   :  { %2156 = vmatpush1.bf16.msra.mxu0 %v4889_v17  ;;  %2197 = vmatpush1.bf16.msra.mxu1 %v4900_v30 }
 0x98f   :  { %2252 = vmatprep.subr.bf16.mxu0 %v4717_v29  ;;  %2293 = vmatprep.subr.bf16.mxu1 %v4728_v21 }
 0xa44   :  { %v2064_v23 = vpop.f32.mrb[68].mxu0  ;;  %v2105_v36 = vpop.f32.mrb[68].mxu1 }
 0xa45   :  { %v2112_v28 = vadd.f32 %v2064_v23, %v1620_v45  ;;  %v2114_v50 = vadd.f32 %v2105_v36, %v1693_v37  ;;  %v2066_v16 = vpop.f32.mrb[69].mxu0  ;;  %v2107_v41 = vpop.f32.mrb[69].mxu1 }
 0xa46   :  { %v2113_v38 = vadd.f32 %v2066_v16, %v1622_v33  ;;  %v2115_v22 = vadd.f32 %v2107_v41, %v1695_v47  ;;  %v2068_v32 = vpop.f32.mrb[70].mxu0  ;;  %v2109_v40 = vpop.f32.mrb[70].mxu1 }
 0xa47   :  { %v3138_v5 = vmul.f32 -1.442695, %v2112_v28  ;;  %v2069_v61 = vpop.f32.mrb[71].mxu0  ;;  %v2110_v13 = vpop.f32.mrb[71].mxu1  ;;  %v5654_v32 = vld [vmem:[#allocation4_spill] sm:$0xff] }
 0xa48   :  { %v3139_v62 = vmul.f32 -1.442695, %v2113_v38  ;;  %v3140_v31 = vmul.f32 -1.442695, %v2115_v22  ;;  %v5653_v38 = vld [vmem:[#allocation3_spill] sm:$0xff]  ;;  %v1628_v40 = vadd.f32 %v5654_v32, %v5029_v39 }
 0xa49   :  { %3551 = vpow2.f32 %v3138_v5  ;;  %v1699_v22 = vadd.f32 %v5653_v38, %v5021_v42  ;;  %v5655_v5 = vld [vmem:[#allocation5_spill] sm:$0xff] }
 0xa4a   :  { %3553 = vpow2.f32 %v3139_v62  ;;  %v1701_v61 = vadd.f32 %v5655_v5, %v5033_v24 }
 0xa4b   :  { %3555 = vpow2.f32 %v3140_v31 }
 0xa4c   :  { %3557 = vtanh.f32 %v2114_v50 }
 0xa53   :  { %v3552_v12 = vpop.eup %3551 }
 0xa54   :  { %v3554_v46 = vpop.eup %3553  ;;  %v2119_v4 = vadd.f32 1.0, %v3552_v12 }
 0xa55   :  { %v2125_v43 = vadd.f32 1.0, %v3554_v46  ;;  %v3556_v1 = vpop.eup %3555 }
 0xa56   :  { %3559 = vrcp.f32 %v2119_v4  ;;  %v3558_v20 = vpop.eup %3557  ;;  %v2132_v47 = vadd.f32 1.0, %v3556_v1 }
 0xa57   :  { %3561 = vrcp.f32 %v2125_v43 }
 0xa58   :  { %3563 = vrcp.f32 %v2132_v47 }
 0xa60   :  { %v3560_v45 = vpop.eup %3559 }
 0xa61   :  { %v3562_v37 = vpop.eup %3561  ;;  %v2136_v33 = vmul.f32 %v3560_v45, %v3558_v20 }
 0xa62   :  { %v2135_v23 = vmul.f32 %v3562_v37, %v5043_v18  ;;  %v3564_v28 = vpop.eup %3563  ;;  %v1626_v18 = vadd.f32 %v4929_v58, %v5017_v44 }
 0xa64   :  { %v5089_v36 = vadd.f32 %v2136_v33, %v2135_v23 }
 0xa66   :  { %3565 = vtanh.f32 %v5089_v36 }
 0xa70   :  { %v3566_v16 = vpop.eup %3565 }
 0xa71   :  { %v2139_v41 = vmul.f32 %v3566_v16, %v3564_v28 }
 0xa73   :  { %v2140_v50 = vpack.c.bf16 %v2139_v41, %v2139_v41 }
 0xa75   :  { %2174 = vmatmul.mubr.bf16.vlgmr.msra.gmra.mrb[72].mxu0 %v2140_v50  ;;  %2215 = vmatmul.mubr.bf16.vlgmr.msra.gmra.mrb[72].mxu1 %v2140_v50 }
 0xa76   :  { %2253 = vmatpush1.bf16.msra.mxu0 %v4722_v15  ;;  %2294 = vmatpush1.bf16.msra.mxu1 %v4733_v25 }
 0xa77   :  { %2254 = vmatprep.subr.bf16.mxu0 %v4740_v51  ;;  %2295 = vmatprep.subr.bf16.mxu1 %v4745_v56 }
 0xa78   :  { %2284 = vmatprep.mubr.bf16.mxu0 %v5603_v14  ;;  %2325 = vmatprep.mubr.bf16.mxu1 %v5603_v14 }
 0xa7a   :  { %2255 = vmatpush1.bf16.msra.mxu0 %v4751_v63  ;;  %2296 = vmatpush1.bf16.msra.mxu1 %v4756_v0 }
 0xa7b   :  { %2256 = vmatprep.subr.bf16.mxu0 %v4764_v2  ;;  %2297 = vmatprep.subr.bf16.mxu1 %v4769_v3 }
 0xa7e   :  { %2257 = vmatpush1.bf16.msra.mxu0 %v4775_v48  ;;  %2298 = vmatpush1.bf16.msra.mxu1 %v4780_v6 }
 0xa7f   :  { %2258 = vmatprep.subr.bf16.mxu0 %v4788_v49  ;;  %2299 = vmatprep.subr.bf16.mxu1 %v4798_v52 }
 0xa82   :  { %2259 = vmatpush1.bf16.msra.mxu0 %v4793_v7  ;;  %2300 = vmatpush1.bf16.msra.mxu1 %v4804_v8 }
 0xa83   :  { %2260 = vmatprep.subr.bf16.mxu0 %v4812_v53  ;;  %2301 = vmatprep.subr.bf16.mxu1 %v4817_v9 }
 0xa86   :  { %2261 = vmatpush1.bf16.msra.mxu0 %v4823_v54  ;;  %2302 = vmatpush1.bf16.msra.mxu1 %v4828_v10 }
 0xa87   :  { %2262 = vmatprep.subr.bf16.mxu0 %v4836_v55  ;;  %2303 = vmatprep.subr.bf16.mxu1 %v4846_v57 }
 0xa8a   :  { %2263 = vmatpush1.bf16.msra.mxu0 %v4841_v11  ;;  %2304 = vmatpush1.bf16.msra.mxu1 %v4852_v34 }
 0xa8b   :  { %2264 = vmatprep.subr.bf16.mxu0 %v4860_v35  ;;  %2305 = vmatprep.subr.bf16.mxu1 %v4865_v59 }
 0xa8e   :  { %2265 = vmatpush1.bf16.msra.mxu0 %v4871_v60  ;;  %2306 = vmatpush1.bf16.msra.mxu1 %v4876_v19 }
 0xa8f   :  { %2266 = vmatprep.subr.bf16.mxu0 %v4884_v26  ;;  %2307 = vmatprep.subr.bf16.mxu1 %v4894_v27 }
 0xa92   :  { %2267 = vmatpush1.bf16.msra.mxu0 %v4889_v17  ;;  %2308 = vmatpush1.bf16.msra.mxu1 %v4900_v30 }
 0xa93   :  { %2363 = vmatprep.subr.bf16.mxu0 %v4717_v29  ;;  %2404 = vmatprep.subr.bf16.mxu1 %v4728_v21 }
 0xb48   :  { %v2175_v13 = vpop.f32.mrb[72].mxu0  ;;  %v2216_v62 = vpop.f32.mrb[72].mxu1 }
 0xb49   :  { %v2223_v31 = vadd.f32 %v2175_v13, %v1626_v18  ;;  %v2225_v12 = vadd.f32 %v2216_v62, %v1699_v22  ;;  %v2177_v46 = vpop.f32.mrb[73].mxu0  ;;  %v2218_v4 = vpop.f32.mrb[73].mxu1 }
 0xb4a   :  { %v2224_v43 = vadd.f32 %v2177_v46, %v1628_v40  ;;  %v2226_v1 = vadd.f32 %v2218_v4, %v1701_v61  ;;  %v2179_v20 = vpop.f32.mrb[74].mxu0  ;;  %v2220_v45 = vpop.f32.mrb[74].mxu1 }
 0xb4b   :  { %v3141_v58 = vmul.f32 -1.442695, %v2223_v31  ;;  %v2180_v37 = vpop.f32.mrb[75].mxu0  ;;  %v2221_v33 = vpop.f32.mrb[75].mxu1  ;;  %v5658_v20 = vld [vmem:[#allocation8_spill] sm:$0xff] }
 0xb4c   :  { %v3142_v47 = vmul.f32 -1.442695, %v2224_v43  ;;  %v3143_v23 = vmul.f32 -1.442695, %v2226_v1  ;;  %v5657_v43 = vld [vmem:[#allocation7_spill] sm:$0xff]  ;;  %v1632_v45 = vadd.f32 %v5658_v20, %v5029_v39 }
 0xb4d   :  { %3567 = vpow2.f32 %v3141_v58  ;;  %v1703_v1 = vadd.f32 %v5657_v43, %v5021_v42  ;;  %v5659_v58 = vld [vmem:[#allocation9_spill] sm:$0xff] }
 0xb4e   :  { %3569 = vpow2.f32 %v3142_v47  ;;  %v1705_v37 = vadd.f32 %v5659_v58, %v5033_v24 }
 0xb4f   :  { %3571 = vpow2.f32 %v3143_v23 }
 0xb50   :  { %3573 = vtanh.f32 %v2225_v12 }
 0xb57   :  { %v3568_v28 = vpop.eup %3567 }
 0xb58   :  { %v3570_v16 = vpop.eup %3569  ;;  %v2230_v41 = vadd.f32 1.0, %v3568_v28 }
 0xb59   :  { %v2236_v50 = vadd.f32 1.0, %v3570_v16  ;;  %v3572_v18 = vpop.eup %3571 }
 0xb5a   :  { %3575 = vrcp.f32 %v2230_v41  ;;  %v3574_v38 = vpop.eup %3573  ;;  %v2243_v5 = vadd.f32 1.0, %v3572_v18 }
 0xb5b   :  { %3577 = vrcp.f32 %v2236_v50 }
 0xb5c   :  { %3579 = vrcp.f32 %v2243_v5 }
 0xb64   :  { %v3576_v22 = vpop.eup %3575 }
 0xb65   :  { %v3578_v32 = vpop.eup %3577  ;;  %v2247_v40 = vmul.f32 %v3576_v22, %v3574_v38 }
 0xb66   :  { %v2246_v61 = vmul.f32 %v3578_v32, %v5089_v36  ;;  %v3580_v62 = vpop.eup %3579  ;;  %v5656_v36 = vld [vmem:[#allocation6_spill] sm:$0xff] }
 0xb67   :  { %v1630_v4 = vadd.f32 %v5656_v36, %v5017_v44 }
 0xb68   :  { %v5135_v13 = vadd.f32 %v2247_v40, %v2246_v61 }
 0xb6a   :  { %3581 = vtanh.f32 %v5135_v13 }
 0xb74   :  { %v3582_v31 = vpop.eup %3581 }
 0xb75   :  { %v2250_v46 = vmul.f32 %v3582_v31, %v3580_v62 }
 0xb77   :  { %v2251_v12 = vpack.c.bf16 %v2250_v46, %v2250_v46 }
 0xb79   :  { %2285 = vmatmul.mubr.bf16.vlgmr.msra.gmra.mrb[76].mxu0 %v2251_v12  ;;  %2326 = vmatmul.mubr.bf16.vlgmr.msra.gmra.mrb[76].mxu1 %v2251_v12 }
 0xb7a   :  { %2364 = vmatpush1.bf16.msra.mxu0 %v4722_v15  ;;  %2405 = vmatpush1.bf16.msra.mxu1 %v4733_v25 }
 0xb7b   :  { %2365 = vmatprep.subr.bf16.mxu0 %v4740_v51  ;;  %2406 = vmatprep.subr.bf16.mxu1 %v4745_v56 }
 0xb7c   :  { %2395 = vmatprep.mubr.bf16.mxu0 %v5603_v14  ;;  %2436 = vmatprep.mubr.bf16.mxu1 %v5603_v14 }
 0xb7e   :  { %2366 = vmatpush1.bf16.msra.mxu0 %v4751_v63  ;;  %2407 = vmatpush1.bf16.msra.mxu1 %v4756_v0 }
 0xb7f   :  { %2367 = vmatprep.subr.bf16.mxu0 %v4764_v2  ;;  %2408 = vmatprep.subr.bf16.mxu1 %v4769_v3 }
 0xb82   :  { %2368 = vmatpush1.bf16.msra.mxu0 %v4775_v48  ;;  %2409 = vmatpush1.bf16.msra.mxu1 %v4780_v6 }
 0xb83   :  { %2369 = vmatprep.subr.bf16.mxu0 %v4788_v49  ;;  %2410 = vmatprep.subr.bf16.mxu1 %v4798_v52 }
 0xb86   :  { %2370 = vmatpush1.bf16.msra.mxu0 %v4793_v7  ;;  %2411 = vmatpush1.bf16.msra.mxu1 %v4804_v8 }
 0xb87   :  { %2371 = vmatprep.subr.bf16.mxu0 %v4812_v53  ;;  %2412 = vmatprep.subr.bf16.mxu1 %v4817_v9 }
 0xb8a   :  { %2372 = vmatpush1.bf16.msra.mxu0 %v4823_v54  ;;  %2413 = vmatpush1.bf16.msra.mxu1 %v4828_v10 }
 0xb8b   :  { %2373 = vmatprep.subr.bf16.mxu0 %v4836_v55  ;;  %2414 = vmatprep.subr.bf16.mxu1 %v4846_v57 }
 0xb8e   :  { %2374 = vmatpush1.bf16.msra.mxu0 %v4841_v11  ;;  %2415 = vmatpush1.bf16.msra.mxu1 %v4852_v34 }
 0xb8f   :  { %2375 = vmatprep.subr.bf16.mxu0 %v4860_v35  ;;  %2416 = vmatprep.subr.bf16.mxu1 %v4865_v59 }
 0xb92   :  { %2376 = vmatpush1.bf16.msra.mxu0 %v4871_v60  ;;  %2417 = vmatpush1.bf16.msra.mxu1 %v4876_v19 }
 0xb93   :  { %2377 = vmatprep.subr.bf16.mxu0 %v4884_v26  ;;  %2418 = vmatprep.subr.bf16.mxu1 %v4894_v27 }
 0xb96   :  { %2378 = vmatpush1.bf16.msra.mxu0 %v4889_v17  ;;  %2419 = vmatpush1.bf16.msra.mxu1 %v4900_v30 }
 0xb97   :  { %2474 = vmatprep.subr.bf16.mxu0 %v4717_v29  ;;  %2515 = vmatprep.subr.bf16.mxu1 %v4728_v21 }
 0xc4c   :  { %v2286_v33 = vpop.f32.mrb[76].mxu0  ;;  %v2327_v47 = vpop.f32.mrb[76].mxu1 }
 0xc4d   :  { %v2334_v23 = vadd.f32 %v2286_v33, %v1630_v4  ;;  %v2336_v28 = vadd.f32 %v2327_v47, %v1703_v1  ;;  %v2288_v16 = vpop.f32.mrb[77].mxu0  ;;  %v2329_v29 = vpop.f32.mrb[77].mxu1 }
 0xc4e   :  { %v2335_v41 = vadd.f32 %v2288_v16, %v1632_v45  ;;  %v2337_v21 = vadd.f32 %v2329_v29, %v1705_v37  ;;  %v2290_v50 = vpop.f32.mrb[78].mxu0  ;;  %v2331_v18 = vpop.f32.mrb[78].mxu1 }
 0xc4f   :  { %v3144_v38 = vmul.f32 -1.442695, %v2334_v23  ;;  %v2291_v22 = vpop.f32.mrb[79].mxu0  ;;  %v2332_v32 = vpop.f32.mrb[79].mxu1 }
 0xc50   :  { %v3145_v40 = vmul.f32 -1.442695, %v2335_v41  ;;  %v3146_v5 = vmul.f32 -1.442695, %v2337_v21 }
 0xc51   :  { %3583 = vpow2.f32 %v3144_v38 }
 0xc52   :  { %3585 = vpow2.f32 %v3145_v40  ;;  %v5243_v40 = vld [vmem:[%s5565_s6] ss:$16 sps:$4 sm:$0xff]  }
 0xc53   :  { %3587 = vpow2.f32 %v3146_v5  ;;  %v5249_v5 = vld [vmem:[%s5565_s6 + $0x8] ss:$16 sps:$4 sm:$0xff]  }
 0xc54   :  { %3589 = vtanh.f32 %v2336_v28 }
 0xc5b   :  { %v3584_v61 = vpop.eup %3583 }
 0xc5c   :  { %v3586_v62 = vpop.eup %3585  ;;  %v2341_v31 = vadd.f32 1.0, %v3584_v61  ;;  %v5255_v61 = vld [vmem:[%s5565_s6 + $0x24] ss:$16 sps:$4 sm:$0xff]  }
 0xc5d   :  { %v2347_v46 = vadd.f32 1.0, %v3586_v62  ;;  %v3588_v12 = vpop.eup %3587  ;;  %v5261_v62 = vld [vmem:[%s5565_s6 + $0x2c] ss:$16 sps:$4 sm:$0xff]  }
 0xc5e   :  { %3591 = vrcp.f32 %v2341_v31  ;;  %v3590_v36 = vpop.eup %3589  ;;  %v2354_v20 = vadd.f32 1.0, %v3588_v12  ;;  %v5269_v31 = vld [vmem:[%s5565_s6 + $0x20] ss:$16 sps:$4 sm:$0xff]   ;;  %v5281_v12 = vld [vmem:[%s5565_s6 + $0x44] ss:$16 sps:$4 sm:$0xff]  }
 0xc5f   :  { %3593 = vrcp.f32 %v2347_v46  ;;  %v5275_v46 = vld [vmem:[%s5565_s6 + $0x28] ss:$16 sps:$4 sm:$0xff]  }
 0xc60   :  { %3595 = vrcp.f32 %v2354_v20  ;;  %v5311_v20 = vld [vmem:[%s5565_s6 + $0x6c] ss:$16 sps:$4 sm:$0xff]  }
 0xc68   :  { %v3592_v4 = vpop.eup %3591 }
 0xc69   :  { %v3594_v43 = vpop.eup %3593  ;;  %v2358_v1 = vmul.f32 %v3592_v4, %v3590_v36  ;;  %v5287_v36 = vld [vmem:[%s5565_s6 + $0x4c] ss:$16 sps:$4 sm:$0xff]   ;;  %v5293_v4 = vld [vmem:[%s5565_s6 + $0x40] ss:$16 sps:$4 sm:$0xff]  }
 0xc6a   :  { %v2357_v45 = vmul.f32 %v3594_v43, %v5135_v13  ;;  %v3596_v37 = vpop.eup %3595  ;;  %v5299_v43 = vld [vmem:[%s5565_s6 + $0x48] ss:$16 sps:$4 sm:$0xff]  }
 0xc6c   :  { %v5181_v58 = vadd.f32 %v2358_v1, %v2357_v45  ;;  %v5305_v1 = vld [vmem:[%s5565_s6 + $0x64] ss:$16 sps:$4 sm:$0xff]   ;;  %v5317_v45 = vld [vmem:[%s5565_s6 + $0x60] ss:$16 sps:$4 sm:$0xff]  }
 0xc6e   :  { %3597 = vtanh.f32 %v5181_v58 }
 0xc78   :  { %v3598_v33 = vpop.eup %3597 }
 0xc79   :  { %v2361_v47 = vmul.f32 %v3598_v33, %v3596_v37  ;;  %v5329_v37 = vld [vmem:[%s5565_s6 + $0x84] ss:$16 sps:$4 sm:$0xff]   ;;  %v5335_v33 = vld [vmem:[%s5565_s6 + $0x8c] ss:$16 sps:$4 sm:$0xff]  }
 0xc7b   :  { %v2362_v23 = vpack.c.bf16 %v2361_v47, %v2361_v47  ;;  %v5341_v47 = vld [vmem:[%s5565_s6 + $0x80] ss:$16 sps:$4 sm:$0xff]  }
 0xc7d   :  { %2396 = vmatmul.mubr.bf16.vlgmr.msra.gmra.mrb[80].mxu0 %v2362_v23  ;;  %2437 = vmatmul.mubr.bf16.vlgmr.msra.gmra.mrb[80].mxu1 %v2362_v23  ;;  %v5347_v23 = vld [vmem:[%s5565_s6 + $0x88] ss:$16 sps:$4 sm:$0xff]  }
 0xc7e   :  { %2475 = vmatpush1.bf16.msra.mxu0 %v4722_v15  ;;  %2516 = vmatpush1.bf16.msra.mxu1 %v4733_v25  ;;  %v5219_v15 = vld [vmem:[%s5565_s6 + $0x4] ss:$16 sps:$4 sm:$0xff]   ;;  %v5225_v25 = vld [vmem:[%s5565_s6 + $0xc] ss:$16 sps:$4 sm:$0xff]  }
 0xc7f   :  { %2476 = vmatprep.subr.bf16.mxu0 %v4740_v51  ;;  %2517 = vmatprep.subr.bf16.mxu1 %v4745_v56  ;;  %v5660_v51 = vld [vmem:[#allocation10_spill] sm:$0xff] }
 0xc80   :  { %2506 = vmatprep.mubr.bf16.mxu0 %v5603_v14  ;;  %2547 = vmatprep.mubr.bf16.mxu1 %v5603_v14  ;;  %v1636_v56 = vadd.f32 %v5660_v51, %v5017_v44  ;;  %v5353_v51 = vld [vmem:[%s5565_s6 + $0xa4] ss:$16 sps:$4 sm:$0xff]  }
 0xc82   :  { %2477 = vmatpush1.bf16.msra.mxu0 %v4751_v63  ;;  %2518 = vmatpush1.bf16.msra.mxu1 %v4756_v0  ;;  %v5661_v63 = vld [vmem:[#allocation11_spill] sm:$0xff] }
 0xc83   :  { %2478 = vmatprep.subr.bf16.mxu0 %v4764_v2  ;;  %2519 = vmatprep.subr.bf16.mxu1 %v4769_v3  ;;  %v1709_v0 = vadd.f32 %v5661_v63, %v5021_v42  ;;  %v5662_v2 = vld [vmem:[#allocation12_spill] sm:$0xff] }
 0xc84   :  { %v1638_v3 = vadd.f32 %v5662_v2, %v5029_v39  ;;  %v5365_v63 = vld [vmem:[%s5565_s6 + $0xa0] ss:$16 sps:$4 sm:$0xff]   ;;  %v5377_v2 = vld [vmem:[%s5565_s6 + $0xc4] ss:$16 sps:$4 sm:$0xff]  }
 0xc86   :  { %2479 = vmatpush1.bf16.msra.mxu0 %v4775_v48  ;;  %2520 = vmatpush1.bf16.msra.mxu1 %v4780_v6  ;;  %v5663_v48 = vld [vmem:[#allocation13_spill] sm:$0xff] }
 0xc87   :  { %2480 = vmatprep.subr.bf16.mxu0 %v4788_v49  ;;  %2521 = vmatprep.subr.bf16.mxu1 %v4798_v52  ;;  %v1711_v6 = vadd.f32 %v5663_v48, %v5033_v24  ;;  %v5389_v48 = vld [vmem:[%s5565_s6 + $0xc0] ss:$16 sps:$4 sm:$0xff]  }
 0xc8a   :  { %2481 = vmatpush1.bf16.msra.mxu0 %v4793_v7  ;;  %2522 = vmatpush1.bf16.msra.mxu1 %v4804_v8 }
 0xc8b   :  { %2482 = vmatprep.subr.bf16.mxu0 %v4812_v53  ;;  %2523 = vmatprep.subr.bf16.mxu1 %v4817_v9 }
 0xc8e   :  { %2483 = vmatpush1.bf16.msra.mxu0 %v4823_v54  ;;  %2524 = vmatpush1.bf16.msra.mxu1 %v4828_v10 }
 0xc8f   :  { %2484 = vmatprep.subr.bf16.mxu0 %v4836_v55  ;;  %2525 = vmatprep.subr.bf16.mxu1 %v4846_v57 }
 0xc92   :  { %2485 = vmatpush1.bf16.msra.mxu0 %v4841_v11  ;;  %2526 = vmatpush1.bf16.msra.mxu1 %v4852_v34 }
 0xc93   :  { %2486 = vmatprep.subr.bf16.mxu0 %v4860_v35  ;;  %2527 = vmatprep.subr.bf16.mxu1 %v4865_v59 }
 0xc96   :  { %2487 = vmatpush1.bf16.msra.mxu0 %v4871_v60  ;;  %2528 = vmatpush1.bf16.msra.mxu1 %v4876_v19 }
 0xc97   :  { %2488 = vmatprep.subr.bf16.mxu0 %v4884_v26  ;;  %2529 = vmatprep.subr.bf16.mxu1 %v4894_v27 }
 0xc9a   :  { %2489 = vmatpush1.bf16.msra.mxu0 %v4889_v17  ;;  %2530 = vmatpush1.bf16.msra.mxu1 %v4900_v30 }
 0xc9b   :  { %2585 = vmatprep.subr.bf16.mxu0 %v5219_v15  ;;  %2626 = vmatprep.subr.bf16.mxu1 %v5225_v25 }
 0xd50   :  { %v2397_v49 = vpop.f32.mrb[80].mxu0  ;;  %v2438_v7 = vpop.f32.mrb[80].mxu1 }
 0xd51   :  { %v2445_v52 = vadd.f32 %v2397_v49, %v1636_v56  ;;  %v2447_v8 = vadd.f32 %v2438_v7, %v1709_v0  ;;  %v2399_v53 = vpop.f32.mrb[81].mxu0  ;;  %v2440_v9 = vpop.f32.mrb[81].mxu1  ;;  %v5359_v56 = vld [vmem:[%s5565_s6 + $0xac] ss:$16 sps:$4 sm:$0xff]   ;;  %v5371_v0 = vld [vmem:[%s5565_s6 + $0xa8] ss:$16 sps:$4 sm:$0xff]  }
 0xd52   :  { %v2446_v54 = vadd.f32 %v2399_v53, %v1638_v3  ;;  %v2448_v10 = vadd.f32 %v2440_v9, %v1711_v6  ;;  %v2401_v55 = vpop.f32.mrb[82].mxu0  ;;  %v2442_v11 = vpop.f32.mrb[82].mxu1  ;;  %v5383_v3 = vld [vmem:[%s5565_s6 + $0xcc] ss:$16 sps:$4 sm:$0xff]   ;;  %v5395_v6 = vld [vmem:[%s5565_s6 + $0xc8] ss:$16 sps:$4 sm:$0xff]  }
 0xd53   :  { %v3147_v57 = vmul.f32 -1.442695, %v2445_v52  ;;  %v2402_v34 = vpop.f32.mrb[83].mxu0  ;;  %v2443_v35 = vpop.f32.mrb[83].mxu1  ;;  %v5401_v49 = vld [vmem:[%s5565_s6 + $0xe4] ss:$16 sps:$4 sm:$0xff]  }
 0xd54   :  { %v3148_v59 = vmul.f32 -1.442695, %v2446_v54  ;;  %v3149_v60 = vmul.f32 -1.442695, %v2448_v10  ;;  %v5407_v7 = vld [vmem:[%s5565_s6 + $0xec] ss:$16 sps:$4 sm:$0xff]  }
 0xd55   :  { %3599 = vpow2.f32 %v3147_v57  ;;  %v5413_v52 = vld [vmem:[%s5565_s6 + $0xe0] ss:$16 sps:$4 sm:$0xff]   ;;  %v5665_v54 = vld [vmem:[#allocation15_spill] sm:$0xff]  ;;  %v5667_v57 = vld [vmem:[#allocation17_spill] sm:$0xff] }
 0xd56   :  { %3601 = vpow2.f32 %v3148_v59  ;;  %v5664_v53 = vld [vmem:[#allocation14_spill] sm:$0xff]  ;;  %v1713_v10 = vadd.f32 %v5665_v54, %v5021_v42  ;;  %v5666_v55 = vld [vmem:[#allocation16_spill] sm:$0xff]  ;;  %v1715_v34 = vadd.f32 %v5667_v57, %v5033_v24 }
 0xd57   :  { %3603 = vpow2.f32 %v3149_v60  ;;  %v1640_v9 = vadd.f32 %v5664_v53, %v5017_v44  ;;  %v1642_v11 = vadd.f32 %v5666_v55, %v5029_v39 }
 0xd58   :  { %3605 = vtanh.f32 %v2447_v8  ;;  %v5419_v8 = vld [vmem:[%s5565_s6 + $0xe8] ss:$16 sps:$4 sm:$0xff]  }
 0xd5f   :  { %v3600_v19 = vpop.eup %3599 }
 0xd60   :  { %v3602_v26 = vpop.eup %3601  ;;  %v2452_v17 = vadd.f32 1.0, %v3600_v19 }
 0xd61   :  { %v2458_v27 = vadd.f32 1.0, %v3602_v26  ;;  %v3604_v30 = vpop.eup %3603 }
 0xd62   :  { %3607 = vrcp.f32 %v2452_v17  ;;  %v3606_v13 = vpop.eup %3605  ;;  %v2465_v41 = vadd.f32 1.0, %v3604_v30 }
 0xd63   :  { %3609 = vrcp.f32 %v2458_v27 }
 0xd64   :  { %3611 = vrcp.f32 %v2465_v41 }
 0xd6c   :  { %v3608_v28 = vpop.eup %3607 }
 0xd6d   :  { %v3610_v16 = vpop.eup %3609  ;;  %v2469_v29 = vmul.f32 %v3608_v28, %v3606_v13 }
 0xd6e   :  { %v2468_v21 = vmul.f32 %v3610_v16, %v5181_v58  ;;  %v3612_v18 = vpop.eup %3611  ;;  %v5323_v58 = vld [vmem:[%s5565_s6 + $0x68] ss:$16 sps:$4 sm:$0xff]  }
 0xd70   :  { %v5237_v50 = vadd.f32 %v2469_v29, %v2468_v21 }
 0xd72   :  { %3613 = vtanh.f32 %v5237_v50 }
 0xd7c   :  { %v3614_v38 = vpop.eup %3613 }
 0xd7d   :  { %v2472_v22 = vmul.f32 %v3614_v38, %v3612_v18 }
 0xd7f   :  { %v2473_v32 = vpack.c.bf16 %v2472_v22, %v2472_v22 }
 0xd81   :  { %2507 = vmatmul.mubr.bf16.vlgmr.msra.gmra.mrb[84].mxu0 %v2473_v32  ;;  %2548 = vmatmul.mubr.bf16.vlgmr.msra.gmra.mrb[84].mxu1 %v2473_v32 }
 0xd82   :  { %2586 = vmatpush1.bf16.msra.mxu0 %v5243_v40  ;;  %2627 = vmatpush1.bf16.msra.mxu1 %v5249_v5 }
 0xd83   :  { %2587 = vmatprep.subr.bf16.mxu0 %v5255_v61  ;;  %2628 = vmatprep.subr.bf16.mxu1 %v5261_v62 }
 0xd84   :  { %2617 = vmatprep.mubr.bf16.mxu0 %v5603_v14  ;;  %2658 = vmatprep.mubr.bf16.mxu1 %v5603_v14 }
 0xd86   :  { %2588 = vmatpush1.bf16.msra.mxu0 %v5269_v31  ;;  %2629 = vmatpush1.bf16.msra.mxu1 %v5275_v46 }
 0xd87   :  { %2589 = vmatprep.subr.bf16.mxu0 %v5281_v12  ;;  %2630 = vmatprep.subr.bf16.mxu1 %v5287_v36 }
 0xd8a   :  { %2590 = vmatpush1.bf16.msra.mxu0 %v5293_v4  ;;  %2631 = vmatpush1.bf16.msra.mxu1 %v5299_v43 }
 0xd8b   :  { %2591 = vmatprep.subr.bf16.mxu0 %v5305_v1  ;;  %2632 = vmatprep.subr.bf16.mxu1 %v5311_v20 }
 0xd8e   :  { %2592 = vmatpush1.bf16.msra.mxu0 %v5317_v45  ;;  %2633 = vmatpush1.bf16.msra.mxu1 %v5323_v58 }
 0xd8f   :  { %2593 = vmatprep.subr.bf16.mxu0 %v5329_v37  ;;  %2634 = vmatprep.subr.bf16.mxu1 %v5335_v33 }
 0xd92   :  { %2594 = vmatpush1.bf16.msra.mxu0 %v5341_v47  ;;  %2635 = vmatpush1.bf16.msra.mxu1 %v5347_v23 }
 0xd93   :  { %2595 = vmatprep.subr.bf16.mxu0 %v5353_v51  ;;  %2636 = vmatprep.subr.bf16.mxu1 %v5359_v56 }
 0xd96   :  { %2596 = vmatpush1.bf16.msra.mxu0 %v5365_v63  ;;  %2637 = vmatpush1.bf16.msra.mxu1 %v5371_v0 }
 0xd97   :  { %2597 = vmatprep.subr.bf16.mxu0 %v5377_v2  ;;  %2638 = vmatprep.subr.bf16.mxu1 %v5383_v3 }
 0xd9a   :  { %2598 = vmatpush1.bf16.msra.mxu0 %v5389_v48  ;;  %2639 = vmatpush1.bf16.msra.mxu1 %v5395_v6 }
 0xd9b   :  { %2599 = vmatprep.subr.bf16.mxu0 %v5401_v49  ;;  %2640 = vmatprep.subr.bf16.mxu1 %v5407_v7 }
 0xd9e   :  { %2600 = vmatpush1.bf16.msra.mxu0 %v5413_v52  ;;  %2641 = vmatpush1.bf16.msra.mxu1 %v5419_v8 }
 0xd9f   :  { %2696 = vmatprep.subr.bf16.mxu0 %v5219_v15  ;;  %2737 = vmatprep.subr.bf16.mxu1 %v5225_v25 }
 0xe54   :  { %v2508_v35 = vpop.f32.mrb[84].mxu0  ;;  %v2549_v59 = vpop.f32.mrb[84].mxu1 }
 0xe55   :  { %v2556_v60 = vadd.f32 %v2508_v35, %v1640_v9  ;;  %v2558_v19 = vadd.f32 %v2549_v59, %v1713_v10  ;;  %v2510_v26 = vpop.f32.mrb[85].mxu0  ;;  %v2551_v15 = vpop.f32.mrb[85].mxu1 }
 0xe56   :  { %v2557_v17 = vadd.f32 %v2510_v26, %v1642_v11  ;;  %v2559_v25 = vadd.f32 %v2551_v15, %v1715_v34  ;;  %v2512_v27 = vpop.f32.mrb[86].mxu0  ;;  %v2553_v30 = vpop.f32.mrb[86].mxu1 }
 0xe57   :  { %v3150_v13 = vmul.f32 -1.442695, %v2556_v60  ;;  %v2513_v28 = vpop.f32.mrb[87].mxu0  ;;  %v2554_v16 = vpop.f32.mrb[87].mxu1 }
 0xe58   :  { %v3151_v29 = vmul.f32 -1.442695, %v2557_v17  ;;  %v3152_v41 = vmul.f32 -1.442695, %v2559_v25  ;;  %v2807_v28 = vld [vmem:[%s5567_s7 + $0x8] sm:$0xff] }
 0xe59   :  { %3615 = vpow2.f32 %v3150_v13  ;;  %v2806_v13 = vld [vmem:[%s5567_s7] sm:$0xff] }
 0xe5a   :  { %3617 = vpow2.f32 %v3151_v29  ;;  %v3225_v16 = vpack.c.bf16 %v2807_v28, %v2806_v13  ;;  %v3732_v29 = vmov 0.0|0.0  }
 0xe5b   :  { %3619 = vpow2.f32 %v3152_v41  ;;  %v2808_v41 = vld [vmem:[%s5567_s7 + $0x10] sm:$0xff] }
 0xe5c   :  { %3621 = vtanh.f32 %v2558_v19 }
 0xe63   :  { %v3616_v21 = vpop.eup %3615 }
 0xe64   :  { %v3618_v18 = vpop.eup %3617  ;;  %v2563_v38 = vadd.f32 1.0, %v3616_v21  ;;  %v2809_v21 = vld [vmem:[%s5567_s7 + $0x18] sm:$0xff] }
 0xe65   :  { %v2569_v22 = vadd.f32 1.0, %v3618_v18  ;;  %v3620_v32 = vpop.eup %3619  ;;  %v3228_v18 = vpack.c.bf16 %v2809_v21, %v2808_v41  ;;  %v3159_v41 = vld [vmem:[%s5569_s8] ss:$0 sm:$0xff] }
 0xe66   :  { %3623 = vrcp.f32 %v2563_v38  ;;  %v3622_v53 = vpop.eup %3621  ;;  %v2576_v55 = vadd.f32 1.0, %v3620_v32  ;;  %v2810_v38 = vld [vmem:[%s5567_s7 + $0x20] sm:$0xff] }
 0xe67   :  { %3625 = vrcp.f32 %v2569_v22  ;;  %v2811_v22 = vld [vmem:[%s5567_s7 + $0x28] sm:$0xff] }
 0xe68   :  { %3627 = vrcp.f32 %v2576_v55  ;;  %v3231_v32 = vpack.c.bf16 %v2811_v22, %v2810_v38  ;;  %v2815_v55 = vld [vmem:[%s5567_s7 + $0x48] sm:$0xff] }
 0xe70   :  { %v3624_v9 = vpop.eup %3623 }
 0xe71   :  { %v3626_v54 = vpop.eup %3625  ;;  %v2580_v10 = vmul.f32 %v3624_v9, %v3622_v53  ;;  %v2812_v53 = vld [vmem:[%s5567_s7 + $0x30] sm:$0xff]  ;;  %v2813_v9 = vld [vmem:[%s5567_s7 + $0x38] sm:$0xff] }
 0xe72   :  { %v2579_v11 = vmul.f32 %v3626_v54, %v5237_v50  ;;  %v3628_v34 = vpop.eup %3627  ;;  %v3234_v54 = vpack.c.bf16 %v2813_v9, %v2812_v53 }
 0xe74   :  { %v5433_v57 = vadd.f32 %v2580_v10, %v2579_v11  ;;  %v2814_v10 = vld [vmem:[%s5567_s7 + $0x40] sm:$0xff] }
 0xe75   :  { %v3237_v11 = vpack.c.bf16 %v2815_v55, %v2814_v10 }
 0xe76   :  { %3629 = vtanh.f32 %v5433_v57 }
 0xe80   :  { %v3630_v35 = vpop.eup %3629 }
 0xe81   :  { %v2583_v59 = vmul.f32 %v3630_v35, %v3628_v34  ;;  %v2817_v34 = vld [vmem:[%s5567_s7 + $0x58] sm:$0xff]  ;;  %v2818_v35 = vld [vmem:[%s5567_s7 + $0x60] sm:$0xff] }
 0xe83   :  { %v2584_v60 = vpack.c.bf16 %v2583_v59, %v2583_v59 }
 0xe85   :  { %2618 = vmatmul.mubr.bf16.vlgmr.msra.gmra.mrb[88].mxu0 %v2584_v60  ;;  %2659 = vmatmul.mubr.bf16.vlgmr.msra.gmra.mrb[88].mxu1 %v2584_v60  ;;  %v2819_v60 = vld [vmem:[%s5567_s7 + $0x68] sm:$0xff] }
 0xe86   :  { %2697 = vmatpush1.bf16.msra.mxu0 %v5243_v40  ;;  %2738 = vmatpush1.bf16.msra.mxu1 %v5249_v5  ;;  %v5669_v40 = vld [vmem:[#allocation19_spill] sm:$0xff] }
 0xe87   :  { %2698 = vmatprep.subr.bf16.mxu0 %v5255_v61  ;;  %2739 = vmatprep.subr.bf16.mxu1 %v5261_v62  ;;  %v1719_v5 = vadd.f32 %v5669_v40, %v5021_v42  ;;  %v5670_v61 = vld [vmem:[#allocation20_spill] sm:$0xff] }
 0xe88   :  { %2728 = vmatprep.mubr.bf16.mxu0 %v5603_v14  ;;  %2769 = vmatprep.mubr.bf16.mxu1 %v5603_v14  ;;  %v5668_v14 = vld [vmem:[#allocation18_spill] sm:$0xff]  ;;  %v1648_v62 = vadd.f32 %v5670_v61, %v5029_v39  ;;  %v2820_v40 = vld [vmem:[%s5567_s7 + $0x70] sm:$0xff] }
 0xe89   :  { %v1646_v50 = vadd.f32 %v5668_v14, %v5017_v44  ;;  %v3734_v14 = vmov 0.0  }
 0xe8a   :  { %2699 = vmatpush1.bf16.msra.mxu0 %v5269_v31  ;;  %2740 = vmatpush1.bf16.msra.mxu1 %v5275_v46  ;;  %v5671_v31 = vld [vmem:[#allocation21_spill] sm:$0xff] }
 0xe8b   :  { %2700 = vmatprep.subr.bf16.mxu0 %v5281_v12  ;;  %2741 = vmatprep.subr.bf16.mxu1 %v5287_v36  ;;  %v1721_v46 = vadd.f32 %v5671_v31, %v5033_v24  ;;  %v2900_v31 = vld [vmem:[%s5568_s9 + $0x8] sm:$0xff] }
 0xe8e   :  { %2701 = vmatpush1.bf16.msra.mxu0 %v5293_v4  ;;  %2742 = vmatpush1.bf16.msra.mxu1 %v5299_v43 }
 0xe8f   :  { %2702 = vmatprep.subr.bf16.mxu0 %v5305_v1  ;;  %2743 = vmatprep.subr.bf16.mxu1 %v5311_v20 }
 0xe92   :  { %2703 = vmatpush1.bf16.msra.mxu0 %v5317_v45  ;;  %2744 = vmatpush1.bf16.msra.mxu1 %v5323_v58 }
 0xe93   :  { %2704 = vmatprep.subr.bf16.mxu0 %v5329_v37  ;;  %2745 = vmatprep.subr.bf16.mxu1 %v5335_v33 }
 0xe96   :  { %2705 = vmatpush1.bf16.msra.mxu0 %v5341_v47  ;;  %2746 = vmatpush1.bf16.msra.mxu1 %v5347_v23 }
 0xe97   :  { %2706 = vmatprep.subr.bf16.mxu0 %v5353_v51  ;;  %2747 = vmatprep.subr.bf16.mxu1 %v5359_v56 }
 0xe9a   :  { %2707 = vmatpush1.bf16.msra.mxu0 %v5365_v63  ;;  %2748 = vmatpush1.bf16.msra.mxu1 %v5371_v0 }
 0xe9b   :  { %2708 = vmatprep.subr.bf16.mxu0 %v5377_v2  ;;  %2749 = vmatprep.subr.bf16.mxu1 %v5383_v3 }
 0xe9e   :  { %2709 = vmatpush1.bf16.msra.mxu0 %v5389_v48  ;;  %2750 = vmatpush1.bf16.msra.mxu1 %v5395_v6 }
 0xe9f   :  { %2710 = vmatprep.subr.bf16.mxu0 %v5401_v49  ;;  %2751 = vmatprep.subr.bf16.mxu1 %v5407_v7 }
 0xea2   :  { %2711 = vmatpush1.bf16.msra.mxu0 %v5413_v52  ;;  %2752 = vmatpush1.bf16.msra.mxu1 %v5419_v8 }
 0xea3   :  { %3224 = vmatprep.subr.bf16.mxu0 %v3732_v29  ;;  %3248 = vmatprep.subr.bf16.mxu1 %v3732_v29 }
 0xf58   :  { %v2619_v12 = vpop.f32.mrb[88].mxu0  ;;  %v2660_v36 = vpop.f32.mrb[88].mxu1 }
 0xf59   :  { %v2667_v4 = vadd.f32 %v2619_v12, %v1646_v50  ;;  %v2669_v43 = vadd.f32 %v2660_v36, %v1719_v5  ;;  %v2621_v1 = vpop.f32.mrb[89].mxu0  ;;  %v2662_v20 = vpop.f32.mrb[89].mxu1  ;;  %v3243_v50 = vpack.c.bf16 %v2819_v60, %v2818_v35  ;;  %v2821_v5 = vld [vmem:[%s5567_s7 + $0x78] sm:$0xff]  ;;  %v5672_v12 = vld [vmem:[#allocation22_spill] sm:$0xff] }
 0xf5a   :  { %v2668_v45 = vadd.f32 %v2621_v1, %v1648_v62  ;;  %v2670_v58 = vadd.f32 %v2662_v20, %v1721_v46  ;;  %v2623_v37 = vpop.f32.mrb[90].mxu0  ;;  %v2664_v33 = vpop.f32.mrb[90].mxu1  ;;  %v3246_v61 = vpack.c.bf16 %v2821_v5, %v2820_v40  ;;  %v2899_v62 = vld [vmem:[%s5568_s9] sm:$0xff]  ;;  %v1650_v36 = vadd.f32 %v5672_v12, %v5017_v44 }
 0xf5b   :  { %v3153_v47 = vmul.f32 -1.442695, %v2667_v4  ;;  %v2624_v23 = vpop.f32.mrb[91].mxu0  ;;  %v2665_v51 = vpop.f32.mrb[91].mxu1  ;;  %v3249_v46 = vpack.c.bf16 %v2900_v31, %v2899_v62  ;;  %v5673_v4 = vld [vmem:[#allocation23_spill] sm:$0xff]  ;;  %v5674_v1 = vld [vmem:[#allocation2_spill] sm:$0xff] }
 0xf5c   :  { %v3154_v56 = vmul.f32 -1.442695, %v2668_v45  ;;  %v3155_v63 = vmul.f32 -1.442695, %v2670_v58  ;;  %v1652_v20 = vadd.f32 %v5674_v1, %v5029_v39  ;;  %v5675_v45 = vld [vmem:[#allocation24_spill] sm:$0xff] }
 0xf5d   :  { %3631 = vpow2.f32 %v3153_v47  ;;  %v1725_v58 = vadd.f32 %v5675_v45, %v5033_v24 }
 0xf5e   :  { %3633 = vpow2.f32 %v3154_v56 }
 0xf5f   :  { %3635 = vpow2.f32 %v3155_v63 }
 0xf60   :  { %3637 = vtanh.f32 %v2669_v43  ;;  %v1723_v43 = vadd.f32 %v5673_v4, %v5021_v42 }
 0xf67   :  { %v3632_v0 = vpop.eup %3631 }
 0xf68   :  { %v3634_v2 = vpop.eup %3633  ;;  %v2674_v3 = vadd.f32 1.0, %v3632_v0 }
 0xf69   :  { %v2680_v48 = vadd.f32 1.0, %v3634_v2  ;;  %v3636_v6 = vpop.eup %3635 }
 0xf6a   :  { %3639 = vrcp.f32 %v2674_v3  ;;  %v3638_v49 = vpop.eup %3637  ;;  %v2687_v19 = vadd.f32 1.0, %v3636_v6 }
 0xf6b   :  { %3641 = vrcp.f32 %v2680_v48 }
 0xf6c   :  { %3643 = vrcp.f32 %v2687_v19 }
 0xf74   :  { %v3640_v7 = vpop.eup %3639 }
 0xf75   :  { %v3642_v52 = vpop.eup %3641  ;;  %v2691_v8 = vmul.f32 %v3640_v7, %v3638_v49 }
 0xf76   :  { %v2690_v26 = vmul.f32 %v3642_v52, %v5433_v57  ;;  %v3644_v17 = vpop.eup %3643  ;;  %v2816_v57 = vld [vmem:[%s5567_s7 + $0x50] sm:$0xff] }
 0xf77   :  { %v3240_v59 = vpack.c.bf16 %v2817_v34, %v2816_v57 }
 0xf78   :  { %v5477_v15 = vadd.f32 %v2691_v8, %v2690_v26 }
 0xf7a   :  { %3645 = vtanh.f32 %v5477_v15 }
 0xf84   :  { %v3646_v25 = vpop.eup %3645 }
 0xf85   :  { %v2694_v27 = vmul.f32 %v3646_v25, %v3644_v17 }
 0xf87   :  { %v2695_v30 = vpack.c.bf16 %v2694_v27, %v2694_v27 }
 0xf89   :  { %2729 = vmatmul.mubr.bf16.vlgmr.msra.gmra.mrb[92].mxu0 %v2695_v30  ;;  %2770 = vmatmul.mubr.bf16.vlgmr.msra.gmra.mrb[92].mxu1 %v2695_v30 }
 0xf8a   :  { %3226 = vmatpush3.bf16.msra.mxu0 %v3225_v16  ;;  %3214 = vmatprep.mubr.msk.f32.mxu0 %vm3733_vm1, %v3734_v14 }
 0xf8b   :  { %3227 = vmatprep.subr.bf16.mxu0 %v3732_v29  ;;  %3221 = vmatprep.mubr.msk.f32.mxu1 %vm3733_vm1, %v3734_v14 }
 0xf8c   :  { %3250 = vmatpush3.bf16.msra.mxu1 %v3249_v46 }
 0xf8e   :  { %3229 = vmatpush3.bf16.msra.mxu0 %v3228_v18 }
 0xf8f   :  { %3230 = vmatprep.subr.bf16.mxu0 %v3732_v29 }
 0xf92   :  { %3232 = vmatpush3.bf16.msra.mxu0 %v3231_v32 }
 0xf93   :  { %3233 = vmatprep.subr.bf16.mxu0 %v3732_v29 }
 0xf96   :  { %3235 = vmatpush3.bf16.msra.mxu0 %v3234_v54 }
 0xf97   :  { %3236 = vmatprep.subr.bf16.mxu0 %v3732_v29 }
 0xf9a   :  { %3238 = vmatpush3.bf16.msra.mxu0 %v3237_v11 }
 0xf9b   :  { %3239 = vmatprep.subr.bf16.mxu0 %v3732_v29 }
 0xf9e   :  { %3241 = vmatpush3.bf16.msra.mxu0 %v3240_v59 }
 0xf9f   :  { %3242 = vmatprep.subr.bf16.mxu0 %v3732_v29 }
 0xfa2   :  { %3244 = vmatpush3.bf16.msra.mxu0 %v3243_v50 }
 0xfa3   :  { %3245 = vmatprep.subr.bf16.mxu0 %v3732_v29 }
 0xfa6   :  { %3247 = vmatpush3.bf16.msra.mxu0 %v3246_v61 }
0x105c   :  { %v2730_v37 = vpop.f32.mrb[92].mxu0  ;;  %v2771_v33 = vpop.f32.mrb[92].mxu1 }
0x105d   :  { %v2778_v47 = vadd.f32 %v2730_v37, %v1650_v36  ;;  %v2780_v23 = vadd.f32 %v2771_v33, %v1723_v43  ;;  %v2732_v51 = vpop.f32.mrb[93].mxu0  ;;  %v2773_v56 = vpop.f32.mrb[93].mxu1 }
0x105e   :  { %v2779_v63 = vadd.f32 %v2732_v51, %v1652_v20  ;;  %v2781_v0 = vadd.f32 %v2773_v56, %v1725_v58  ;;  %v2734_v2 = vpop.f32.mrb[94].mxu0  ;;  %v2775_v3 = vpop.f32.mrb[94].mxu1 }
0x105f   :  { %v3156_v44 = vmul.f32 -1.442695, %v2778_v47  ;;  %v2735_v48 = vpop.f32.mrb[95].mxu0  ;;  %v2776_v6 = vpop.f32.mrb[95].mxu1 }
0x1060   :  { %v3157_v42 = vmul.f32 -1.442695, %v2779_v63  ;;  %v3158_v39 = vmul.f32 -1.442695, %v2781_v0 }
0x1061   :  { %3647 = vpow2.f32 %v3156_v44 }
0x1062   :  { %3649 = vpow2.f32 %v3157_v42 }
0x1063   :  { %3651 = vpow2.f32 %v3158_v39 }
0x1064   :  { %3653 = vtanh.f32 %v2780_v23 }
0x106b   :  { %v3648_v49 = vpop.eup %3647 }
0x106c   :  { %v3650_v7 = vpop.eup %3649  ;;  %v2785_v24 = vadd.f32 1.0, %v3648_v49 }
0x106d   :  { %v2791_v52 = vadd.f32 1.0, %v3650_v7  ;;  %v3652_v8 = vpop.eup %3651 }
0x106e   :  { %3655 = vrcp.f32 %v2785_v24  ;;  %v3654_v19 = vpop.eup %3653  ;;  %v2798_v27 = vadd.f32 1.0, %v3652_v8 }
0x106f   :  { %3657 = vrcp.f32 %v2791_v52 }
0x1070   :  { %3659 = vrcp.f32 %v2798_v27 }
0x1078   :  { %v3656_v26 = vpop.eup %3655 }
0x1079   :  { %v3658_v17 = vpop.eup %3657  ;;  %v2802_v25 = vmul.f32 %v3656_v26, %v3654_v19 }
0x107a   :  { %v2801_v30 = vmul.f32 %v3658_v17, %v5477_v15  ;;  %v3660_v28 = vpop.eup %3659  ;;  %v3160_v15 = vld [vmem:[%s5571_s10] ss:$0 sm:$0xff] }
0x107c   :  { %v2803_v13 = vadd.f32 %v2802_v25, %v2801_v30 }
0x107e   :  { %3661 = vtanh.f32 %v2803_v13 }
0x1088   :  { %v3662_v16 = vpop.eup %3661 }
0x1089   :  { %v2805_v29 = vmul.f32 %v3662_v16, %v3660_v28 }
0x108b   :  { %3215 = vmatmul.mubr.f32.vlgmr.msra.gmra.mrb[96].mxu0 %v2805_v29 }
0x115e   :  { %v2895_v21 = vpop.f32.mrb[96].mxu0 }
0x115f   :  { %v2896_v18 = vadd.f32 %v3159_v41, %v2895_v21  ;;  %v3216_v38 = vpop.f32.mrb[97].mxu0 }
0x1161   :  { %2994 = vst.msk [vmem:[%s5570_s12] sm:$0xff] %vm125_vm0, %v2896_v18  ;;  %3222 = vmatmul.mubr.msk.f32.vlgmr.msra.gmra.mrb[96].mxu1 %vm125_vm0, %v2896_v18 }
0x1234   :  { %v2977_v22 = vpop.f32.mrb[96].mxu1 }
0x1235   :  { %v2978_v32 = vadd.f32 %v3160_v15, %v2977_v22  ;;  %v3223_v53 = vpop.f32.mrb[97].mxu1 }
0x1237   :  { %v2982_v9 = vsel %vm2981_vm2, %v2978_v32, -inf }
0x1238   :  { %2983 = vmax.xlane.f32.xlu0 %v2982_v9 }
0x12c5   :  { %v2984_v54 = vpop.xlane.xlu0 %2983 }
0x12c6   :  { %v2985_v10 = vsub.f32 %v2978_v32, %v2984_v54 }
0x12c8   :  { %v2986_v55 = vmul.f32 1.442695, %v2985_v10 }
0x12ca   :  { %3663 = vpow2.f32 %v2986_v55 }
0x12d4   :  { %v3664_v11 = vpop.eup %3663 }
0x12d5   :  { %v2988_v57 = vsel %vm2981_vm2, %v3664_v11, 0.0 }
0x12d6   :  { %2989 = vadd.xlane.f32.xlu0 %v2988_v57 }
0x1363   :  { %v2990_v34 = vpop.xlane.xlu0 %2989 }
0x1364   :  { %3665 = vrcp.f32 %v2990_v34 }
0x136e   :  { %v3666_v35 = vpop.eup %3665 }
0x136f   :  { %v2992_v59 = vmul.f32 %v3666_v35, %v3664_v11 }
0x1371   :  { %2993 = vst.msk [vmem:[%s5572_s11] sm:$0xff] %vm2981_vm2, %v2992_v59 }

</bundles_post_ra>
